<compile_context>
chip_gen: v7x
topology: tpu7x:2x2x1
jax: 0.10.0
libtpu: 0.0.40
codegen_flags: <defaults>
</compile_context>

<pallas_src>
import functools

import jax
import jax.numpy as jnp
from jax.experimental import pallas as pl
from jax.experimental.pallas import tpu as pltpu


def _time_conv_kernel(x_ref, wdw_ref, wpwT_ref, bpw_ref, out_ref, xpad_ref):
    # x_ref    : (B, T, C)          input, channels on the 128-lane axis
    # wdw_ref  : (n_br, kmax, C)    depthwise taps, centered & zero-padded to kmax
    # wpwT_ref : (n_br, C, C)       1x1 conv weights, transposed to [C_in, C_out]
    # bpw_ref  : (n_br, 1, C)       folded bias: b_pw + W_pw @ b_dw
    # out_ref  : (B, T, n_br*C)     fused lane-dense output
    # xpad_ref : (B, T+kmax-1, C)   VMEM scratch holding the zero-padded halo
    B, T, C = x_ref.shape
    n_br, kmax, _ = wdw_ref.shape
    pad = (xpad_ref.shape[1] - T) // 2

    # Build the shared zero-padded time halo ONCE in VMEM (pad fused in-kernel).
    xpad_ref[...] = jnp.zeros_like(xpad_ref)
    xpad_ref[:, pl.ds(pad, T), :] = x_ref[...].astype(xpad_ref.dtype)

    # Static unroll over the three kernel sizes — one invocation, three matmuls.
    for i in range(n_br):
        # Depthwise temporal conv: uniform kmax-tap sum.  Shorter kernels carry
        # centered zero taps, so one loop is exact for every branch.
        acc = xpad_ref[:, pl.ds(0, T), :] * wdw_ref[i, 0, :]
        for j in range(1, kmax):
            acc = acc + xpad_ref[:, pl.ds(j, T), :] * wdw_ref[i, j, :]

        # Pointwise (1x1) conv: batch folded into M -> one (B*T, C) @ (C, C)
        # MXU matmul per branch, f32 accumulate.
        z = jnp.dot(acc.reshape(B * T, C), wpwT_ref[i],
                    preferred_element_type=jnp.float32)
        z = z + bpw_ref[i, 0, :]

        # Lane-aligned 256-wide slab of the fused output (unmasked full-lane vst).
        out_ref[:, :, pl.ds(i * C, C)] = z.reshape(B, T, C).astype(out_ref.dtype)


def pack_time_conv_params(params, kernel_size_list):
    """Init-time packing (hoisted out of the per-call path).

    Returns (wdw, wpwT, bpw_eff):
      wdw    : (n_br, kmax, C) centered, zero-padded depthwise taps
      wpwT   : (n_br, C, C)    1x1 weights transposed to [C_in, C_out]
      bpw_eff: (n_br, 1, C)    b_pw + W_pw @ b_dw  (depthwise bias folded in)
    """
    kmax = max(kernel_size_list)
    wdw, wpwT, bpw = [], [], []
    for k, (w_dw, b_dw, w_pw, b_pw) in zip(kernel_size_list, params):
        off = (kmax - k) // 2
        wdw.append(jnp.pad(jnp.transpose(w_dw),            # (k, C) -> (kmax, C)
                           ((off, kmax - k - off), (0, 0))))
        wpwT.append(jnp.transpose(w_pw))                    # (C_in, C_out)
        bpw.append(b_pw + w_pw @ b_dw)                      # fold depthwise bias
    return jnp.stack(wdw), jnp.stack(wpwT), jnp.stack(bpw)[:, None, :]


@functools.partial(jax.jit, static_argnames=())
def time_conv(x_nct, packed):
    """x_nct: [B, C, T] (PyTorch NCT). Returns [B, n_br*C, T]."""
    wdw, wpwT, bpw = packed
    B, C, T = x_nct.shape
    n_br, kmax, _ = wdw.shape
    Tp = T + 2 * (kmax // 2)

    # Channels on lanes -> [B, T, C].
    x_btc = jnp.transpose(x_nct, (0, 2, 1))

    vmem = pl.BlockSpec(memory_space=pltpu.MemorySpace.VMEM)
    out_btc = pl.pallas_call(
        _time_conv_kernel,
        out_shape=jax.ShapeDtypeStruct((B, T, n_br * C), x_nct.dtype),
        in_specs=[vmem, vmem, vmem, vmem],
        out_specs=vmem,
        scratch_shapes=[pltpu.VMEM((B, Tp, C), jnp.float32)],
    )(x_btc, wdw, wpwT, bpw)

    # Module contract is [B, n_br*C, T]; if the downstream consumer accepts
    # [B, T, n_br*C], return out_btc directly and drop this transpose.
    return jnp.transpose(out_btc, (0, 2, 1))


def _reference(x_nct, params, kernel_size_list):
    """Pure-JAX reference matching PyTorch Conv1d semantics."""
    B, C, T = x_nct.shape
    outs = []
    for k, (w_dw, b_dw, w_pw, b_pw) in zip(kernel_size_list, params):
        pad = k // 2
        xp = jnp.pad(x_nct, ((0, 0), (0, 0), (pad, pad)))
        y = sum(xp[:, :, j:j + T] * w_dw[None, :, j, None] for j in range(k))
        y = y + b_dw[None, :, None]
        z = jnp.einsum("oi,bit->bot", w_pw, y) + b_pw[None, :, None]
        outs.append(z)
    return jnp.concatenate(outs, axis=1)


if __name__ == "__main__":
    B, C, T = 2, 256, 16                     # C=256 matches the hardcoded 1x1 convs
    kernel_size_list = [3, 5, 7]

    key = jax.random.PRNGKey(0)
    keys = jax.random.split(key, 1 + 4 * len(kernel_size_list))
    x = jax.random.normal(keys[0], (B, C, T), jnp.float32)

    # Deterministic synthetic parameters (module __init__ + the fresh 1x1 convs
    # instantiated inside forward).
    params = []
    for i, k in enumerate(kernel_size_list):
        kw = keys[1 + 4 * i: 1 + 4 * (i + 1)]
        w_dw = jax.random.normal(kw[0], (C, k), jnp.float32) * 0.1   # depthwise (C,1,k) squeezed
        b_dw = jax.random.normal(kw[1], (C,), jnp.float32) * 0.1
        w_pw = jax.random.normal(kw[2], (C, C), jnp.float32) * 0.05  # 1x1 conv (256,256,1) squeezed
        b_pw = jax.random.normal(kw[3], (C,), jnp.float32) * 0.1
        params.append((w_dw, b_dw, w_pw, b_pw))

    # Weight packing happens ONCE (init time), not per forward call.
    packed = pack_time_conv_params(params, kernel_size_list)
    packed = jax.block_until_ready(packed)

    fused = time_conv(x, packed)
    fused = jax.block_until_ready(fused)

    ref = _reference(x, params, kernel_size_list)
    assert fused.shape == (B, len(kernel_size_list) * C, T), fused.shape
    assert jnp.allclose(fused, ref, atol=1e-3, rtol=1e-3), "mismatch vs reference"

    print("KERNEL_OK")
</pallas_src>

<mosaic_0001>
module attributes {stable_mosaic.version = 11 : i64} {
  func.func @_time_conv_kernel(%arg0: memref<2x16x256xf32, #tpu.memory_space<vmem>>, %arg1: memref<3x7x256xf32, #tpu.memory_space<vmem>>, %arg2: memref<3x256x256xf32, #tpu.memory_space<vmem>>, %arg3: memref<3x1x256xf32, #tpu.memory_space<vmem>>, %arg4: memref<2x16x768xf32, #tpu.memory_space<vmem>>, %arg5: memref<2x22x256xf32, #tpu.memory_space<vmem>>) attributes {dimension_semantics = [], scalar_prefetch = 0 : i64, scratch_operands = 1 : i64, tpu.core_type = #tpu.core_type<tc>} {
    %cst = arith.constant 0.000000e+00 : f32
    %0 = vector.broadcast %cst : f32 to vector<2x22x256xf32>
    %c0 = arith.constant 0 : index
    %c0_0 = arith.constant 0 : index
    %c0_1 = arith.constant 0 : index
    %1 = vector.load %arg5[%c0, %c0_0, %c0_1] : memref<2x22x256xf32, #tpu.memory_space<vmem>>, vector<2x22x256xf32>
    tpu.vector_store %arg5[%c0, %c0_0, %c0_1], %0 {strides = array<i32>} : memref<2x22x256xf32, #tpu.memory_space<vmem>>, vector<2x22x256xf32>,
    %c0_2 = arith.constant 0 : index
    %c0_3 = arith.constant 0 : index
    %c0_4 = arith.constant 0 : index
    %2 = vector.load %arg0[%c0_2, %c0_3, %c0_4] : memref<2x16x256xf32, #tpu.memory_space<vmem>>, vector<2x16x256xf32>
    %c0_5 = arith.constant 0 : index
    %c3 = arith.constant 3 : index
    %c0_6 = arith.constant 0 : index
    %3 = vector.load %arg5[%c0_5, %c3, %c0_6] : memref<2x22x256xf32, #tpu.memory_space<vmem>>, vector<2x16x256xf32>
    tpu.vector_store %arg5[%c0_5, %c3, %c0_6], %2 {strides = array<i32>} : memref<2x22x256xf32, #tpu.memory_space<vmem>>, vector<2x16x256xf32>,
    %c0_7 = arith.constant 0 : index
    %c0_8 = arith.constant 0 : index
    %c0_9 = arith.constant 0 : index
    %4 = vector.load %arg5[%c0_7, %c0_8, %c0_9] : memref<2x22x256xf32, #tpu.memory_space<vmem>>, vector<2x16x256xf32>
    %c0_10 = arith.constant 0 : index
    %c0_11 = arith.constant 0 : index
    %c0_12 = arith.constant 0 : index
    %5 = vector.load %arg1[%c0_10, %c0_11, %c0_12] : memref<3x7x256xf32, #tpu.memory_space<vmem>>, vector<1x1x256xf32>
    %6 = vector.shape_cast %5 : vector<1x1x256xf32> to vector<256xf32>
    %7 = vector.shape_cast %6 : vector<256xf32> to vector<1x1x256xf32>
    %8 = vector.broadcast %7 : vector<1x1x256xf32> to vector<2x16x256xf32>
    %9 = arith.mulf %4, %8 : vector<2x16x256xf32>
    %c0_13 = arith.constant 0 : index
    %c1 = arith.constant 1 : index
    %c0_14 = arith.constant 0 : index
    %10 = vector.load %arg5[%c0_13, %c1, %c0_14] : memref<2x22x256xf32, #tpu.memory_space<vmem>>, vector<2x16x256xf32>
    %c0_15 = arith.constant 0 : index
    %c1_16 = arith.constant 1 : index
    %c0_17 = arith.constant 0 : index
    %11 = vector.load %arg1[%c0_15, %c1_16, %c0_17] : memref<3x7x256xf32, #tpu.memory_space<vmem>>, vector<1x1x256xf32>
    %12 = vector.shape_cast %11 : vector<1x1x256xf32> to vector<256xf32>
    %13 = vector.shape_cast %12 : vector<256xf32> to vector<1x1x256xf32>
    %14 = vector.broadcast %13 : vector<1x1x256xf32> to vector<2x16x256xf32>
    %15 = arith.mulf %10, %14 : vector<2x16x256xf32>
    %16 = arith.addf %9, %15 : vector<2x16x256xf32>
    %c0_18 = arith.constant 0 : index
    %c2 = arith.constant 2 : index
    %c0_19 = arith.constant 0 : index
    %17 = vector.load %arg5[%c0_18, %c2, %c0_19] : memref<2x22x256xf32, #tpu.memory_space<vmem>>, vector<2x16x256xf32>
    %c0_20 = arith.constant 0 : index
    %c2_21 = arith.constant 2 : index
    %c0_22 = arith.constant 0 : index
    %18 = vector.load %arg1[%c0_20, %c2_21, %c0_22] : memref<3x7x256xf32, #tpu.memory_space<vmem>>, vector<1x1x256xf32>
    %19 = vector.shape_cast %18 : vector<1x1x256xf32> to vector<256xf32>
    %20 = vector.shape_cast %19 : vector<256xf32> to vector<1x1x256xf32>
    %21 = vector.broadcast %20 : vector<1x1x256xf32> to vector<2x16x256xf32>
    %22 = arith.mulf %17, %21 : vector<2x16x256xf32>
    %23 = arith.addf %16, %22 : vector<2x16x256xf32>
    %c0_23 = arith.constant 0 : index
    %c3_24 = arith.constant 3 : index
    %c0_25 = arith.constant 0 : index
    %24 = vector.load %arg5[%c0_23, %c3_24, %c0_25] : memref<2x22x256xf32, #tpu.memory_space<vmem>>, vector<2x16x256xf32>
    %c0_26 = arith.constant 0 : index
    %c3_27 = arith.constant 3 : index
    %c0_28 = arith.constant 0 : index
    %25 = vector.load %arg1[%c0_26, %c3_27, %c0_28] : memref<3x7x256xf32, #tpu.memory_space<vmem>>, vector<1x1x256xf32>
    %26 = vector.shape_cast %25 : vector<1x1x256xf32> to vector<256xf32>
    %27 = vector.shape_cast %26 : vector<256xf32> to vector<1x1x256xf32>
    %28 = vector.broadcast %27 : vector<1x1x256xf32> to vector<2x16x256xf32>
    %29 = arith.mulf %24, %28 : vector<2x16x256xf32>
    %30 = arith.addf %23, %29 : vector<2x16x256xf32>
    %c0_29 = arith.constant 0 : index
    %c4 = arith.constant 4 : index
    %c0_30 = arith.constant 0 : index
    %31 = vector.load %arg5[%c0_29, %c4, %c0_30] : memref<2x22x256xf32, #tpu.memory_space<vmem>>, vector<2x16x256xf32>
    %c0_31 = arith.constant 0 : index
    %c4_32 = arith.constant 4 : index
    %c0_33 = arith.constant 0 : index
    %32 = vector.load %arg1[%c0_31, %c4_32, %c0_33] : memref<3x7x256xf32, #tpu.memory_space<vmem>>, vector<1x1x256xf32>
    %33 = vector.shape_cast %32 : vector<1x1x256xf32> to vector<256xf32>
    %34 = vector.shape_cast %33 : vector<256xf32> to vector<1x1x256xf32>
    %35 = vector.broadcast %34 : vector<1x1x256xf32> to vector<2x16x256xf32>
    %36 = arith.mulf %31, %35 : vector<2x16x256xf32>
    %37 = arith.addf %30, %36 : vector<2x16x256xf32>
    %c0_34 = arith.constant 0 : index
    %c5 = arith.constant 5 : index
    %c0_35 = arith.constant 0 : index
    %38 = vector.load %arg5[%c0_34, %c5, %c0_35] : memref<2x22x256xf32, #tpu.memory_space<vmem>>, vector<2x16x256xf32>
    %c0_36 = arith.constant 0 : index
    %c5_37 = arith.constant 5 : index
    %c0_38 = arith.constant 0 : index
    %39 = vector.load %arg1[%c0_36, %c5_37, %c0_38] : memref<3x7x256xf32, #tpu.memory_space<vmem>>, vector<1x1x256xf32>
    %40 = vector.shape_cast %39 : vector<1x1x256xf32> to vector<256xf32>
    %41 = vector.shape_cast %40 : vector<256xf32> to vector<1x1x256xf32>
    %42 = vector.broadcast %41 : vector<1x1x256xf32> to vector<2x16x256xf32>
    %43 = arith.mulf %38, %42 : vector<2x16x256xf32>
    %44 = arith.addf %37, %43 : vector<2x16x256xf32>
    %c0_39 = arith.constant 0 : index
    %c6 = arith.constant 6 : index
    %c0_40 = arith.constant 0 : index
    %45 = vector.load %arg5[%c0_39, %c6, %c0_40] : memref<2x22x256xf32, #tpu.memory_space<vmem>>, vector<2x16x256xf32>
    %c0_41 = arith.constant 0 : index
    %c6_42 = arith.constant 6 : index
    %c0_43 = arith.constant 0 : index
    %46 = vector.load %arg1[%c0_41, %c6_42, %c0_43] : memref<3x7x256xf32, #tpu.memory_space<vmem>>, vector<1x1x256xf32>
    %47 = vector.shape_cast %46 : vector<1x1x256xf32> to vector<256xf32>
    %48 = vector.shape_cast %47 : vector<256xf32> to vector<1x1x256xf32>
    %49 = vector.broadcast %48 : vector<1x1x256xf32> to vector<2x16x256xf32>
    %50 = arith.mulf %45, %49 : vector<2x16x256xf32>
    %51 = arith.addf %44, %50 : vector<2x16x256xf32>
    %52 = vector.shape_cast %51 : vector<2x16x256xf32> to vector<32x256xf32>
    %c0_44 = arith.constant 0 : index
    %c0_45 = arith.constant 0 : index
    %c0_46 = arith.constant 0 : index
    %53 = vector.load %arg2[%c0_44, %c0_45, %c0_46] : memref<3x256x256xf32, #tpu.memory_space<vmem>>, vector<1x256x256xf32>
    %54 = vector.shape_cast %53 : vector<1x256x256xf32> to vector<256x256xf32>
    %cst_47 = arith.constant dense<0.000000e+00> : vector<32x256xf32>
    %55 = tpu.matmul %52, %54, %cst_47 {dimension_numbers = #tpu.dot_dimension_numbers<[1], [0], [0], [1], [0, 0, 1, 1], [], []>} : vector<32x256xf32>, vector<256x256xf32>, vector<32x256xf32> -> vector<32x256xf32>
    %c0_48 = arith.constant 0 : index
    %c0_49 = arith.constant 0 : index
    %c0_50 = arith.constant 0 : index
    %56 = vector.load %arg3[%c0_48, %c0_49, %c0_50] : memref<3x1x256xf32, #tpu.memory_space<vmem>>, vector<1x1x256xf32>
    %57 = vector.shape_cast %56 : vector<1x1x256xf32> to vector<256xf32>
    %58 = vector.shape_cast %57 : vector<256xf32> to vector<1x256xf32>
    %59 = vector.broadcast %58 : vector<1x256xf32> to vector<32x256xf32>
    %60 = arith.addf %55, %59 : vector<32x256xf32>
    %61 = vector.shape_cast %60 : vector<32x256xf32> to vector<2x16x256xf32>
    %c0_51 = arith.constant 0 : index
    %c0_52 = arith.constant 0 : index
    %c0_53 = arith.constant 0 : index
    %62 = vector.load %arg4[%c0_51, %c0_52, %c0_53] : memref<2x16x768xf32, #tpu.memory_space<vmem>>, vector<2x16x256xf32>
    tpu.vector_store %arg4[%c0_51, %c0_52, %c0_53], %61 {strides = array<i32>} : memref<2x16x768xf32, #tpu.memory_space<vmem>>, vector<2x16x256xf32>,
    %c0_54 = arith.constant 0 : index
    %c0_55 = arith.constant 0 : index
    %c0_56 = arith.constant 0 : index
    %63 = vector.load %arg5[%c0_54, %c0_55, %c0_56] : memref<2x22x256xf32, #tpu.memory_space<vmem>>, vector<2x16x256xf32>
    %c1_57 = arith.constant 1 : index
    %c0_58 = arith.constant 0 : index
    %c0_59 = arith.constant 0 : index
    %64 = vector.load %arg1[%c1_57, %c0_58, %c0_59] : memref<3x7x256xf32, #tpu.memory_space<vmem>>, vector<1x1x256xf32>
    %65 = vector.shape_cast %64 : vector<1x1x256xf32> to vector<256xf32>
    %66 = vector.shape_cast %65 : vector<256xf32> to vector<1x1x256xf32>
    %67 = vector.broadcast %66 : vector<1x1x256xf32> to vector<2x16x256xf32>
    %68 = arith.mulf %63, %67 : vector<2x16x256xf32>
    %c0_60 = arith.constant 0 : index
    %c1_61 = arith.constant 1 : index
    %c0_62 = arith.constant 0 : index
    %69 = vector.load %arg5[%c0_60, %c1_61, %c0_62] : memref<2x22x256xf32, #tpu.memory_space<vmem>>, vector<2x16x256xf32>
    %c1_63 = arith.constant 1 : index
    %c1_64 = arith.constant 1 : index
    %c0_65 = arith.constant 0 : index
    %70 = vector.load %arg1[%c1_63, %c1_64, %c0_65] : memref<3x7x256xf32, #tpu.memory_space<vmem>>, vector<1x1x256xf32>
    %71 = vector.shape_cast %70 : vector<1x1x256xf32> to vector<256xf32>
    %72 = vector.shape_cast %71 : vector<256xf32> to vector<1x1x256xf32>
    %73 = vector.broadcast %72 : vector<1x1x256xf32> to vector<2x16x256xf32>
    %74 = arith.mulf %69, %73 : vector<2x16x256xf32>
    %75 = arith.addf %68, %74 : vector<2x16x256xf32>
    %c0_66 = arith.constant 0 : index
    %c2_67 = arith.constant 2 : index
    %c0_68 = arith.constant 0 : index
    %76 = vector.load %arg5[%c0_66, %c2_67, %c0_68] : memref<2x22x256xf32, #tpu.memory_space<vmem>>, vector<2x16x256xf32>
    %c1_69 = arith.constant 1 : index
    %c2_70 = arith.constant 2 : index
    %c0_71 = arith.constant 0 : index
    %77 = vector.load %arg1[%c1_69, %c2_70, %c0_71] : memref<3x7x256xf32, #tpu.memory_space<vmem>>, vector<1x1x256xf32>
    %78 = vector.shape_cast %77 : vector<1x1x256xf32> to vector<256xf32>
    %79 = vector.shape_cast %78 : vector<256xf32> to vector<1x1x256xf32>
    %80 = vector.broadcast %79 : vector<1x1x256xf32> to vector<2x16x256xf32>
    %81 = arith.mulf %76, %80 : vector<2x16x256xf32>
    %82 = arith.addf %75, %81 : vector<2x16x256xf32>
    %c0_72 = arith.constant 0 : index
    %c3_73 = arith.constant 3 : index
    %c0_74 = arith.constant 0 : index
    %83 = vector.load %arg5[%c0_72, %c3_73, %c0_74] : memref<2x22x256xf32, #tpu.memory_space<vmem>>, vector<2x16x256xf32>
    %c1_75 = arith.constant 1 : index
    %c3_76 = arith.constant 3 : index
    %c0_77 = arith.constant 0 : index
    %84 = vector.load %arg1[%c1_75, %c3_76, %c0_77] : memref<3x7x256xf32, #tpu.memory_space<vmem>>, vector<1x1x256xf32>
    %85 = vector.shape_cast %84 : vector<1x1x256xf32> to vector<256xf32>
    %86 = vector.shape_cast %85 : vector<256xf32> to vector<1x1x256xf32>
    %87 = vector.broadcast %86 : vector<1x1x256xf32> to vector<2x16x256xf32>
    %88 = arith.mulf %83, %87 : vector<2x16x256xf32>
    %89 = arith.addf %82, %88 : vector<2x16x256xf32>
    %c0_78 = arith.constant 0 : index
    %c4_79 = arith.constant 4 : index
    %c0_80 = arith.constant 0 : index
    %90 = vector.load %arg5[%c0_78, %c4_79, %c0_80] : memref<2x22x256xf32, #tpu.memory_space<vmem>>, vector<2x16x256xf32>
    %c1_81 = arith.constant 1 : index
    %c4_82 = arith.constant 4 : index
    %c0_83 = arith.constant 0 : index
    %91 = vector.load %arg1[%c1_81, %c4_82, %c0_83] : memref<3x7x256xf32, #tpu.memory_space<vmem>>, vector<1x1x256xf32>
    %92 = vector.shape_cast %91 : vector<1x1x256xf32> to vector<256xf32>
    %93 = vector.shape_cast %92 : vector<256xf32> to vector<1x1x256xf32>
    %94 = vector.broadcast %93 : vector<1x1x256xf32> to vector<2x16x256xf32>
    %95 = arith.mulf %90, %94 : vector<2x16x256xf32>
    %96 = arith.addf %89, %95 : vector<2x16x256xf32>
    %c0_84 = arith.constant 0 : index
    %c5_85 = arith.constant 5 : index
    %c0_86 = arith.constant 0 : index
    %97 = vector.load %arg5[%c0_84, %c5_85, %c0_86] : memref<2x22x256xf32, #tpu.memory_space<vmem>>, vector<2x16x256xf32>
    %c1_87 = arith.constant 1 : index
    %c5_88 = arith.constant 5 : index
    %c0_89 = arith.constant 0 : index
    %98 = vector.load %arg1[%c1_87, %c5_88, %c0_89] : memref<3x7x256xf32, #tpu.memory_space<vmem>>, vector<1x1x256xf32>
    %99 = vector.shape_cast %98 : vector<1x1x256xf32> to vector<256xf32>
    %100 = vector.shape_cast %99 : vector<256xf32> to vector<1x1x256xf32>
    %101 = vector.broadcast %100 : vector<1x1x256xf32> to vector<2x16x256xf32>
    %102 = arith.mulf %97, %101 : vector<2x16x256xf32>
    %103 = arith.addf %96, %102 : vector<2x16x256xf32>
    %c0_90 = arith.constant 0 : index
    %c6_91 = arith.constant 6 : index
    %c0_92 = arith.constant 0 : index
    %104 = vector.load %arg5[%c0_90, %c6_91, %c0_92] : memref<2x22x256xf32, #tpu.memory_space<vmem>>, vector<2x16x256xf32>
    %c1_93 = arith.constant 1 : index
    %c6_94 = arith.constant 6 : index
    %c0_95 = arith.constant 0 : index
    %105 = vector.load %arg1[%c1_93, %c6_94, %c0_95] : memref<3x7x256xf32, #tpu.memory_space<vmem>>, vector<1x1x256xf32>
    %106 = vector.shape_cast %105 : vector<1x1x256xf32> to vector<256xf32>
    %107 = vector.shape_cast %106 : vector<256xf32> to vector<1x1x256xf32>
    %108 = vector.broadcast %107 : vector<1x1x256xf32> to vector<2x16x256xf32>
    %109 = arith.mulf %104, %108 : vector<2x16x256xf32>
    %110 = arith.addf %103, %109 : vector<2x16x256xf32>
    %111 = vector.shape_cast %110 : vector<2x16x256xf32> to vector<32x256xf32>
    %c1_96 = arith.constant 1 : index
    %c0_97 = arith.constant 0 : index
    %c0_98 = arith.constant 0 : index
    %112 = vector.load %arg2[%c1_96, %c0_97, %c0_98] : memref<3x256x256xf32, #tpu.memory_space<vmem>>, vector<1x256x256xf32>
    %113 = vector.shape_cast %112 : vector<1x256x256xf32> to vector<256x256xf32>
    %cst_99 = arith.constant dense<0.000000e+00> : vector<32x256xf32>
    %114 = tpu.matmul %111, %113, %cst_99 {dimension_numbers = #tpu.dot_dimension_numbers<[1], [0], [0], [1], [0, 0, 1, 1], [], []>} : vector<32x256xf32>, vector<256x256xf32>, vector<32x256xf32> -> vector<32x256xf32>
    %c1_100 = arith.constant 1 : index
    %c0_101 = arith.constant 0 : index
    %c0_102 = arith.constant 0 : index
    %115 = vector.load %arg3[%c1_100, %c0_101, %c0_102] : memref<3x1x256xf32, #tpu.memory_space<vmem>>, vector<1x1x256xf32>
    %116 = vector.shape_cast %115 : vector<1x1x256xf32> to vector<256xf32>
    %117 = vector.shape_cast %116 : vector<256xf32> to vector<1x256xf32>
    %118 = vector.broadcast %117 : vector<1x256xf32> to vector<32x256xf32>
    %119 = arith.addf %114, %118 : vector<32x256xf32>
    %120 = vector.shape_cast %119 : vector<32x256xf32> to vector<2x16x256xf32>
    %c0_103 = arith.constant 0 : index
    %c0_104 = arith.constant 0 : index
    %c256 = arith.constant 256 : index
    %121 = vector.load %arg4[%c0_103, %c0_104, %c256] : memref<2x16x768xf32, #tpu.memory_space<vmem>>, vector<2x16x256xf32>
    tpu.vector_store %arg4[%c0_103, %c0_104, %c256], %120 {strides = array<i32>} : memref<2x16x768xf32, #tpu.memory_space<vmem>>, vector<2x16x256xf32>,
    %c0_105 = arith.constant 0 : index
    %c0_106 = arith.constant 0 : index
    %c0_107 = arith.constant 0 : index
    %122 = vector.load %arg5[%c0_105, %c0_106, %c0_107] : memref<2x22x256xf32, #tpu.memory_space<vmem>>, vector<2x16x256xf32>
    %c2_108 = arith.constant 2 : index
    %c0_109 = arith.constant 0 : index
    %c0_110 = arith.constant 0 : index
    %123 = vector.load %arg1[%c2_108, %c0_109, %c0_110] : memref<3x7x256xf32, #tpu.memory_space<vmem>>, vector<1x1x256xf32>
    %124 = vector.shape_cast %123 : vector<1x1x256xf32> to vector<256xf32>
    %125 = vector.shape_cast %124 : vector<256xf32> to vector<1x1x256xf32>
    %126 = vector.broadcast %125 : vector<1x1x256xf32> to vector<2x16x256xf32>
    %127 = arith.mulf %122, %126 : vector<2x16x256xf32>
    %c0_111 = arith.constant 0 : index
    %c1_112 = arith.constant 1 : index
    %c0_113 = arith.constant 0 : index
    %128 = vector.load %arg5[%c0_111, %c1_112, %c0_113] : memref<2x22x256xf32, #tpu.memory_space<vmem>>, vector<2x16x256xf32>
    %c2_114 = arith.constant 2 : index
    %c1_115 = arith.constant 1 : index
    %c0_116 = arith.constant 0 : index
    %129 = vector.load %arg1[%c2_114, %c1_115, %c0_116] : memref<3x7x256xf32, #tpu.memory_space<vmem>>, vector<1x1x256xf32>
    %130 = vector.shape_cast %129 : vector<1x1x256xf32> to vector<256xf32>
    %131 = vector.shape_cast %130 : vector<256xf32> to vector<1x1x256xf32>
    %132 = vector.broadcast %131 : vector<1x1x256xf32> to vector<2x16x256xf32>
    %133 = arith.mulf %128, %132 : vector<2x16x256xf32>
    %134 = arith.addf %127, %133 : vector<2x16x256xf32>
    %c0_117 = arith.constant 0 : index
    %c2_118 = arith.constant 2 : index
    %c0_119 = arith.constant 0 : index
    %135 = vector.load %arg5[%c0_117, %c2_118, %c0_119] : memref<2x22x256xf32, #tpu.memory_space<vmem>>, vector<2x16x256xf32>
    %c2_120 = arith.constant 2 : index
    %c2_121 = arith.constant 2 : index
    %c0_122 = arith.constant 0 : index
    %136 = vector.load %arg1[%c2_120, %c2_121, %c0_122] : memref<3x7x256xf32, #tpu.memory_space<vmem>>, vector<1x1x256xf32>
    %137 = vector.shape_cast %136 : vector<1x1x256xf32> to vector<256xf32>
    %138 = vector.shape_cast %137 : vector<256xf32> to vector<1x1x256xf32>
    %139 = vector.broadcast %138 : vector<1x1x256xf32> to vector<2x16x256xf32>
    %140 = arith.mulf %135, %139 : vector<2x16x256xf32>
    %141 = arith.addf %134, %140 : vector<2x16x256xf32>
    %c0_123 = arith.constant 0 : index
    %c3_124 = arith.constant 3 : index
    %c0_125 = arith.constant 0 : index
    %142 = vector.load %arg5[%c0_123, %c3_124, %c0_125] : memref<2x22x256xf32, #tpu.memory_space<vmem>>, vector<2x16x256xf32>
    %c2_126 = arith.constant 2 : index
    %c3_127 = arith.constant 3 : index
    %c0_128 = arith.constant 0 : index
    %143 = vector.load %arg1[%c2_126, %c3_127, %c0_128] : memref<3x7x256xf32, #tpu.memory_space<vmem>>, vector<1x1x256xf32>
    %144 = vector.shape_cast %143 : vector<1x1x256xf32> to vector<256xf32>
    %145 = vector.shape_cast %144 : vector<256xf32> to vector<1x1x256xf32>
    %146 = vector.broadcast %145 : vector<1x1x256xf32> to vector<2x16x256xf32>
    %147 = arith.mulf %142, %146 : vector<2x16x256xf32>
    %148 = arith.addf %141, %147 : vector<2x16x256xf32>
    %c0_129 = arith.constant 0 : index
    %c4_130 = arith.constant 4 : index
    %c0_131 = arith.constant 0 : index
    %149 = vector.load %arg5[%c0_129, %c4_130, %c0_131] : memref<2x22x256xf32, #tpu.memory_space<vmem>>, vector<2x16x256xf32>
    %c2_132 = arith.constant 2 : index
    %c4_133 = arith.constant 4 : index
    %c0_134 = arith.constant 0 : index
    %150 = vector.load %arg1[%c2_132, %c4_133, %c0_134] : memref<3x7x256xf32, #tpu.memory_space<vmem>>, vector<1x1x256xf32>
    %151 = vector.shape_cast %150 : vector<1x1x256xf32> to vector<256xf32>
    %152 = vector.shape_cast %151 : vector<256xf32> to vector<1x1x256xf32>
    %153 = vector.broadcast %152 : vector<1x1x256xf32> to vector<2x16x256xf32>
    %154 = arith.mulf %149, %153 : vector<2x16x256xf32>
    %155 = arith.addf %148, %154 : vector<2x16x256xf32>
    %c0_135 = arith.constant 0 : index
    %c5_136 = arith.constant 5 : index
    %c0_137 = arith.constant 0 : index
    %156 = vector.load %arg5[%c0_135, %c5_136, %c0_137] : memref<2x22x256xf32, #tpu.memory_space<vmem>>, vector<2x16x256xf32>
    %c2_138 = arith.constant 2 : index
    %c5_139 = arith.constant 5 : index
    %c0_140 = arith.constant 0 : index
    %157 = vector.load %arg1[%c2_138, %c5_139, %c0_140] : memref<3x7x256xf32, #tpu.memory_space<vmem>>, vector<1x1x256xf32>
    %158 = vector.shape_cast %157 : vector<1x1x256xf32> to vector<256xf32>
    %159 = vector.shape_cast %158 : vector<256xf32> to vector<1x1x256xf32>
    %160 = vector.broadcast %159 : vector<1x1x256xf32> to vector<2x16x256xf32>
    %161 = arith.mulf %156, %160 : vector<2x16x256xf32>
    %162 = arith.addf %155, %161 : vector<2x16x256xf32>
    %c0_141 = arith.constant 0 : index
    %c6_142 = arith.constant 6 : index
    %c0_143 = arith.constant 0 : index
    %163 = vector.load %arg5[%c0_141, %c6_142, %c0_143] : memref<2x22x256xf32, #tpu.memory_space<vmem>>, vector<2x16x256xf32>
    %c2_144 = arith.constant 2 : index
    %c6_145 = arith.constant 6 : index
    %c0_146 = arith.constant 0 : index
    %164 = vector.load %arg1[%c2_144, %c6_145, %c0_146] : memref<3x7x256xf32, #tpu.memory_space<vmem>>, vector<1x1x256xf32>
    %165 = vector.shape_cast %164 : vector<1x1x256xf32> to vector<256xf32>
    %166 = vector.shape_cast %165 : vector<256xf32> to vector<1x1x256xf32>
    %167 = vector.broadcast %166 : vector<1x1x256xf32> to vector<2x16x256xf32>
    %168 = arith.mulf %163, %167 : vector<2x16x256xf32>
    %169 = arith.addf %162, %168 : vector<2x16x256xf32>
    %170 = vector.shape_cast %169 : vector<2x16x256xf32> to vector<32x256xf32>
    %c2_147 = arith.constant 2 : index
    %c0_148 = arith.constant 0 : index
    %c0_149 = arith.constant 0 : index
    %171 = vector.load %arg2[%c2_147, %c0_148, %c0_149] : memref<3x256x256xf32, #tpu.memory_space<vmem>>, vector<1x256x256xf32>
    %172 = vector.shape_cast %171 : vector<1x256x256xf32> to vector<256x256xf32>
    %cst_150 = arith.constant dense<0.000000e+00> : vector<32x256xf32>
    %173 = tpu.matmul %170, %172, %cst_150 {dimension_numbers = #tpu.dot_dimension_numbers<[1], [0], [0], [1], [0, 0, 1, 1], [], []>} : vector<32x256xf32>, vector<256x256xf32>, vector<32x256xf32> -> vector<32x256xf32>
    %c2_151 = arith.constant 2 : index
    %c0_152 = arith.constant 0 : index
    %c0_153 = arith.constant 0 : index
    %174 = vector.load %arg3[%c2_151, %c0_152, %c0_153] : memref<3x1x256xf32, #tpu.memory_space<vmem>>, vector<1x1x256xf32>
    %175 = vector.shape_cast %174 : vector<1x1x256xf32> to vector<256xf32>
    %176 = vector.shape_cast %175 : vector<256xf32> to vector<1x256xf32>
    %177 = vector.broadcast %176 : vector<1x256xf32> to vector<32x256xf32>
    %178 = arith.addf %173, %177 : vector<32x256xf32>
    %179 = vector.shape_cast %178 : vector<32x256xf32> to vector<2x16x256xf32>
    %c0_154 = arith.constant 0 : index
    %c0_155 = arith.constant 0 : index
    %c512 = arith.constant 512 : index
    %180 = vector.load %arg4[%c0_154, %c0_155, %c512] : memref<2x16x768xf32, #tpu.memory_space<vmem>>, vector<2x16x256xf32>
    tpu.vector_store %arg4[%c0_154, %c0_155, %c512], %179 {strides = array<i32>} : memref<2x16x768xf32, #tpu.memory_space<vmem>>, vector<2x16x256xf32>,
    return
  }
}

</mosaic_0001>

<bundles_post_ra>
// kernel: time_conv.1
= control target key start
LH: loop header
LB: loop body
LE: loop exit
PB: predicated region body
PF: predicated region fallthrough
CT: control target
= control target key end

     0   :  { %9 = vsyncpa [#allocation4], 0  ;;  %s4157_s0 = inlined_call_operand.hbm [shape: f32[2,16,256], index: 0, kind: input, shape index: {}]   ;;  %s4158_s1 = inlined_call_operand.hbm [shape: f32[3,7,256], index: 1, kind: input, shape index: {}]   ;;  %s4159_s2 = inlined_call_operand.hbm [shape: f32[3,256,256], index: 2, kind: input, shape index: {}]   ;;  %s4160_s3 = inlined_call_operand.vmem [shape: f32[3,1,256], index: 3, kind: input, shape index: {}]   ;;  %s4161_s4 = inlined_call_operand.hbm [shape: f32[2,16,768], index: 4, kind: output, shape index: {}]  }
   0x1   :  { %10 = vsyncpa [#allocation7], 0 }
   0x2   :  { %11 = vsyncpa [#allocation5], 0  ;;  %s2557_s15 = smov [#allocation6]   ;;  %s2558_s17 = smov [#allocation3]  }
   0x3   :  { %s29_s16 = sshll.u32 %s2557_s15, 4  ;;  %s17_s18 = sshll.u32 %s2558_s17, 4  ;;  %s30_s16 = int_to_ptr.vmem [resolvable:$true] %s29_s16  ;;  %s2591_s18 = int_to_ptr.vmem [resolvable:$true] %s17_s18 }
   0x4   :  { %s2463_s21 = scalar_lea.hbm %s4158_s1, 768 }
   0x5   :  { %p2464_p0 = scmp.ne.s32.totalorder %s4158_s1, %s2463_s21  ;;  %p2467_p1 = scmp.lt.u32.totalorder %s2463_s21, %s4158_s1 }
   0x7   :  { %p2469_p2 = pnand %p2467_p1, %p2464_p0 }
   0x9   :  { %2472 = shalt.err (!%p2469_p2)
}
   0xa   :  { %s2473_s26 = scalar_lea.vmem %s30_s16, 768  ;;  %p2478_p4 = scmp.lt.s32.totalorder %s30_s16, %s30_s16 }
   0xb   :  { %p2474_p3 = scmp.ne.s32.totalorder %s30_s16, %s2473_s26  ;;  %p2479_p5 = scmp.lt.s32.totalorder %s2473_s26, %s2473_s26 }
   0xd   :  { %p2480_p6 = por %p2479_p5, %p2478_p4 }
   0xf   :  { %p2481_p7 = pnand %p2480_p6, %p2474_p3 }
  0x11   :  { %2484 = shalt.err (!%p2481_p7)
}
  0x12   :  { %s2559_s27 = smov 256   ;;  %s2560_s28 = smov 16  }
  0x13   :  { %35 = dma.hbm_to_vmem [thread:$0]  %s4158_s1, 768, %s30_s16, [#allocation7], %s2559_s27, %s2559_s27, %s2560_s28  }
  0x14   :  { %s2485_s7 = scalar_lea.hbm %s4157_s0, 1024 }
  0x15   :  { %p2486_p8 = scmp.ne.s32.totalorder %s4157_s0, %s2485_s7  ;;  %p2489_p9 = scmp.lt.u32.totalorder %s2485_s7, %s4157_s0 }
  0x17   :  { %p2491_p10 = pnand %p2489_p9, %p2486_p8 }
  0x19   :  { %2494 = shalt.err (!%p2491_p10)
}
  0x1a   :  { %s2495_s12 = scalar_lea.vmem %s2591_s18, 1024  ;;  %p2500_p12 = scmp.lt.s32.totalorder %s2591_s18, %s2591_s18 }
  0x1b   :  { %p2496_p11 = scmp.ne.s32.totalorder %s2591_s18, %s2495_s12  ;;  %p2501_p13 = scmp.lt.s32.totalorder %s2495_s12, %s2495_s12 }
  0x1d   :  { %p2502_p0 = por %p2501_p13, %p2500_p12 }
  0x1f   :  { %p2503_p1 = pnand %p2502_p0, %p2496_p11 }
  0x21   :  { %2506 = shalt.err (!%p2503_p1)
}
  0x22   :  { %23 = dma.hbm_to_vmem [thread:$0]  %s4157_s0, 1024, %s2591_s18, [#allocation4], %s2559_s27, %s2559_s27, %s2560_s28  }
  0x23   :  { %s2561_s14 = smov [#allocation8]   ;;  %s2507_s19 = scalar_lea.hbm %s4159_s2, 24576 }
  0x24   :  { %s41_s15 = sshll.u32 %s2561_s14, 4  ;;  %p2508_p2 = scmp.ne.s32.totalorder %s4159_s2, %s2507_s19  ;;  %s42_s15 = int_to_ptr.vmem [resolvable:$true] %s41_s15 }
  0x25   :  { %p2511_p3 = scmp.lt.u32.totalorder %s2507_s19, %s4159_s2 }
  0x27   :  { %p2513_p4 = pnand %p2511_p3, %p2508_p2 }
  0x29   :  { %2516 = shalt.err (!%p2513_p4)
}
  0x2a   :  { %s2517_s24 = scalar_lea.vmem %s42_s15, 24576  ;;  %p2522_p6 = scmp.lt.s32.totalorder %s42_s15, %s42_s15 }
  0x2b   :  { %p2518_p5 = scmp.ne.s32.totalorder %s42_s15, %s2517_s24  ;;  %p2523_p7 = scmp.lt.s32.totalorder %s2517_s24, %s2517_s24 }
  0x2d   :  { %p2524_p8 = por %p2523_p7, %p2522_p6 }
  0x2f   :  { %p2525_p9 = pnand %p2524_p8, %p2518_p5 }
  0x31   :  { %2528 = shalt.err (!%p2525_p9)
}
  0x32   :  { %47 = dma.hbm_to_vmem [thread:$0]  %s4159_s2, 24576, %s42_s15, [#allocation7], %s2559_s27, %s2559_s27, %s2560_s28  }
  0x33   :  { %2551 = dma.done.wait [#allocation4], 1024  }
  0x34   :  { %2552 = vsyncadd [#allocation4], 4294966272 }
  0x35   :  { %2553 = dma.done.wait [#allocation7], 25344  }
  0x36   :  { %2554 = vsyncadd [#allocation7], 4294941952  ;;  %v2562_v0 = vmov 0.0   ;;  %v644_v1 = vld [vmem:[#allocation8 + $0x8] sm:$0xff]  ;;  %v646_v2 = vld [vmem:[#allocation8 + $0x18] sm:$0xff]  ;;  %vm87_vm0 = vcmask 1042432  }
  0x37   :  { %60 = vst [vmem:[#allocation2 + $0x8] sm:$0xff] %v2562_v0  ;;  %59 = vst [vmem:[#allocation2] sm:$0xff] %v2562_v0  ;;  %v1333_v3 = vld [vmem:[#allocation8 + $0x208] sm:$0xff]  ;;  %v2228_v4 = vpack.c.bf16 %v646_v2, %v644_v1  ;;  %v1335_v5 = vld [vmem:[#allocation8 + $0x218] sm:$0xff]  ;;  %vm197_vm1 = vcmask 1046528   ;;  %vm279_vm2 = vcmask 1045504  }
  0x38   :  { %63 = vst [vmem:[#allocation2 + $0x20] sm:$0x3f] %v2562_v0  ;;  %64 = vst [vmem:[#allocation2 + $0x28] sm:$0x3f] %v2562_v0  ;;  %v643_v6 = vld [vmem:[#allocation8] sm:$0xff]  ;;  %v645_v7 = vld [vmem:[#allocation8 + $0x10] sm:$0xff]  ;;  %v2292_v8 = vpack.c.bf16 %v1335_v5, %v1333_v3 }
  0x39   :  { %65 = vst [vmem:[#allocation2 + $0x30] sm:$0xff] %v2562_v0  ;;  %66 = vst [vmem:[#allocation2 + $0x38] sm:$0xff] %v2562_v0  ;;  %v2230_v9 = vpack.c.bf16 %v645_v7, %v643_v6  ;;  %v1332_v10 = vld [vmem:[#allocation8 + $0x200] sm:$0xff]  ;;  %v1334_v11 = vld [vmem:[#allocation8 + $0x210] sm:$0xff]  ;;  %2229 = vmatprep.subr.bf16.mxu0 %v2228_v4  ;;  %vm361_vm3 = vcmask 1044480   ;;  %vm443_vm4 = vcmask 1043456  }
  0x3a   :  { %69 = vst [vmem:[#allocation2 + $0x50] sm:$0x3f] %v2562_v0  ;;  %70 = vst [vmem:[#allocation2 + $0x58] sm:$0x3f] %v2562_v0  ;;  %v648_v12 = vld [vmem:[#allocation8 + $0x28] sm:$0xff]  ;;  %v2294_v13 = vpack.c.bf16 %v1334_v11, %v1332_v10  ;;  %v650_v14 = vld [vmem:[#allocation8 + $0x38] sm:$0xff]  ;;  %2293 = vmatprep.subr.bf16.mxu1 %v2292_v8 }
  0x3b   :  { %v1337_v15 = vld [vmem:[#allocation8 + $0x228] sm:$0xff]  ;;  %v1339_v16 = vld [vmem:[#allocation8 + $0x238] sm:$0xff]  ;;  %2231 = vmatpush1.bf16.msra.mxu0 %v2230_v9  ;;  %v2232_v17 = vpack.c.bf16 %v650_v14, %v648_v12  ;;  %v647_v19 = vld [vmem:[#allocation8 + $0x20] sm:$0xff]  ;;  %vm606_vm5 = vcmask 1041408  }
  0x3c   :  { %v2296_v18 = vpack.c.bf16 %v1339_v16, %v1337_v15  ;;  %v649_v20 = vld [vmem:[#allocation8 + $0x30] sm:$0xff]  ;;  %v1336_v21 = vld [vmem:[#allocation8 + $0x220] sm:$0xff]  ;;  %2295 = vmatpush1.bf16.msra.mxu1 %v2294_v13  ;;  %v652_v24 = vld [vmem:[#allocation8 + $0x48] sm:$0xff] }
  0x3d   :  { %v2234_v22 = vpack.c.bf16 %v649_v20, %v647_v19  ;;  %v1338_v23 = vld [vmem:[#allocation8 + $0x230] sm:$0xff]  ;;  %v654_v25 = vld [vmem:[#allocation8 + $0x58] sm:$0xff]  ;;  %2233 = vmatprep.subr.bf16.mxu0 %v2232_v17  ;;  %v1341_v28 = vld [vmem:[#allocation8 + $0x248] sm:$0xff] }
  0x3e   :  { %2297 = vmatprep.subr.bf16.mxu1 %v2296_v18  ;;  %v2298_v26 = vpack.c.bf16 %v1338_v23, %v1336_v21  ;;  %v2236_v27 = vpack.c.bf16 %v654_v25, %v652_v24  ;;  %v1343_v29 = vld [vmem:[#allocation8 + $0x258] sm:$0xff]  ;;  %v651_v30 = vld [vmem:[#allocation8 + $0x40] sm:$0xff]  ;;  %v653_v32 = vld [vmem:[#allocation8 + $0x50] sm:$0xff] }
  0x3f   :  { %v2300_v31 = vpack.c.bf16 %v1343_v29, %v1341_v28  ;;  %v1340_v33 = vld [vmem:[#allocation8 + $0x240] sm:$0xff]  ;;  %v1342_v34 = vld [vmem:[#allocation8 + $0x250] sm:$0xff]  ;;  %2235 = vmatpush1.bf16.msra.mxu0 %v2234_v22  ;;  %v2238_v35 = vpack.c.bf16 %v653_v32, %v651_v30  ;;  %v656_v36 = vld [vmem:[#allocation8 + $0x68] sm:$0xff] }
  0x40   :  { %v658_v37 = vld [vmem:[#allocation8 + $0x78] sm:$0xff]  ;;  %v1345_v38 = vld [vmem:[#allocation8 + $0x268] sm:$0xff]  ;;  %2299 = vmatpush1.bf16.msra.mxu1 %v2298_v26  ;;  %2237 = vmatprep.subr.bf16.mxu0 %v2236_v27  ;;  %v2302_v39 = vpack.c.bf16 %v1342_v34, %v1340_v33  ;;  %v655_v42 = vld [vmem:[#allocation8 + $0x60] sm:$0xff] }
  0x41   :  { %v2240_v40 = vpack.c.bf16 %v658_v37, %v656_v36  ;;  %v1347_v41 = vld [vmem:[#allocation8 + $0x278] sm:$0xff]  ;;  %v657_v43 = vld [vmem:[#allocation8 + $0x70] sm:$0xff]  ;;  %2301 = vmatprep.subr.bf16.mxu1 %v2300_v31  ;;  %v1344_v45 = vld [vmem:[#allocation8 + $0x260] sm:$0xff] }
  0x42   :  { %v2304_v44 = vpack.c.bf16 %v1347_v41, %v1345_v38  ;;  %v1346_v46 = vld [vmem:[#allocation8 + $0x270] sm:$0xff]  ;;  %v660_v47 = vld [vmem:[#allocation8 + $0x88] sm:$0xff]  ;;  %v662_v48 = vld [vmem:[#allocation8 + $0x98] sm:$0xff]  ;;  %v2242_v51 = vpack.c.bf16 %v657_v43, %v655_v42  ;;  %v134_v42 = vlaneseq }
  0x43   :  { %v1349_v49 = vld [vmem:[#allocation8 + $0x288] sm:$0xff]  ;;  %v1351_v50 = vld [vmem:[#allocation8 + $0x298] sm:$0xff]  ;;  %2239 = vmatpush1.bf16.msra.mxu0 %v2238_v35  ;;  %v2306_v52 = vpack.c.bf16 %v1346_v46, %v1344_v45  ;;  %v2244_v53 = vpack.c.bf16 %v662_v48, %v660_v47  ;;  %v659_v54 = vld [vmem:[#allocation8 + $0x80] sm:$0xff] }
  0x44   :  { %2303 = vmatpush1.bf16.msra.mxu1 %v2302_v39  ;;  %2241 = vmatprep.subr.bf16.mxu0 %v2240_v40  ;;  %v661_v55 = vld [vmem:[#allocation8 + $0x90] sm:$0xff]  ;;  %v1348_v56 = vld [vmem:[#allocation8 + $0x280] sm:$0xff]  ;;  %v2308_v57 = vpack.c.bf16 %v1351_v50, %v1349_v49  ;;  %v664_v59 = vld [vmem:[#allocation8 + $0xa8] sm:$0xff] }
  0x45   :  { %2305 = vmatprep.subr.bf16.mxu1 %v2304_v44  ;;  %v1350_v58 = vld [vmem:[#allocation8 + $0x290] sm:$0xff]  ;;  %v666_v60 = vld [vmem:[#allocation8 + $0xb8] sm:$0xff]  ;;  %v1353_v61 = vld [vmem:[#allocation8 + $0x2a8] sm:$0xff]  ;;  %v2246_v63 = vpack.c.bf16 %v661_v55, %v659_v54 }
  0x46   :  { %v1355_v62 = vld [vmem:[#allocation8 + $0x2b8] sm:$0xff]  ;;  %v2310_v0 = vpack.c.bf16 %v1350_v58, %v1348_v56  ;;  %v2248_v1 = vpack.c.bf16 %v666_v60, %v664_v59  ;;  %v663_v2 = vld [vmem:[#allocation8 + $0xa0] sm:$0xff]  ;;  %v665_v3 = vld [vmem:[#allocation8 + $0xb0] sm:$0xff] }
  0x47   :  { %2243 = vmatpush1.bf16.msra.mxu0 %v2242_v51  ;;  %v1352_v4 = vld [vmem:[#allocation8 + $0x2a0] sm:$0xff]  ;;  %v2312_v5 = vpack.c.bf16 %v1355_v62, %v1353_v61  ;;  %v1354_v6 = vld [vmem:[#allocation8 + $0x2b0] sm:$0xff]  ;;  %v668_v7 = vld [vmem:[#allocation8 + $0xc8] sm:$0xff]  ;;  %v2250_v11 = vpack.c.bf16 %v665_v3, %v663_v2 }
  0x48   :  { %2307 = vmatpush1.bf16.msra.mxu1 %v2306_v52  ;;  %2245 = vmatprep.subr.bf16.mxu0 %v2244_v53  ;;  %v670_v8 = vld [vmem:[#allocation8 + $0xd8] sm:$0xff]  ;;  %v1357_v9 = vld [vmem:[#allocation8 + $0x2c8] sm:$0xff]  ;;  %v2314_v12 = vpack.c.bf16 %v1354_v6, %v1352_v4  ;;  %v667_v14 = vld [vmem:[#allocation8 + $0xc0] sm:$0xff] }
  0x49   :  { %2309 = vmatprep.subr.bf16.mxu1 %v2308_v57  ;;  %v1359_v10 = vld [vmem:[#allocation8 + $0x2d8] sm:$0xff]  ;;  %v2252_v13 = vpack.c.bf16 %v670_v8, %v668_v7  ;;  %v669_v15 = vld [vmem:[#allocation8 + $0xd0] sm:$0xff]  ;;  %v1356_v16 = vld [vmem:[#allocation8 + $0x2c0] sm:$0xff] }
  0x4a   :  { %v2316_v17 = vpack.c.bf16 %v1359_v10, %v1357_v9  ;;  %v1358_v18 = vld [vmem:[#allocation8 + $0x2d0] sm:$0xff]  ;;  %v672_v19 = vld [vmem:[#allocation8 + $0xe8] sm:$0xff]  ;;  %v674_v20 = vld [vmem:[#allocation8 + $0xf8] sm:$0xff]  ;;  %v2254_v23 = vpack.c.bf16 %v669_v15, %v667_v14 }
  0x4b   :  { %2247 = vmatpush1.bf16.msra.mxu0 %v2246_v63  ;;  %v1361_v21 = vld [vmem:[#allocation8 + $0x2e8] sm:$0xff]  ;;  %v1363_v22 = vld [vmem:[#allocation8 + $0x2f8] sm:$0xff]  ;;  %v2318_v24 = vpack.c.bf16 %v1358_v18, %v1356_v16  ;;  %v2256_v25 = vpack.c.bf16 %v674_v20, %v672_v19  ;;  %v671_v26 = vld [vmem:[#allocation8 + $0xe0] sm:$0xff] }
  0x4c   :  { %2311 = vmatpush1.bf16.msra.mxu1 %v2310_v0  ;;  %2249 = vmatprep.subr.bf16.mxu0 %v2248_v1  ;;  %v673_v27 = vld [vmem:[#allocation8 + $0xf0] sm:$0xff]  ;;  %v1360_v28 = vld [vmem:[#allocation8 + $0x2e0] sm:$0xff]  ;;  %v2320_v29 = vpack.c.bf16 %v1363_v22, %v1361_v21  ;;  %v676_v31 = vld [vmem:[#allocation8 + $0x108] sm:$0xff]  ;;  %v2671_v1 = vshrl.u32 %v134_v42, 7 }
  0x4d   :  { %2313 = vmatprep.subr.bf16.mxu1 %v2312_v5  ;;  %v1362_v30 = vld [vmem:[#allocation8 + $0x2f0] sm:$0xff]  ;;  %v678_v32 = vld [vmem:[#allocation8 + $0x118] sm:$0xff]  ;;  %v1365_v33 = vld [vmem:[#allocation8 + $0x308] sm:$0xff]  ;;  %v2258_v35 = vpack.c.bf16 %v673_v27, %v671_v26 }
  0x4e   :  { %v1367_v34 = vld [vmem:[#allocation8 + $0x318] sm:$0xff]  ;;  %v675_v36 = vld [vmem:[#allocation8 + $0x100] sm:$0xff]  ;;  %v2322_v37 = vpack.c.bf16 %v1362_v30, %v1360_v28  ;;  %v2260_v38 = vpack.c.bf16 %v678_v32, %v676_v31  ;;  %v677_v39 = vld [vmem:[#allocation8 + $0x110] sm:$0xff]  ;;  %v2728_v30 = vsub.s32 0, %v2671_v1 }
  0x4f   :  { %2251 = vmatpush1.bf16.msra.mxu0 %v2250_v11  ;;  %v1364_v40 = vld [vmem:[#allocation8 + $0x300] sm:$0xff]  ;;  %v1366_v41 = vld [vmem:[#allocation8 + $0x310] sm:$0xff]  ;;  %v2324_v43 = vpack.c.bf16 %v1367_v34, %v1365_v33  ;;  %v680_v44 = vld [vmem:[#allocation8 + $0x128] sm:$0xff]  ;;  %v2262_v50 = vpack.c.bf16 %v677_v39, %v675_v36 }
  0x50   :  { %2315 = vmatpush1.bf16.msra.mxu1 %v2314_v12  ;;  %2253 = vmatprep.subr.bf16.mxu0 %v2252_v13  ;;  %v682_v45 = vld [vmem:[#allocation8 + $0x138] sm:$0xff]  ;;  %v1369_v46 = vld [vmem:[#allocation8 + $0x328] sm:$0xff]  ;;  %v2643_v48 = vld [vmem:[#allocation8 + $0x120] sm:$0xff]  ;;  %v2326_v55 = vpack.c.bf16 %v1366_v41, %v1364_v40  ;;  %4309 = vst [vmem:[#allocation13_spill] sm:$0xff] %v2728_v30 }
  0x51   :  { %2317 = vmatprep.subr.bf16.mxu1 %v2316_v17  ;;  %v1371_v47 = vld [vmem:[#allocation8 + $0x338] sm:$0xff]  ;;  %v2645_v49 = vld [vmem:[#allocation8 + $0x130] sm:$0xff]  ;;  %v2647_v51 = vld [vmem:[#allocation8 + $0x320] sm:$0xff]  ;;  %v2264_v56 = vpack.c.bf16 %v682_v45, %v680_v44 }
  0x52   :  { %v2649_v52 = vld [vmem:[#allocation8 + $0x330] sm:$0xff]  ;;  %v2651_v53 = vld [vmem:[#allocation8 + $0x148] sm:$0xff]  ;;  %v2653_v54 = vld [vmem:[#allocation8 + $0x158] sm:$0xff]  ;;  %v2328_v2 = vpack.c.bf16 %v1371_v47, %v1369_v46  ;;  %v2266_v19 = vpack.c.bf16 %v2645_v49, %v2643_v48 }
  0x53   :  { %2255 = vmatpush1.bf16.msra.mxu0 %v2254_v23  ;;  %v2655_v57 = vld [vmem:[#allocation8 + $0x348] sm:$0xff]  ;;  %v2657_v58 = vld [vmem:[#allocation8 + $0x358] sm:$0xff]  ;;  %v2659_v59 = vld [vmem:[#allocation8 + $0x140] sm:$0xff]  ;;  %v2268_v26 = vpack.c.bf16 %v2653_v54, %v2651_v53 }
  0x54   :  { %2319 = vmatpush1.bf16.msra.mxu1 %v2318_v24  ;;  %2257 = vmatprep.subr.bf16.mxu0 %v2256_v25  ;;  %v2661_v60 = vld [vmem:[#allocation8 + $0x150] sm:$0xff]  ;;  %v2663_v61 = vld [vmem:[#allocation8 + $0x340] sm:$0xff]  ;;  %v2667_v63 = vld [vmem:[#allocation8 + $0x168] sm:$0xff]  ;;  %v2330_v25 = vpack.c.bf16 %v2649_v52, %v2647_v51  ;;  %v2332_v31 = vpack.c.bf16 %v2657_v58, %v2655_v57  ;;  %v2785_v58 = vsub.s32 1, %v2671_v1 }
  0x55   :  { %2321 = vmatprep.subr.bf16.mxu1 %v2320_v29  ;;  %v2665_v62 = vld [vmem:[#allocation8 + $0x350] sm:$0xff]  ;;  %v2669_v0 = vld [vmem:[#allocation8 + $0x178] sm:$0xff]  ;;  %v2673_v3 = vld [vmem:[#allocation8 + $0x368] sm:$0xff]  ;;  %v2270_v32 = vpack.c.bf16 %v2661_v60, %v2659_v59 }
  0x56   :  { %v2675_v4 = vld [vmem:[#allocation8 + $0x378] sm:$0xff]  ;;  %v2677_v5 = vld [vmem:[#allocation8 + $0x160] sm:$0xff]  ;;  %v2679_v6 = vld [vmem:[#allocation8 + $0x170] sm:$0xff]  ;;  %v2334_v33 = vpack.c.bf16 %v2665_v62, %v2663_v61  ;;  %v2272_v34 = vpack.c.bf16 %v2669_v0, %v2667_v63  ;;  %4310 = vst [vmem:[#allocation14_spill] sm:$0xff] %v2785_v58 }
  0x57   :  { %2259 = vmatpush1.bf16.msra.mxu0 %v2258_v35  ;;  %v2681_v7 = vld [vmem:[#allocation8 + $0x360] sm:$0xff]  ;;  %v2683_v8 = vld [vmem:[#allocation8 + $0x370] sm:$0xff]  ;;  %v2685_v9 = vld [vmem:[#allocation8 + $0x188] sm:$0xff]  ;;  %v2274_v39 = vpack.c.bf16 %v2679_v6, %v2677_v5 }
  0x58   :  { %2323 = vmatpush1.bf16.msra.mxu1 %v2322_v37  ;;  %2261 = vmatprep.subr.bf16.mxu0 %v2260_v38  ;;  %v2687_v10 = vld [vmem:[#allocation8 + $0x198] sm:$0xff]  ;;  %v2689_v11 = vld [vmem:[#allocation8 + $0x388] sm:$0xff]  ;;  %v2693_v13 = vld [vmem:[#allocation8 + $0x180] sm:$0xff]  ;;  %v2336_v38 = vpack.c.bf16 %v2675_v4, %v2673_v3  ;;  %v2338_v40 = vpack.c.bf16 %v2683_v8, %v2681_v7 }
  0x59   :  { %2325 = vmatprep.subr.bf16.mxu1 %v2324_v43  ;;  %v2691_v12 = vld [vmem:[#allocation8 + $0x398] sm:$0xff]  ;;  %v2695_v14 = vld [vmem:[#allocation8 + $0x190] sm:$0xff]  ;;  %v2697_v15 = vld [vmem:[#allocation8 + $0x380] sm:$0xff]  ;;  %v2276_v41 = vpack.c.bf16 %v2687_v10, %v2685_v9 }
  0x5a   :  { %v2699_v16 = vld [vmem:[#allocation8 + $0x390] sm:$0xff]  ;;  %v2701_v17 = vld [vmem:[#allocation8 + $0x1a8] sm:$0xff]  ;;  %v2703_v18 = vld [vmem:[#allocation8 + $0x1b8] sm:$0xff]  ;;  %v2340_v45 = vpack.c.bf16 %v2691_v12, %v2689_v11 }
  0x5b   :  { %2263 = vmatpush1.bf16.msra.mxu0 %v2262_v50  ;;  %v2707_v20 = vld [vmem:[#allocation8 + $0x3a8] sm:$0xff]  ;;  %v2709_v21 = vld [vmem:[#allocation8 + $0x3b8] sm:$0xff]  ;;  %v2711_v22 = vld [vmem:[#allocation8 + $0x1a0] sm:$0xff] }
  0x5c   :  { %v2713_v23 = vld [vmem:[#allocation8 + $0x1b0] sm:$0xff]  ;;  %v2715_v24 = vld [vmem:[#allocation8 + $0x3a0] sm:$0xff]  ;;  %2327 = vmatpush1.bf16.msra.mxu1 %v2326_v55  ;;  %2265 = vmatprep.subr.bf16.mxu0 %v2264_v56  ;;  %v2723_v28 = vld [vmem:[#allocation8 + $0x1c8] sm:$0xff] }
  0x5d   :  { %v2721_v27 = vld [vmem:[#allocation8 + $0x3b0] sm:$0xff]  ;;  %v2725_v29 = vld [vmem:[#allocation8 + $0x1d8] sm:$0xff]  ;;  %2329 = vmatprep.subr.bf16.mxu1 %v2328_v2  ;;  %v2738_v35 = vld [vmem:[#allocation8 + $0x3c8] sm:$0xff] }
  0x5e   :  { %v2740_v36 = vld [vmem:[#allocation8 + $0x3d8] sm:$0xff]  ;;  %v2742_v37 = vld [vmem:[#allocation8 + $0x1c0] sm:$0xff]  ;;  %v2752_v42 = vld [vmem:[#allocation8 + $0x1d0] sm:$0xff] }
  0x5f   :  { %v2754_v43 = vld [vmem:[#allocation8 + $0x3c0] sm:$0xff]  ;;  %v2756_v44 = vld [vmem:[#allocation8 + $0x3d0] sm:$0xff]  ;;  %2267 = vmatpush1.bf16.msra.mxu0 %v2266_v19  ;;  %v2766_v49 = vld [vmem:[#allocation8 + $0x1e8] sm:$0xff] }
  0x60   :  { %v2768_v50 = vld [vmem:[#allocation8 + $0x1f8] sm:$0xff]  ;;  %v2770_v51 = vld [vmem:[#allocation8 + $0x3e8] sm:$0xff]  ;;  %2331 = vmatpush1.bf16.msra.mxu1 %v2330_v25  ;;  %2269 = vmatprep.subr.bf16.mxu0 %v2268_v26  ;;  %v2780_v56 = vld [vmem:[#allocation8 + $0x1e0] sm:$0xff] }
  0x61   :  { %v2778_v55 = vld [vmem:[#allocation8 + $0x3f8] sm:$0xff]  ;;  %v2782_v57 = vld [vmem:[#allocation8 + $0x1f0] sm:$0xff]  ;;  %2333 = vmatprep.subr.bf16.mxu1 %v2332_v31  ;;  %v2795_v63 = vld [vmem:[#allocation8 + $0x3e0] sm:$0xff] }
  0x62   :  { %v2797_v0 = vld [vmem:[#allocation8 + $0x3f0] sm:$0xff]  ;;  %v72_v2 = vld [vmem:[#allocation3 + $0x8] sm:$0xff]  ;;  %v74_v19 = vld [vmem:[#allocation3 + $0x18] sm:$0xff] }
  0x63   :  { %v89_v25 = vrot.slane %v72_v2, 5  ;;  %v132_v26 = vld [vmem:[#allocation6] ss:$8 sm:$0x3]  ;;  %2271 = vmatpush1.bf16.msra.mxu0 %v2270_v32  ;;  %v92_v61 = vrot.slane %v74_v19, 5 }
  0x64   :  { %v2805_v31 = vld [vmem:[#allocation3] sm:$0xff]  ;;  %v2810_v60 = vrot.slane %v132_v26, %v2728_v30  ;;  %2335 = vmatpush1.bf16.msra.mxu1 %v2334_v33  ;;  %2273 = vmatprep.subr.bf16.mxu0 %v2272_v34  ;;  %v2814_v4 = vrot.slane %v132_v26, %v2785_v58  ;;  %v825_v52 = vld [vmem:[#allocation6 + $0x10] ss:$8 sm:$0x3] }
  0x65   :  { %v161_v1 = vld [vmem:[#allocation6 + $0x1] ss:$8 sm:$0x3]  ;;  %v4162_v59 = vrot.slane %v2805_v31, 5  ;;  %113 = vst [vmem:[#allocation2 + $0x8] sm:$0xf8] %v89_v25  ;;  %2337 = vmatprep.subr.bf16.mxu1 %v2336_v38  ;;  %v2823_v3 = vsel %vm87_vm0, %v89_v25, %v92_v61  ;;  %v2893_v9 = vrot.slane %v825_v52, %v2728_v30  ;;  %v2896_v10 = vrot.slane %v825_v52, %v2785_v58 }
  0x66   :  { %4311 = vst [vmem:[#allocation15_spill] sm:$0xff] %v2810_v60  ;;  %v2817_v2 = vrot.slane %v161_v1, %v2728_v30  ;;  %v2820_v32 = vrot.slane %v161_v1, %v2785_v58  ;;  %v243_v62 = vld [vmem:[#allocation6 + $0x2] ss:$8 sm:$0x3]  ;;  %117 = vst [vmem:[#allocation2 + $0x28] sm:$0x7] %v92_v61 }
  0x67   :  { %v325_v19 = vld [vmem:[#allocation6 + $0x3] ss:$8 sm:$0x3]  ;;  %v2826_v33 = vrot.slane %v243_v62, %v2728_v30  ;;  %v2829_v34 = vrot.slane %v243_v62, %v2785_v58  ;;  %v407_v54 = vld [vmem:[#allocation6 + $0x4] ss:$8 sm:$0x3]  ;;  %2275 = vmatpush1.bf16.msra.mxu0 %v2274_v39 }
  0x68   :  { %4312 = vst [vmem:[#allocation16_spill] sm:$0xff] %v2817_v2  ;;  %4313 = vst [vmem:[#allocation17_spill] sm:$0xff] %v2820_v32  ;;  %v2832_v26 = vrot.slane %v325_v19, %v2728_v30  ;;  %v489_v1 = vld [vmem:[#allocation6 + $0x5] ss:$8 sm:$0x3]  ;;  %v2839_v38 = vmul.f32 %v2820_v32, %v2823_v3  ;;  %v2842_v25 = vrot.slane %v325_v19, %v2785_v58  ;;  %2339 = vmatpush1.bf16.msra.mxu1 %v2338_v40 }
  0x69   :  { %4314 = vst [vmem:[#allocation18_spill] sm:$0xff] %v2826_v33  ;;  %4315 = vst [vmem:[#allocation19_spill] sm:$0xff] %v2829_v34  ;;  %v2845_v62 = vrot.slane %v407_v54, %v2728_v30  ;;  %v2848_v53 = vrot.slane %v407_v54, %v2785_v58  ;;  %v570_v61 = vld [vmem:[#allocation6 + $0x6] ss:$8 sm:$0x3]  ;;  %v2858_v19 = vrot.slane %v489_v1, %v2728_v30  ;;  %2277 = vmatprep.subr.bf16.mxu0 %v2276_v41 }
  0x6a   :  { %4316 = vst [vmem:[#allocation20_spill] sm:$0xff] %v2832_v26  ;;  %112 = vst [vmem:[#allocation2] sm:$0xf8] %v4162_v59  ;;  %v2855_v59 = vmul.f32 %v2829_v34, %v2823_v3  ;;  %v2861_v48 = vrot.slane %v489_v1, %v2785_v58  ;;  %v2864_v54 = vrot.slane %v570_v61, %v2728_v30  ;;  %v854_v47 = vld [vmem:[#allocation6 + $0x11] ss:$8 sm:$0x3]  ;;  %2341 = vmatprep.subr.bf16.mxu1 %v2340_v45 }
  0x6b   :  { %115 = vst [vmem:[#allocation2 + $0x18] sm:$0xff] %v2823_v3  ;;  %4317 = vst [vmem:[#allocation21_spill] sm:$0xff] %v2845_v62  ;;  %v2875_v6 = vmul.f32 %v2842_v25, %v2823_v3  ;;  %v2879_v39 = vmul.f32 %v2848_v53, %v2823_v3  ;;  %v2882_v1 = vrot.slane %v570_v61, %v2785_v58  ;;  %v935_v46 = vld [vmem:[#allocation6 + $0x12] ss:$8 sm:$0x3] }
  0x6c   :  { %4318 = vst [vmem:[#allocation22_spill] sm:$0xff] %v2858_v19  ;;  %4319 = vst [vmem:[#allocation23_spill] sm:$0xff] %v2864_v54  ;;  %v2890_v8 = vmul.f32 %v2861_v48, %v2823_v3  ;;  %v2905_v12 = vrot.slane %v854_v47, %v2728_v30  ;;  %v4326_v45 = vpack.c.bf16 %v2695_v14, %v2693_v13  ;;  %v125_v61 = vld [vmem:[#allocation2 + $0x8] sm:$0xff] }
  0x6d   :  { %4320 = vst [vmem:[#allocation24_spill] sm:$0xff] %v2875_v6  ;;  %4321 = vst [vmem:[#allocation25_spill] sm:$0xff] %v2879_v39  ;;  %v2902_v11 = vmul.f32 %v2882_v1, %v2823_v3  ;;  %v153_v7 = vld [vmem:[#allocation2 + $0x8] sm:$0xfe]  ;;  %v2912_v40 = vrot.slane %v854_v47, %v2785_v58  ;;  %v2915_v41 = vrot.slane %v935_v46, %v2728_v30 }
  0x6e   :  { %4322 = vst [vmem:[#allocation26_spill] sm:$0xff] %v2890_v8  ;;  %4323 = vst [vmem:[#allocation27_spill] sm:$0xff] %v2893_v9  ;;  %2279 = vmatpush1.bf16.msra.mxu0 %v4326_v45  ;;  %v235_v5 = vld [vmem:[#allocation2 + $0x8] sm:$0xfc]  ;;  %v2918_v9 = vrot.slane %v935_v46, %v2785_v58  ;;  %v4329_v13 = vpack.c.bf16 %v2703_v18, %v2701_v17  ;;  %v145_v14 = vmul.f32 %v2814_v4, %v125_v61 }
  0x6f   :  { %4324 = vst [vmem:[#allocation28_spill] sm:$0xff] %v2902_v11  ;;  %4325 = vst [vmem:[#allocation29_spill] sm:$0xff] %v2905_v12  ;;  %v4328_v12 = vpack.c.bf16 %v2699_v16, %v2697_v15  ;;  %v174_v45 = vmul.f32 %v2820_v32, %v153_v7  ;;  %v256_v47 = vmul.f32 %v2829_v34, %v235_v5  ;;  %v317_v52 = vld [vmem:[#allocation2 + $0x8] sm:$0xf8] }
  0x70   :  { %4327 = vst [vmem:[#allocation30_spill] sm:$0xff] %v2915_v41  ;;  %2281 = vmatprep.subr.bf16.mxu0 %v4329_v13  ;;  %v399_v54 = vld [vmem:[#allocation2 + $0x8] sm:$0xf0]  ;;  %v4330_v46 = vpack.c.bf16 %v2709_v21, %v2707_v20  ;;  %v338_v15 = vmul.f32 %v2842_v25, %v317_v52  ;;  %v838_v34 = vmul.f32 %v2896_v10, %v125_v61  ;;  %v4334_v61 = vrot.slane %v2839_v38, 1 }
  0x71   :  { %2343 = vmatpush1.bf16.msra.mxu1 %v4328_v12  ;;  %v481_v41 = vld [vmem:[#allocation2 + $0x8] sm:$0xe0]  ;;  %v420_v16 = vmul.f32 %v2848_v53, %v399_v54  ;;  %v201_v7 = vrot.slane %v174_v45, 1  ;;  %v283_v32 = vrot.slane %v256_v47, 2  ;;  %v4331_v20 = vpack.c.bf16 %v2713_v23, %v2711_v22 }
  0x72   :  { %2345 = vmatprep.subr.bf16.mxu1 %v4330_v46  ;;  %v502_v17 = vmul.f32 %v2861_v48, %v481_v41  ;;  %v562_v18 = vld [vmem:[#allocation2 + $0x8] sm:$0xc0]  ;;  %v365_v21 = vrot.slane %v338_v15, 3  ;;  %v4332_v12 = vpack.c.bf16 %v2721_v27, %v2715_v24  ;;  %v4333_v45 = vpack.c.bf16 %v2725_v29, %v2723_v28 }
  0x73   :  { %v846_v13 = vld [vmem:[#allocation2 + $0x8] sm:$0xfe]  ;;  %v583_v5 = vmul.f32 %v2882_v1, %v562_v18  ;;  %2283 = vmatpush1.bf16.msra.mxu0 %v4331_v20  ;;  %v447_v52 = vrot.slane %v420_v16, 4  ;;  %v203_v47 = vsel %vm197_vm1, %v201_v7, %v4334_v61  ;;  %v4335_v22 = vrot.slane %v2855_v59, 2 }
  0x74   :  { %v528_v46 = vrot.slane %v502_v17, 5  ;;  %v867_v54 = vmul.f32 %v2912_v40, %v846_v13  ;;  %v927_v41 = vld [vmem:[#allocation2 + $0x8] sm:$0xfc]  ;;  %2285 = vmatprep.subr.bf16.mxu0 %v4333_v45  ;;  %v2956_v16 = vmul.f32 %v2912_v40, %v2823_v3  ;;  %v1016_v17 = vld [vmem:[#allocation6 + $0x13] ss:$8 sm:$0x3]  ;;  %v4337_v24 = vpack.c.bf16 %v2740_v36, %v2738_v35 }
  0x75   :  { %2347 = vmatpush1.bf16.msra.mxu1 %v4332_v12  ;;  %v285_v23 = vsel %vm279_vm2, %v283_v32, %v4335_v22  ;;  %v610_v15 = vrot.slane %v583_v5, 6  ;;  %v227_v27 = vadd.f32 %v203_v47, %v145_v14  ;;  %v4338_v28 = vrot.slane %v2875_v6, 3  ;;  %v1097_v7 = vld [vmem:[#allocation6 + $0x14] ss:$8 sm:$0x3] }
  0x76   :  { %4336 = vst [vmem:[#allocation31_spill] sm:$0xff] %v2956_v16  ;;  %2349 = vmatprep.subr.bf16.mxu1 %v4337_v24  ;;  %v4339_v18 = vrot.slane %v2879_v39, 4  ;;  %v4340_v32 = vrot.slane %v2890_v8, 5  ;;  %v4341_v5 = vrot.slane %v2902_v11, 6  ;;  %v893_v35 = vrot.slane %v867_v54, 1  ;;  %v2065_v11 = vld [vmem:[#allocation8 + $0x558] sm:$0xff] }
  0x77   :  { %v367_v29 = vsel %vm361_vm3, %v365_v21, %v4338_v28  ;;  %v4178_v36 = vrot.slane %v2956_v16, 1  ;;  %v948_v14 = vmul.f32 %v2918_v9, %v927_v41  ;;  %v1008_v45 = vld [vmem:[#allocation2 + $0x8] sm:$0xf8]  ;;  %v4342_v21 = vpack.c.bf16 %v2752_v42, %v2742_v37  ;;  %v1178_v22 = vld [vmem:[#allocation6 + $0x15] ss:$8 sm:$0x3] }
  0x78   :  { %v449_v12 = vsel %vm443_vm4, %v447_v52, %v4339_v18  ;;  %v530_v13 = vsel %vm87_vm0, %v528_v46, %v4340_v32  ;;  %v612_v20 = vsel %vm606_vm5, %v610_v15, %v4341_v5  ;;  %v309_v52 = vadd.f32 %v285_v23, %v227_v27  ;;  %v1089_v54 = vld [vmem:[#allocation2 + $0x8] sm:$0xf0]  ;;  %v2063_v16 = vld [vmem:[#allocation8 + $0x548] sm:$0xff] }
  0x79   :  { %2287 = vmatpush1.bf16.msra.mxu0 %v4342_v21  ;;  %v2980_v61 = vmul.f32 %v2918_v9, %v2823_v3  ;;  %v2983_v46 = vrot.slane %v1016_v17, %v2728_v30  ;;  %v2986_v47 = vrot.slane %v1016_v17, %v2785_v58  ;;  %v4346_v41 = vpack.c.bf16 %v2756_v44, %v2754_v43  ;;  %v1170_v32 = vld [vmem:[#allocation2 + $0x8] sm:$0xe0] }
  0x7a   :  { %v4347_v37 = vpack.c.bf16 %v2768_v50, %v2766_v49  ;;  %v895_v42 = vsel %vm197_vm1, %v893_v35, %v4178_v36  ;;  %v974_v23 = vrot.slane %v948_v14, 2  ;;  %v2998_v15 = vrot.slane %v1097_v7, %v2728_v30  ;;  %v73_v14 = vld [vmem:[#allocation3 + $0x10] sm:$0xff] }
  0x7b   :  { %4343 = vst [vmem:[#allocation32_spill] sm:$0xff] %v2980_v61  ;;  %4344 = vst [vmem:[#allocation33_spill] sm:$0xff] %v2983_v46  ;;  %2351 = vmatpush1.bf16.msra.mxu1 %v4346_v41  ;;  %v3001_v17 = vrot.slane %v1097_v7, %v2785_v58  ;;  %v4350_v24 = vpack.c.bf16 %v2778_v55, %v2770_v51  ;;  %v391_v43 = vadd.f32 %v367_v29, %v309_v52  ;;  %v1259_v55 = vld [vmem:[#allocation6 + $0x16] ss:$8 sm:$0x3] }
  0x7c   :  { %4345 = vst [vmem:[#allocation34_spill] sm:$0xff] %v2986_v47  ;;  %2289 = vmatprep.subr.bf16.mxu0 %v4347_v37  ;;  %4348 = vst [vmem:[#allocation35_spill] sm:$0xff] %v2998_v15  ;;  %v919_v44 = vadd.f32 %v895_v42, %v838_v34  ;;  %v4177_v49 = vrot.slane %v2980_v61, 2  ;;  %v1029_v50 = vmul.f32 %v2986_v47, %v1008_v45  ;;  %v124_v42 = vld [vmem:[#allocation2] sm:$0xff] }
  0x7d   :  { %4349 = vst [vmem:[#allocation36_spill] sm:$0xff] %v3001_v17  ;;  %2353 = vmatprep.subr.bf16.mxu1 %v4350_v24  ;;  %v3010_v27 = vmul.f32 %v2986_v47, %v2823_v3  ;;  %v1110_v28 = vmul.f32 %v3001_v17, %v1089_v54  ;;  %v3015_v18 = vmul.f32 %v3001_v17, %v2823_v3  ;;  %v152_v24 = vld [vmem:[#allocation2] sm:$0xfe] }
  0x7e   :  { %v3018_v51 = vrot.slane %v1178_v22, %v2728_v30  ;;  %v4354_v34 = vpack.c.bf16 %v2782_v57, %v2780_v56  ;;  %v473_v29 = vadd.f32 %v449_v12, %v391_v43  ;;  %v976_v7 = vsel %vm279_vm2, %v974_v23, %v4177_v49  ;;  %v4370_v49 = vld [vmem:[#allocation27_spill] sm:$0xff] }
  0x7f   :  { %4351 = vst [vmem:[#allocation37_spill] sm:$0xff] %v3010_v27  ;;  %4352 = vst [vmem:[#allocation38_spill] sm:$0xff] %v3015_v18  ;;  %v1055_v5 = vrot.slane %v1029_v50, 3  ;;  %v3027_v35 = vrot.slane %v1178_v22, %v2785_v58  ;;  %v4356_v45 = vpack.c.bf16 %v2797_v0, %v2795_v63  ;;  %v1000_v21 = vadd.f32 %v976_v7, %v919_v44  ;;  %v1251_v22 = vld [vmem:[#allocation2 + $0x8] sm:$0xc0] }
  0x80   :  { %4353 = vst [vmem:[#allocation39_spill] sm:$0xff] %v3018_v51  ;;  %2291 = vmatpush1.bf16.msra.mxu0 %v4354_v34  ;;  %v4176_v52 = vrot.slane %v3010_v27, 3  ;;  %v1136_v54 = vrot.slane %v1110_v28, 4  ;;  %v4172_v56 = vrot.slane %v3015_v18, 4  ;;  %v554_v57 = vadd.f32 %v530_v13, %v473_v29  ;;  %v2044_v27 = vld [vmem:[#allocation8 + $0x4b0] sm:$0xff] }
  0x81   :  { %4355 = vst [vmem:[#allocation40_spill] sm:$0xff] %v3027_v35  ;;  %2355 = vmatpush1.bf16.msra.mxu1 %v4356_v45  ;;  %v1191_v12 = vmul.f32 %v3027_v35, %v1170_v32  ;;  %v3037_v41 = vmul.f32 %v3027_v35, %v2823_v3  ;;  %v3040_v37 = vrot.slane %v1259_v55, %v2728_v30  ;;  %v90_v23 = vrot.slane %v73_v14, 5  ;;  %v234_v32 = vld [vmem:[#allocation2] sm:$0xfc] }
  0x82   :  { %v1057_v63 = vsel %vm361_vm3, %v1055_v5, %v4176_v52  ;;  %v1138_v0 = vsel %vm443_vm4, %v1136_v54, %v4172_v56  ;;  %v3049_v13 = vrot.slane %v1259_v55, %v2785_v58  ;;  %v636_v43 = vadd.f32 %v612_v20, %v554_v57  ;;  %v316_v14 = vld [vmem:[#allocation2] sm:$0xf8] }
  0x83   :  { %4357 = vst [vmem:[#allocation41_spill] sm:$0xff] %v3037_v41  ;;  %4358 = vst [vmem:[#allocation42_spill] sm:$0xff] %v3040_v37  ;;  %v1081_v44 = vadd.f32 %v1057_v63, %v1000_v21  ;;  %v1217_v50 = vrot.slane %v1191_v12, 5  ;;  %v4171_v28 = vrot.slane %v3037_v41, 5  ;;  %v4361_v7 = vrot.slane %v2805_v31, 5  ;;  %v2036_v41 = vld [vmem:[#allocation8 + $0x470] sm:$0xff] }
  0x84   :  { %4359 = vst [vmem:[#allocation43_spill] sm:$0xff] %v3049_v13  ;;  %v1272_v34 = vmul.f32 %v3049_v13, %v1251_v22  ;;  %v3055_v29 = vmul.f32 %v3049_v13, %v2823_v3  ;;  %v144_v55 = vmul.f32 %v2810_v60, %v124_v42  ;;  %116 = vst [vmem:[#allocation2 + $0x20] sm:$0x7] %v90_v23  ;;  %783 = vmatprep.mubr.f32.mxu0 %v636_v43  ;;  %v398_v63 = vld [vmem:[#allocation2] sm:$0xf0]  ;;  %v2046_v60 = vld [vmem:[#allocation8 + $0x4c0] sm:$0xff] }
  0x85   :  { %v3060_v5 = vsel %vm87_vm0, %v4361_v7, %v90_v23  ;;  %v1162_v20 = vadd.f32 %v1138_v0, %v1081_v44  ;;  %v1219_v45 = vsel %vm87_vm0, %v1217_v50, %v4171_v28  ;;  %v173_v21 = vmul.f32 %v2817_v2, %v152_v24  ;;  %v480_v7 = vld [vmem:[#allocation2] sm:$0xe0] }
  0x86   :  { %4360 = vst [vmem:[#allocation44_spill] sm:$0xff] %v3055_v29  ;;  %4362 = vst [vmem:[#allocation45_spill] sm:$0xff] %v3060_v5  ;;  %v3070_v31 = vmul.f32 %v2817_v2, %v3060_v5  ;;  %v1298_v54 = vrot.slane %v1272_v34, 6  ;;  %v4173_v57 = vrot.slane %v3055_v29, 6  ;;  %v255_v12 = vmul.f32 %v2826_v33, %v234_v32  ;;  %v561_v28 = vld [vmem:[#allocation2] sm:$0xc0] }
  0x87   :  { %114 = vst [vmem:[#allocation2 + $0x10] sm:$0xff] %v3060_v5  ;;  %v3076_v22 = vmul.f32 %v2826_v33, %v3060_v5  ;;  %v1243_v0 = vadd.f32 %v1219_v45, %v1162_v20  ;;  %v198_v23 = vrot.slane %v173_v21, 1  ;;  %v337_v24 = vmul.f32 %v2832_v26, %v316_v14  ;;  %v2032_v29 = vld [vmem:[#allocation8 + $0x450] sm:$0xff]  ;;  %v2049_v2 = vld [vmem:[#allocation8 + $0x4d8] sm:$0xff] }
  0x88   :  { %4363 = vst [vmem:[#allocation46_spill] sm:$0xff] %v3070_v31  ;;  %v4175_v43 = vrot.slane %v3070_v31, 1  ;;  %v1300_v44 = vsel %vm606_vm5, %v1298_v54, %v4173_v57  ;;  %v280_v50 = vrot.slane %v255_v12, 2  ;;  %v3086_v32 = vmul.f32 %v2832_v26, %v3060_v5  ;;  %v2048_v13 = vld [vmem:[#allocation8 + $0x4d0] sm:$0xff] }
  0x89   :  { %4364 = vst [vmem:[#allocation47_spill] sm:$0xff] %v3076_v22  ;;  %v4174_v34 = vrot.slane %v3076_v22, 2  ;;  %v1324_v56 = vadd.f32 %v1300_v44, %v1243_v0  ;;  %v362_v45 = vrot.slane %v337_v24, 3  ;;  %v419_v14 = vmul.f32 %v2845_v62, %v398_v63  ;;  %v4368_v63 = vld [vmem:[#allocation23_spill] sm:$0xff]  ;;  %v2033_v22 = vld [vmem:[#allocation8 + $0x458] sm:$0xff] }
  0x8a   :  { %4365 = vst [vmem:[#allocation48_spill] sm:$0xff] %v3086_v32  ;;  %v200_v20 = vsel %vm197_vm1, %v198_v23, %v4175_v43  ;;  %v4181_v12 = vrot.slane %v3086_v32, 3  ;;  %v3098_v57 = vmul.f32 %v2845_v62, %v3060_v5  ;;  %v501_v44 = vmul.f32 %v2858_v19, %v480_v7  ;;  %v845_v24 = vld [vmem:[#allocation2] sm:$0xfe]  ;;  %v2031_v32 = vld [vmem:[#allocation8 + $0x448] sm:$0xff] }
  0x8b   :  { %v226_v21 = vadd.f32 %v200_v20, %v144_v55  ;;  %v282_v54 = vsel %vm279_vm2, %v280_v50, %v4174_v34  ;;  %1473 = vmatprep.mubr.f32.mxu1 %v1324_v56  ;;  %v444_v0 = vrot.slane %v419_v14, 4  ;;  %v3103_v23 = vmul.f32 %v2858_v19, %v3060_v5  ;;  %v926_v14 = vld [vmem:[#allocation2] sm:$0xfc] }
  0x8c   :  { %4366 = vst [vmem:[#allocation49_spill] sm:$0xff] %v3098_v57  ;;  %v582_v55 = vmul.f32 %v4368_v63, %v561_v28  ;;  %v364_v50 = vsel %vm361_vm3, %v362_v45, %v4181_v12  ;;  %v4184_v34 = vrot.slane %v3098_v57, 4  ;;  %v3112_v56 = vmul.f32 %v4368_v63, %v3060_v5  ;;  %v1007_v28 = vld [vmem:[#allocation2] sm:$0xf8] }
  0x8d   :  { %4367 = vst [vmem:[#allocation50_spill] sm:$0xff] %v3103_v23  ;;  %v308_v20 = vadd.f32 %v282_v54, %v226_v21  ;;  %v525_v7 = vrot.slane %v501_v44, 5  ;;  %v4186_v43 = vrot.slane %v3103_v23, 5  ;;  %v837_v36 = vmul.f32 %v4370_v49, %v124_v42  ;;  %v4371_v54 = vld [vmem:[#allocation29_spill] sm:$0xff]  ;;  %v2025_v49 = vld [vmem:[#allocation8 + $0x418] sm:$0xff] }
  0x8e   :  { %4369 = vst [vmem:[#allocation51_spill] sm:$0xff] %v3112_v56  ;;  %v607_v52 = vrot.slane %v582_v55, 6  ;;  %v446_v21 = vsel %vm443_vm4, %v444_v0, %v4184_v34  ;;  %v4191_v45 = vrot.slane %v3112_v56, 6  ;;  %v866_v12 = vmul.f32 %v4371_v54, %v845_v24  ;;  %v4373_v55 = vld [vmem:[#allocation30_spill] sm:$0xff] }
  0x8f   :  { %v390_v58 = vadd.f32 %v364_v50, %v308_v20  ;;  %v527_v30 = vsel %vm87_vm0, %v525_v7, %v4186_v43  ;;  %v3126_v44 = vmul.f32 %v4371_v54, %v3060_v5  ;;  %v947_v42 = vmul.f32 %v4373_v55, %v926_v14  ;;  %v1088_v50 = vld [vmem:[#allocation2] sm:$0xf0]  ;;  %v2029_v43 = vld [vmem:[#allocation8 + $0x438] sm:$0xff] }
  0x90   :  { %v3131_v20 = vmul.f32 %v4373_v55, %v3060_v5  ;;  %v609_v24 = vsel %vm606_vm5, %v607_v52, %v4191_v45  ;;  %v890_v34 = vrot.slane %v866_v12, 1  ;;  %v1028_v23 = vmul.f32 %v2983_v46, %v1007_v28  ;;  %v1169_v7 = vld [vmem:[#allocation2] sm:$0xe0]  ;;  %v2023_v55 = vld [vmem:[#allocation8 + $0x408] sm:$0xff]  ;;  %v2022_v28 = vld [vmem:[#allocation8 + $0x400] sm:$0xff] }
  0x91   :  { %4372 = vst [vmem:[#allocation52_spill] sm:$0xff] %v3126_v44  ;;  %v472_v0 = vadd.f32 %v446_v21, %v390_v58  ;;  %v971_v57 = vrot.slane %v947_v42, 2  ;;  %v3141_v14 = vmul.f32 %v2983_v46, %v3060_v5  ;;  %v1109_v56 = vmul.f32 %v2998_v15, %v1088_v50  ;;  %v1250_v12 = vld [vmem:[#allocation2] sm:$0xc0]  ;;  %v2027_v42 = vld [vmem:[#allocation8 + $0x428] sm:$0xff] }
  0x92   :  { %4374 = vst [vmem:[#allocation53_spill] sm:$0xff] %v3131_v20  ;;  %v1052_v21 = vrot.slane %v1028_v23, 3  ;;  %v3146_v52 = vmul.f32 %v2998_v15, %v3060_v5  ;;  %v2024_v45 = vld [vmem:[#allocation8 + $0x410] sm:$0xff]  ;;  %v4377_v54 = vrot.slane %v3126_v44, 1  ;;  %v4378_v63 = vrot.slane %v3131_v20, 2  ;;  %v2030_v44 = vld [vmem:[#allocation8 + $0x440] sm:$0xff] }
  0x93   :  { %4375 = vst [vmem:[#allocation54_spill] sm:$0xff] %v3141_v14  ;;  %v553_v58 = vadd.f32 %v527_v30, %v472_v0  ;;  %v4213_v23 = vrot.slane %v3141_v14, 3  ;;  %v1190_v50 = vmul.f32 %v3018_v51, %v1169_v7  ;;  %v2026_v0 = vld [vmem:[#allocation8 + $0x420] sm:$0xff]  ;;  %v2028_v15 = vld [vmem:[#allocation8 + $0x430] sm:$0xff]  ;;  %v1133_v62 = vrot.slane %v1109_v56, 4  ;;  %v2041_v56 = vld [vmem:[#allocation8 + $0x498] sm:$0xff] }
  0x94   :  { %4376 = vst [vmem:[#allocation55_spill] sm:$0xff] %v3146_v52  ;;  %v892_v46 = vsel %vm197_vm1, %v890_v34, %v4377_v54  ;;  %v973_v30 = vsel %vm279_vm2, %v971_v57, %v4378_v63  ;;  %v2035_v34 = vld [vmem:[#allocation8 + $0x468] sm:$0xff]  ;;  %v2037_v54 = vld [vmem:[#allocation8 + $0x478] sm:$0xff]  ;;  %v2034_v20 = vld [vmem:[#allocation8 + $0x460] sm:$0xff]  ;;  %v3162_v63 = vmul.f32 %v3018_v51, %v3060_v5  ;;  %v4380_v18 = vrot.slane %v3146_v52, 4 }
  0x95   :  { %v635_v31 = vadd.f32 %v609_v24, %v553_v58  ;;  %v918_v19 = vadd.f32 %v892_v46, %v837_v36  ;;  %v1054_v57 = vsel %vm361_vm3, %v1052_v21, %v4213_v23  ;;  %v1214_v7 = vrot.slane %v1190_v50, 5  ;;  %v2039_v46 = vld [vmem:[#allocation8 + $0x488] sm:$0xff]  ;;  %v2038_v24 = vld [vmem:[#allocation8 + $0x480] sm:$0xff]  ;;  %v2040_v58 = vld [vmem:[#allocation8 + $0x490] sm:$0xff] }
  0x96   :  { %4379 = vst [vmem:[#allocation56_spill] sm:$0xff] %v3162_v63  ;;  %v1271_v36 = vmul.f32 %v3040_v37, %v1250_v12  ;;  %v1135_v33 = vsel %vm443_vm4, %v1133_v62, %v4380_v18  ;;  %v3170_v21 = vmul.f32 %v3040_v37, %v3060_v5  ;;  %v2356_v23 = vpack.c.bf16 %v2025_v49, %v2023_v55  ;;  %v2043_v14 = vld [vmem:[#allocation8 + $0x4a8] sm:$0xff]  ;;  %v2045_v51 = vld [vmem:[#allocation8 + $0x4b8] sm:$0xff]  ;;  %v2042_v50 = vld [vmem:[#allocation8 + $0x4a0] sm:$0xff] }
  0x97   :  { %784 = vmatmul.mubr.f32.vlgmr.msra.gmra.mrb[0].mxu0 %v635_v31  ;;  %v999_v26 = vadd.f32 %v973_v30, %v918_v19  ;;  %v2047_v12 = vld [vmem:[#allocation8 + $0x4c8] sm:$0xff]  ;;  %v3173_v30 = vpack.c.bf16 %v2024_v45, %v2022_v28  ;;  %v3175_v52 = vpack.c.bf16 %v2029_v43, %v2027_v42  ;;  %v2053_v18 = vld [vmem:[#allocation8 + $0x4f8] sm:$0xff]  ;;  %v2050_v37 = vld [vmem:[#allocation8 + $0x4e0] sm:$0xff]  ;;  %v3178_v61 = vpack.c.bf16 %v2028_v15, %v2026_v0 }
  0x98   :  { %4381 = vst [vmem:[#allocation57_spill] sm:$0xff] %v3170_v21  ;;  %v1295_v19 = vrot.slane %v1271_v36, 6  ;;  %v2051_v62 = vld [vmem:[#allocation8 + $0x4e8] sm:$0xff]  ;;  %v2052_v5 = vld [vmem:[#allocation8 + $0x4f0] sm:$0xff]  ;;  %v2057_v55 = vld [vmem:[#allocation8 + $0x518] sm:$0xff]  ;;  %2357 = vmatprep.subr.bf16.mxu0 %v2356_v23  ;;  %2420 = vmatprep.subr.bf16.mxu1 %v2356_v23  ;;  %v3180_v47 = vpack.c.bf16 %v2033_v22, %v2031_v32  ;;  %v4382_v8 = vrot.slane %v3162_v63, 5  ;;  %v3188_v15 = vpack.c.bf16 %v2037_v54, %v2035_v34 }
  0x99   :  { %v2055_v49 = vld [vmem:[#allocation8 + $0x508] sm:$0xff]  ;;  %v1080_v35 = vadd.f32 %v1054_v57, %v999_v26  ;;  %v2054_v36 = vld [vmem:[#allocation8 + $0x500] sm:$0xff]  ;;  %v2056_v45 = vld [vmem:[#allocation8 + $0x510] sm:$0xff]  ;;  %2359 = vmatpush1.bf16.msra.mxu0 %v3173_v30  ;;  %v3186_v57 = vpack.c.bf16 %v2032_v29, %v2030_v44  ;;  %v3190_v22 = vpack.c.bf16 %v2036_v41, %v2034_v20  ;;  %v4383_v39 = vrot.slane %v3170_v21, 6 }
  0x9a   :  { %v2059_v28 = vld [vmem:[#allocation8 + $0x528] sm:$0xff]  ;;  %v2061_v43 = vld [vmem:[#allocation8 + $0x538] sm:$0xff]  ;;  %v2058_v42 = vld [vmem:[#allocation8 + $0x520] sm:$0xff]  ;;  %v1216_v26 = vsel %vm87_vm0, %v1214_v7, %v4382_v8  ;;  %2361 = vmatprep.subr.bf16.mxu0 %v3175_v52  ;;  %v3196_v63 = vpack.c.bf16 %v2041_v56, %v2039_v46  ;;  %v3198_v8 = vpack.c.bf16 %v2040_v58, %v2038_v24  ;;  %v3200_v54 = vpack.c.bf16 %v2045_v51, %v2043_v14 }
  0x9b   :  { %v2060_v31 = vld [vmem:[#allocation8 + $0x530] sm:$0xff]  ;;  %v2062_v32 = vld [vmem:[#allocation8 + $0x540] sm:$0xff]  ;;  %v2067_v0 = vld [vmem:[#allocation8 + $0x568] sm:$0xff]  ;;  %v1161_v17 = vadd.f32 %v1135_v33, %v1080_v35  ;;  %v1297_v6 = vsel %vm606_vm5, %v1295_v19, %v4383_v39  ;;  %v3202_v41 = vpack.c.bf16 %v2044_v27, %v2042_v50  ;;  %v3204_v20 = vpack.c.bf16 %v2049_v2, %v2047_v12 }
  0x9c   :  { %v2064_v23 = vld [vmem:[#allocation8 + $0x550] sm:$0xff]  ;;  %v2069_v29 = vld [vmem:[#allocation8 + $0x578] sm:$0xff]  ;;  %v2066_v44 = vld [vmem:[#allocation8 + $0x560] sm:$0xff]  ;;  %v3206_v33 = vpack.c.bf16 %v2048_v13, %v2046_v60  ;;  %v3208_v21 = vpack.c.bf16 %v2053_v18, %v2051_v62  ;;  %v3210_v46 = vpack.c.bf16 %v2052_v5, %v2050_v37  ;;  %v3212_v56 = vpack.c.bf16 %v2057_v55, %v2055_v49 }
  0x9d   :  { %v2068_v34 = vld [vmem:[#allocation8 + $0x570] sm:$0xff]  ;;  %v2071_v35 = vld [vmem:[#allocation8 + $0x588] sm:$0xff]  ;;  %v2073_v7 = vld [vmem:[#allocation8 + $0x598] sm:$0xff]  ;;  %v1242_v19 = vadd.f32 %v1216_v26, %v1161_v17  ;;  %2363 = vmatpush1.bf16.msra.mxu0 %v3178_v61  ;;  %v3215_v27 = vpack.c.bf16 %v2056_v45, %v2054_v36  ;;  %v3217_v2 = vpack.c.bf16 %v2061_v43, %v2059_v28  ;;  %v3219_v60 = vpack.c.bf16 %v2060_v31, %v2058_v42 }
  0x9e   :  { %v2070_v39 = vld [vmem:[#allocation8 + $0x580] sm:$0xff]  ;;  %v2072_v24 = vld [vmem:[#allocation8 + $0x590] sm:$0xff]  ;;  %v155_v58 = vld [vmem:[#allocation2 + $0x28] sm:$0x1]  ;;  %v3221_v13 = vpack.c.bf16 %v2065_v11, %v2063_v16  ;;  %2365 = vmatprep.subr.bf16.mxu0 %v3180_v47  ;;  %v3224_v5 = vpack.c.bf16 %v2064_v23, %v2062_v32  ;;  %v3226_v12 = vpack.c.bf16 %v2069_v29, %v2067_v0  ;;  %v3228_v62 = vpack.c.bf16 %v2068_v34, %v2066_v44 }
  0x9f   :  { %v237_v51 = vld [vmem:[#allocation2 + $0x28] sm:$0x3]  ;;  %v1323_v37 = vadd.f32 %v1297_v6, %v1242_v19  ;;  %v3230_v55 = vpack.c.bf16 %v2073_v7, %v2071_v35  ;;  %v3232_v31 = vpack.c.bf16 %v2072_v24, %v2070_v39  ;;  %v147_v11 = vmul.f32 %v2814_v4, %v2823_v3  ;;  %v4385_v16 = vld [vmem:[#allocation17_spill] sm:$0xff]  ;;  %v4386_v6 = vld [vmem:[#allocation19_spill] sm:$0xff] }
  0xa0   :  { %v319_v17 = vld [vmem:[#allocation2 + $0x28] sm:$0x7]  ;;  %v178_v36 = vmul.f32 %v4385_v16, %v155_v58  ;;  %v260_v45 = vmul.f32 %v4386_v6, %v237_v51  ;;  %v840_v0 = vmul.f32 %v2896_v10, %v2823_v3 }
  0xa1   :  { %v401_v14 = vld [vmem:[#allocation2 + $0x28] sm:$0xf]  ;;  %4384 = vst [vmem:[#allocation58_spill] sm:$0xff] %v3232_v31  ;;  %1474 = vmatmul.mubr.f32.vlgmr.msra.gmra.mrb[0].mxu1 %v1323_v37  ;;  %v342_v28 = vmul.f32 %v2842_v25, %v319_v17  ;;  %2367 = vmatpush1.bf16.msra.mxu0 %v3186_v57 }
  0xa2   :  { %v483_v50 = vld [vmem:[#allocation2 + $0x28] sm:$0x1f]  ;;  %v424_v43 = vmul.f32 %v2848_v53, %v401_v14  ;;  %2436 = vmatpush1.bf16.msra.mxu1 %v3173_v30  ;;  %v206_v32 = vrot.slane %v178_v36, 1  ;;  %2369 = vmatprep.subr.bf16.mxu0 %v3188_v15  ;;  %v288_v44 = vrot.slane %v260_v45, 2  ;;  %v4387_v30 = vrot.slane %v2839_v38, 1 }
  0xa3   :  { %v564_v18 = vld [vmem:[#allocation2 + $0x28] sm:$0x3f]  ;;  %v506_v42 = vmul.f32 %v2861_v48, %v483_v50  ;;  %2421 = vmatprep.subr.bf16.mxu1 %v3175_v52  ;;  %v370_v34 = vrot.slane %v342_v28, 3  ;;  %v4388_v52 = vrot.slane %v2855_v59, 2 }
  0xa4   :  { %v848_v49 = vld [vmem:[#allocation2 + $0x28] sm:$0x1]  ;;  %v587_v23 = vmul.f32 %v2882_v1, %v564_v18  ;;  %v452_v35 = vrot.slane %v424_v43, 4  ;;  %v207_v39 = vsel %vm197_vm1, %v4387_v30, %v206_v32 }
  0xa5   :  { %v929_v26 = vld [vmem:[#allocation2 + $0x28] sm:$0x3]  ;;  %v871_v29 = vmul.f32 %v2912_v40, %v848_v49  ;;  %v533_v7 = vrot.slane %v506_v42, 5  ;;  %v229_v17 = vadd.f32 %v207_v39, %v147_v11  ;;  %v289_v14 = vsel %vm279_vm2, %v4388_v52, %v288_v44  ;;  %v4391_v49 = vld [vmem:[#allocation25_spill] sm:$0xff]  ;;  %2371 = vmatpush1.bf16.msra.mxu0 %v3190_v22  ;;  %v4393_v11 = vld [vmem:[#allocation26_spill] sm:$0xff] }
  0xa6   :  { %v615_v19 = vrot.slane %v587_v23, 6  ;;  %v952_v58 = vmul.f32 %v2918_v9, %v929_v26  ;;  %v1010_v51 = vld [vmem:[#allocation2 + $0x28] sm:$0x7]  ;;  %v4392_v38 = vrot.slane %v4391_v49, 4  ;;  %2437 = vmatpush1.bf16.msra.mxu1 %v3178_v61  ;;  %v4394_v42 = vrot.slane %v4393_v11, 5  ;;  %2373 = vmatprep.subr.bf16.mxu0 %v3196_v63  ;;  %v4399_v39 = vld [vmem:[#allocation34_spill] sm:$0xff] }
  0xa7   :  { %v898_v24 = vrot.slane %v871_v29, 1  ;;  %v3253_v3 = vld [vmem:[#allocation3 + $0x28] sm:$0xff]  ;;  %v4397_v29 = vld [vmem:[#allocation31_spill] sm:$0xff]  ;;  %2422 = vmatprep.subr.bf16.mxu1 %v3180_v47  ;;  %v311_v61 = vadd.f32 %v289_v14, %v229_v17  ;;  %v1033_v52 = vmul.f32 %v4399_v39, %v1010_v51  ;;  %v4405_v51 = vld [vmem:[#allocation45_spill] sm:$0xff] }
  0xa8   :  { %v4389_v50 = vld [vmem:[#allocation24_spill] sm:$0xff]  ;;  %v453_v36 = vsel %vm443_vm4, %v4392_v38, %v452_v35  ;;  %v534_v59 = vsel %vm87_vm0, %v4394_v42, %v533_v7  ;;  %v4398_v44 = vrot.slane %v4397_v29, 1  ;;  %v979_v35 = vrot.slane %v952_v58, 2  ;;  %v4404_v58 = vld [vmem:[#allocation43_spill] sm:$0xff] }
  0xa9   :  { %v4390_v37 = vrot.slane %v4389_v50, 3  ;;  %v1091_v45 = vld [vmem:[#allocation2 + $0x28] sm:$0xf]  ;;  %v154_v50 = vld [vmem:[#allocation2 + $0x20] sm:$0x1]  ;;  %v4243_v7 = vrot.slane %v3253_v3, 5  ;;  %2375 = vmatpush1.bf16.msra.mxu0 %v3198_v8 }
  0xaa   :  { %v1172_v28 = vld [vmem:[#allocation2 + $0x28] sm:$0x1f]  ;;  %v236_v47 = vld [vmem:[#allocation2 + $0x20] sm:$0x3]  ;;  %v1060_v14 = vrot.slane %v1033_v52, 3  ;;  %2438 = vmatpush1.bf16.msra.mxu1 %v3186_v57  ;;  %2377 = vmatprep.subr.bf16.mxu0 %v3200_v54 }
  0xab   :  { %v371_v18 = vsel %vm361_vm3, %v4390_v37, %v370_v34  ;;  %v1253_v43 = vld [vmem:[#allocation2 + $0x28] sm:$0x3f]  ;;  %v899_v34 = vsel %vm197_vm1, %v4398_v44, %v898_v24  ;;  %v4406_v29 = vld [vmem:[#allocation15_spill] sm:$0xff]  ;;  %119 = vst [vmem:[#allocation2 + $0x38] sm:$0xf8] %v4243_v7  ;;  %2423 = vmatprep.subr.bf16.mxu1 %v3188_v15 }
  0xac   :  { %v4395_v26 = vld [vmem:[#allocation28_spill] sm:$0xff]  ;;  %v921_v30 = vadd.f32 %v899_v34, %v840_v0  ;;  %v393_v17 = vadd.f32 %v371_v18, %v311_v61  ;;  %v146_v44 = vmul.f32 %v4406_v29, %v4405_v51  ;;  %v4408_v61 = vld [vmem:[#allocation37_spill] sm:$0xff]  ;;  %v400_v57 = vld [vmem:[#allocation2 + $0x20] sm:$0xf] }
  0xad   :  { %v4396_v32 = vrot.slane %v4395_v26, 6  ;;  %v4400_v37 = vld [vmem:[#allocation32_spill] sm:$0xff]  ;;  %v1276_v26 = vmul.f32 %v4404_v58, %v1253_v43  ;;  %v482_v7 = vld [vmem:[#allocation2 + $0x20] sm:$0x1f]  ;;  %v4413_v29 = vld [vmem:[#allocation41_spill] sm:$0xff]  ;;  %2379 = vmatpush1.bf16.msra.mxu0 %v3202_v41 }
  0xae   :  { %v4401_v49 = vrot.slane %v4400_v37, 2  ;;  %v4402_v38 = vld [vmem:[#allocation36_spill] sm:$0xff]  ;;  %v318_v37 = vld [vmem:[#allocation2 + $0x20] sm:$0x7]  ;;  %v475_v18 = vadd.f32 %v453_v36, %v393_v17  ;;  %v4414_v58 = vrot.slane %v4413_v29, 5  ;;  %2439 = vmatpush1.bf16.msra.mxu1 %v3190_v22  ;;  %v4419_v29 = vld [vmem:[#allocation21_spill] sm:$0xff]  ;;  %2381 = vmatprep.subr.bf16.mxu0 %v3204_v20 }
  0xaf   :  { %v616_v23 = vsel %vm606_vm5, %v4396_v32, %v615_v19  ;;  %v1114_v11 = vmul.f32 %v4402_v38, %v1091_v45  ;;  %v4403_v42 = vld [vmem:[#allocation40_spill] sm:$0xff]  ;;  %v3285_v32 = vld [vmem:[#allocation3 + $0x38] sm:$0xff]  ;;  %v1303_v34 = vrot.slane %v1276_v26, 6  ;;  %2424 = vmatprep.subr.bf16.mxu1 %v3196_v63 }
  0xb0   :  { %v980_v19 = vsel %vm279_vm2, %v4401_v49, %v979_v35  ;;  %v1195_v24 = vmul.f32 %v4403_v42, %v1172_v28  ;;  %v4407_v43 = vld [vmem:[#allocation16_spill] sm:$0xff]  ;;  %v4410_v49 = vld [vmem:[#allocation18_spill] sm:$0xff]  ;;  %v4418_v42 = vrot.slane %v3285_v32, 5 }
  0xb1   :  { %v1002_v0 = vadd.f32 %v980_v19, %v921_v30  ;;  %v1141_v45 = vrot.slane %v1114_v11, 4  ;;  %v177_v35 = vmul.f32 %v4407_v43, %v154_v50  ;;  %v4409_v30 = vrot.slane %v4408_v61, 3  ;;  %v4411_v50 = vld [vmem:[#allocation38_spill] sm:$0xff]  ;;  %v4415_v17 = vld [vmem:[#allocation44_spill] sm:$0xff]  ;;  %2383 = vmatpush1.bf16.msra.mxu0 %v3206_v33 }
  0xb2   :  { %v1222_v28 = vrot.slane %v1195_v24, 5  ;;  %v259_v19 = vmul.f32 %v4410_v49, %v236_v47  ;;  %v3301_v24 = vld [vmem:[#allocation3 + $0x20] sm:$0xff]  ;;  %v4412_v43 = vrot.slane %v4411_v50, 4  ;;  %v4416_v61 = vrot.slane %v4415_v17, 6  ;;  %v4417_v31 = vld [vmem:[#allocation20_spill] sm:$0xff]  ;;  %2440 = vmatpush1.bf16.msra.mxu1 %v3198_v8  ;;  %2385 = vmatprep.subr.bf16.mxu0 %v3208_v21  ;;  %v4434_v8 = vld [vmem:[#allocation30_spill] sm:$0xff] }
  0xb3   :  { %v1061_v52 = vsel %vm361_vm3, %v4409_v30, %v1060_v14  ;;  %v556_v47 = vadd.f32 %v534_v59, %v475_v18  ;;  %v204_v30 = vrot.slane %v177_v35, 1  ;;  %v341_v11 = vmul.f32 %v4417_v31, %v318_v37  ;;  %123 = vst [vmem:[#allocation2 + $0x58] sm:$0x7] %v4418_v42  ;;  %v4421_v35 = vld [vmem:[#allocation46_spill] sm:$0xff]  ;;  %v4423_v37 = vld [vmem:[#allocation47_spill] sm:$0xff]  ;;  %v4425_v63 = vld [vmem:[#allocation48_spill] sm:$0xff]  ;;  %2425 = vmatprep.subr.bf16.mxu1 %v3200_v54 }
  0xb4   :  { %v1083_v26 = vadd.f32 %v1061_v52, %v1002_v0  ;;  %v1142_v15 = vsel %vm443_vm4, %v4412_v43, %v1141_v45  ;;  %v1223_v36 = vsel %vm87_vm0, %v4414_v58, %v1222_v28  ;;  %v1304_v14 = vsel %vm606_vm5, %v4416_v61, %v1303_v34  ;;  %v4420_v58 = vld [vmem:[#allocation22_spill] sm:$0xff]  ;;  %v563_v43 = vld [vmem:[#allocation2 + $0x20] sm:$0x3f]  ;;  %v2077_v54 = vld [vmem:[#allocation8 + $0x5b8] sm:$0xff] }
  0xb5   :  { %v286_v49 = vrot.slane %v259_v19, 2  ;;  %v423_v45 = vmul.f32 %v4419_v29, %v400_v57  ;;  %v505_v28 = vmul.f32 %v4420_v58, %v482_v7  ;;  %v847_v52 = vld [vmem:[#allocation2 + $0x20] sm:$0x1]  ;;  %v4245_v59 = vrot.slane %v3301_v24, 5  ;;  %2387 = vmatpush1.bf16.msra.mxu0 %v3210_v46 }
  0xb6   :  { %v1164_v0 = vadd.f32 %v1142_v15, %v1083_v26  ;;  %v638_v34 = vadd.f32 %v616_v23, %v556_v47  ;;  %v4422_v42 = vrot.slane %v4421_v35, 1  ;;  %v4424_v18 = vrot.slane %v4423_v37, 2  ;;  %v928_v17 = vld [vmem:[#allocation2 + $0x20] sm:$0x3]  ;;  %2441 = vmatpush1.bf16.msra.mxu1 %v3202_v41  ;;  %2389 = vmatprep.subr.bf16.mxu0 %v3212_v56  ;;  %v3367_v41 = vld [vmem:[#allocation2 + $0x38] sm:$0xff] }
  0xb7   :  { %v368_v57 = vrot.slane %v341_v11, 3  ;;  %v450_v50 = vrot.slane %v423_v45, 4  ;;  %v531_v15 = vrot.slane %v505_v28, 5  ;;  %118 = vst [vmem:[#allocation2 + $0x30] sm:$0xf8] %v4245_v59  ;;  %v4426_v23 = vrot.slane %v4425_v63, 3  ;;  %2426 = vmatprep.subr.bf16.mxu1 %v3204_v20 }
  0xb8   :  { %v205_v22 = vsel %vm197_vm1, %v4422_v42, %v204_v30  ;;  %v287_v19 = vsel %vm279_vm2, %v4424_v18, %v286_v49  ;;  %v1245_v26 = vadd.f32 %v1223_v36, %v1164_v0  ;;  %789 = vmatprep.mubr.f32.mxu0 %v638_v34  ;;  %v4427_v47 = vld [vmem:[#allocation23_spill] sm:$0xff]  ;;  %v4429_v49 = vld [vmem:[#allocation29_spill] sm:$0xff]  ;;  %v2075_v59 = vld [vmem:[#allocation8 + $0x5a8] sm:$0xff]  ;;  %4445 = vst [vmem:[#allocation17_spill] sm:$0xff] %v3367_v41 }
  0xb9   :  { %v228_v7 = vadd.f32 %v205_v22, %v146_v44  ;;  %v369_v61 = vsel %vm361_vm3, %v4426_v23, %v368_v57  ;;  %v586_v30 = vmul.f32 %v4427_v47, %v563_v43  ;;  %v4428_v35 = vld [vmem:[#allocation27_spill] sm:$0xff]  ;;  %v870_v11 = vmul.f32 %v4429_v49, %v847_v52  ;;  %v4430_v34 = vld [vmem:[#allocation49_spill] sm:$0xff]  ;;  %v4440_v47 = vld [vmem:[#allocation52_spill] sm:$0xff]  ;;  %2391 = vmatpush1.bf16.msra.mxu0 %v3215_v27 }
  0xba   :  { %v839_v42 = vmul.f32 %v4428_v35, %v4405_v51  ;;  %v1009_v36 = vld [vmem:[#allocation2 + $0x20] sm:$0x7]  ;;  %v1326_v45 = vadd.f32 %v1304_v14, %v1245_v26  ;;  %v4431_v22 = vrot.slane %v4430_v34, 4  ;;  %v4432_v51 = vld [vmem:[#allocation50_spill] sm:$0xff]  ;;  %v951_v23 = vmul.f32 %v4434_v8, %v928_v17  ;;  %2442 = vmatpush1.bf16.msra.mxu1 %v3206_v33  ;;  %2393 = vmatprep.subr.bf16.mxu0 %v3217_v2 }
  0xbb   :  { %v1090_v44 = vld [vmem:[#allocation2 + $0x20] sm:$0xf]  ;;  %v310_v28 = vadd.f32 %v287_v19, %v228_v7  ;;  %v4433_v43 = vrot.slane %v4432_v51, 5  ;;  %v613_v57 = vrot.slane %v586_v30, 6  ;;  %v896_v63 = vrot.slane %v870_v11, 1  ;;  %v4435_v19 = vld [vmem:[#allocation33_spill] sm:$0xff]  ;;  %2427 = vmatprep.subr.bf16.mxu1 %v3208_v21 }
  0xbc   :  { %v1171_v0 = vld [vmem:[#allocation2 + $0x20] sm:$0x1f]  ;;  %v451_v37 = vsel %vm443_vm4, %v4431_v22, %v450_v50  ;;  %1479 = vmatprep.mubr.f32.mxu1 %v1326_v45  ;;  %v1032_v26 = vmul.f32 %v4435_v19, %v1009_v36  ;;  %v977_v11 = vrot.slane %v951_v23, 2  ;;  %v4442_v17 = vld [vmem:[#allocation42_spill] sm:$0xff] }
  0xbd   :  { %v1252_v18 = vld [vmem:[#allocation2 + $0x20] sm:$0x3f]  ;;  %v532_v52 = vsel %vm87_vm0, %v4433_v43, %v531_v15  ;;  %v392_v14 = vadd.f32 %v369_v61, %v310_v28  ;;  %v4441_v15 = vrot.slane %v4440_v47, 1  ;;  %v2074_v28 = vld [vmem:[#allocation8 + $0x5a0] sm:$0xff]  ;;  %2395 = vmatpush1.bf16.msra.mxu0 %v3219_v60 }
  0xbe   :  { %v4436_v7 = vld [vmem:[#allocation35_spill] sm:$0xff]  ;;  %v1275_v45 = vmul.f32 %v4442_v17, %v1252_v18  ;;  %v4443_v47 = vld [vmem:[#allocation53_spill] sm:$0xff]  ;;  %2443 = vmatpush1.bf16.msra.mxu1 %v3210_v46  ;;  %2397 = vmatprep.subr.bf16.mxu0 %v3221_v13 }
  0xbf   :  { %v1113_v34 = vmul.f32 %v4436_v7, %v1090_v44  ;;  %v4437_v50 = vld [vmem:[#allocation39_spill] sm:$0xff]  ;;  %v897_v30 = vsel %vm197_vm1, %v4441_v15, %v896_v63  ;;  %v474_v61 = vadd.f32 %v451_v37, %v392_v14  ;;  %v1058_v44 = vrot.slane %v1032_v26, 3  ;;  %v3369_v37 = vld [vmem:[#allocation3 + $0x30] sm:$0xff]  ;;  %v4446_v14 = vld [vmem:[#allocation54_spill] sm:$0xff]  ;;  %2428 = vmatprep.subr.bf16.mxu1 %v3212_v56 }
  0xc0   :  { %v1194_v22 = vmul.f32 %v4437_v50, %v1171_v0  ;;  %v4438_v49 = vld [vmem:[#allocation51_spill] sm:$0xff]  ;;  %v920_v36 = vadd.f32 %v897_v30, %v839_v42  ;;  %v1301_v18 = vrot.slane %v1275_v45, 6  ;;  %v3365_v63 = vpack.c.bf16 %v2077_v54, %v2075_v59  ;;  %v4452_v54 = vld [vmem:[#allocation57_spill] sm:$0xff] }
  0xc1   :  { %v4439_v35 = vrot.slane %v4438_v49, 6  ;;  %v1139_v0 = vrot.slane %v1113_v34, 4  ;;  %v2076_v43 = vld [vmem:[#allocation8 + $0x5b0] sm:$0xff]  ;;  %v555_v42 = vadd.f32 %v532_v52, %v474_v61  ;;  %v4447_v26 = vrot.slane %v4446_v14, 3  ;;  %v485_v14 = vld [vmem:[#allocation2 + $0x38] sm:$0xe0]  ;;  %2399 = vmatpush1.bf16.msra.mxu0 %v3224_v5 }
  0xc2   :  { %v4448_v34 = vld [vmem:[#allocation55_spill] sm:$0xff]  ;;  %v3383_v52 = vpack.c.bf16 %v2076_v43, %v2074_v28  ;;  %v4454_v61 = vrot.slane %v3285_v32, 5  ;;  %v149_v28 = vmul.f32 %v2814_v4, %v3367_v41  ;;  %v403_v43 = vld [vmem:[#allocation2 + $0x38] sm:$0xf0]  ;;  %v96_v32 = vrot.slane %v3369_v37, 5  ;;  %2444 = vmatpush1.bf16.msra.mxu1 %v3215_v27  ;;  %2401 = vmatprep.subr.bf16.mxu0 %v3226_v12 }
  0xc3   :  { %v614_v51 = vsel %vm606_vm5, %v4439_v35, %v613_v57  ;;  %v4444_v35 = vrot.slane %v4443_v47, 2  ;;  %v1220_v57 = vrot.slane %v1194_v22, 5  ;;  %v1059_v20 = vsel %vm361_vm3, %v4447_v26, %v1058_v44  ;;  %v157_v47 = vld [vmem:[#allocation2 + $0x38] sm:$0xfe]  ;;  %v4450_v22 = vld [vmem:[#allocation56_spill] sm:$0xff]  ;;  %2429 = vmatprep.subr.bf16.mxu1 %v3217_v2 }
  0xc4   :  { %v4449_v15 = vrot.slane %v4448_v34, 4  ;;  %v4451_v45 = vrot.slane %v4450_v22, 5  ;;  %122 = vst [vmem:[#allocation2 + $0x50] sm:$0x7] %v96_v32 }
  0xc5   :  { %v978_v49 = vsel %vm279_vm2, %v4444_v35, %v977_v11  ;;  %v239_v11 = vld [vmem:[#allocation2 + $0x38] sm:$0xfc]  ;;  %v4453_v35 = vrot.slane %v4452_v54, 6  ;;  %2403 = vmatpush1.bf16.msra.mxu0 %v3228_v62 }
  0xc6   :  { %v1001_v23 = vadd.f32 %v978_v49, %v920_v36  ;;  %v1140_v30 = vsel %vm443_vm4, %v4449_v15, %v1139_v0  ;;  %v1221_v59 = vsel %vm87_vm0, %v4451_v45, %v1220_v57  ;;  %v4455_v36 = vrot.slane %v3253_v3, 5  ;;  %v321_v0 = vld [vmem:[#allocation2 + $0x38] sm:$0xf8]  ;;  %2445 = vmatpush1.bf16.msra.mxu1 %v3219_v60  ;;  %2405 = vmatprep.subr.bf16.mxu0 %v3230_v55 }
  0xc7   :  { %v1302_v17 = vsel %vm606_vm5, %v4453_v35, %v1301_v18  ;;  %v637_v49 = vadd.f32 %v614_v51, %v555_v42  ;;  %v180_v3 = vmul.f32 %v4385_v16, %v157_v47  ;;  %v262_v51 = vmul.f32 %v4386_v6, %v239_v11  ;;  %v566_v45 = vld [vmem:[#allocation2 + $0x38] sm:$0xc0]  ;;  %2430 = vmatprep.subr.bf16.mxu1 %v3221_v13  ;;  %v4456_v13 = vld [vmem:[#allocation40_spill] sm:$0xff] }
  0xc8   :  { %v3390_v44 = vsel %vm87_vm0, %v4455_v36, %v4454_v61  ;;  %v1082_v57 = vadd.f32 %v1059_v20, %v1001_v23  ;;  %v344_v23 = vmul.f32 %v2842_v25, %v321_v0  ;;  %v426_v15 = vmul.f32 %v2848_v53, %v403_v43 }
  0xc9   :  { %121 = vst [vmem:[#allocation2 + $0x48] sm:$0xff] %v3390_v44  ;;  %v3403_v33 = vmul.f32 %v4385_v16, %v3390_v44  ;;  %790 = vmatmul.mubr.f32.gmra.mrb[2].mxu0 %v637_v49  ;;  %v3408_v42 = vmul.f32 %v4386_v6, %v3390_v44  ;;  %v3413_v21 = vmul.f32 %v2842_v25, %v3390_v44  ;;  %v211_v26 = vrot.slane %v180_v3, 1  ;;  %v850_v49 = vld [vmem:[#allocation2 + $0x38] sm:$0xfe] }
  0xca   :  { %v1163_v18 = vadd.f32 %v1140_v30, %v1082_v57  ;;  %v293_v34 = vrot.slane %v262_v51, 2  ;;  %v375_v11 = vrot.slane %v344_v23, 3  ;;  %v3430_v46 = vmul.f32 %v2848_v53, %v3390_v44  ;;  %2446 = vmatpush1.bf16.msra.mxu1 %v3224_v5 }
  0xcb   :  { %v4256_v20 = vrot.slane %v3403_v33, 1  ;;  %v4255_v47 = vrot.slane %v3408_v42, 2  ;;  %v4253_v22 = vrot.slane %v3413_v21, 3  ;;  %v457_v35 = vrot.slane %v426_v15, 4  ;;  %2431 = vmatprep.subr.bf16.mxu1 %v3226_v12 }
  0xcc   :  { %v1244_v30 = vadd.f32 %v1221_v59, %v1163_v18  ;;  %v508_v59 = vmul.f32 %v2861_v48, %v485_v14  ;;  %v4252_v57 = vrot.slane %v3430_v46, 4  ;;  %v3442_v43 = vmul.f32 %v2861_v48, %v3390_v44  ;;  %v1012_v14 = vld [vmem:[#allocation2 + $0x38] sm:$0xf8] }
  0xcd   :  { %v213_v54 = vsel %vm197_vm1, %v211_v26, %v4256_v20  ;;  %v295_v0 = vsel %vm279_vm2, %v293_v34, %v4255_v47  ;;  %v377_v56 = vsel %vm361_vm3, %v375_v11, %v4253_v22  ;;  %v589_v51 = vmul.f32 %v2882_v1, %v566_v45 }
  0xce   :  { %v1325_v61 = vadd.f32 %v1302_v17, %v1244_v30  ;;  %v231_v36 = vadd.f32 %v213_v54, %v149_v28  ;;  %v538_v3 = vrot.slane %v508_v59, 5  ;;  %v931_v17 = vld [vmem:[#allocation2 + $0x38] sm:$0xfc]  ;;  %v3449_v18 = vmul.f32 %v2882_v1, %v3390_v44  ;;  %2447 = vmatpush1.bf16.msra.mxu1 %v3228_v62 }
  0xcf   :  { %v842_v23 = vmul.f32 %v2896_v10, %v3367_v41  ;;  %v459_v26 = vsel %vm443_vm4, %v457_v35, %v4252_v57  ;;  %v4247_v27 = vrot.slane %v3442_v43, 5  ;;  %v620_v34 = vrot.slane %v589_v51, 6  ;;  %v1093_v54 = vld [vmem:[#allocation2 + $0x38] sm:$0xf0]  ;;  %2432 = vmatprep.subr.bf16.mxu1 %v3230_v55  ;;  %v849_v41 = vld [vmem:[#allocation2 + $0x30] sm:$0xfe] }
  0xd0   :  { %v313_v28 = vadd.f32 %v295_v0, %v231_v36  ;;  %v873_v15 = vmul.f32 %v2912_v40, %v850_v49  ;;  %1480 = vmatmul.mubr.f32.gmra.mrb[2].mxu1 %v1325_v61  ;;  %v4246_v11 = vrot.slane %v3449_v18, 6  ;;  %v3463_v45 = vmul.f32 %v2912_v40, %v3390_v44  ;;  %v1174_v0 = vld [vmem:[#allocation2 + $0x38] sm:$0xe0] }
  0xd1   :  { %v954_v2 = vmul.f32 %v2918_v9, %v931_v17  ;;  %v540_v35 = vsel %vm87_vm0, %v538_v3, %v4247_v27  ;;  %v3471_v36 = vmul.f32 %v2918_v9, %v3390_v44  ;;  %v1035_v61 = vmul.f32 %v4399_v39, %v1012_v14 }
  0xd2   :  { %v395_v30 = vadd.f32 %v377_v56, %v313_v28  ;;  %v903_v59 = vrot.slane %v873_v15, 1  ;;  %v622_v49 = vsel %vm606_vm5, %v620_v34, %v4246_v11  ;;  %v4248_v51 = vrot.slane %v3463_v45, 1 }
  0xd3   :  { %v984_v3 = vrot.slane %v954_v2, 2  ;;  %v4249_v17 = vrot.slane %v3471_v36, 2  ;;  %v3485_v28 = vmul.f32 %v4399_v39, %v3390_v44  ;;  %v1065_v60 = vrot.slane %v1035_v61, 3  ;;  %v1255_v2 = vld [vmem:[#allocation2 + $0x38] sm:$0xc0] }
  0xd4   :  { %v477_v56 = vadd.f32 %v459_v26, %v395_v30  ;;  %v1116_v14 = vmul.f32 %v4402_v38, %v1093_v54  ;;  %v905_v34 = vsel %vm197_vm1, %v903_v59, %v4248_v51  ;;  %v3493_v15 = vmul.f32 %v4402_v38, %v3390_v44 }
  0xd5   :  { %v1197_v30 = vmul.f32 %v4456_v13, %v1174_v0  ;;  %v923_v11 = vadd.f32 %v905_v34, %v842_v23  ;;  %v986_v27 = vsel %vm279_vm2, %v984_v3, %v4249_v17  ;;  %v4251_v61 = vrot.slane %v3485_v28, 3  ;;  %v3507_v23 = vld [vmem:[#allocation2 + $0x30] sm:$0xff] }
  0xd6   :  { %v558_v26 = vadd.f32 %v540_v35, %v477_v56  ;;  %v1146_v54 = vrot.slane %v1116_v14, 4  ;;  %v4457_v35 = vld [vmem:[#allocation58_spill] sm:$0xff]  ;;  %v4250_v56 = vrot.slane %v3493_v15, 4  ;;  %v3505_v51 = vmul.f32 %v4456_v13, %v3390_v44  ;;  %4458 = vst [vmem:[#allocation19_spill] sm:$0xff] %v3507_v23  ;;  %v156_v34 = vld [vmem:[#allocation2 + $0x30] sm:$0xfe] }
  0xd7   :  { %2407 = vmatpush1.bf16.msra.mxu0 %v4457_v35  ;;  %v1227_v0 = vrot.slane %v1197_v30, 5  ;;  %v1004_v3 = vadd.f32 %v986_v27, %v923_v11  ;;  %v1067_v5 = vsel %vm361_vm3, %v1065_v60, %v4251_v61  ;;  %v4460_v27 = vrot.slane %v3301_v24, 5  ;;  %v320_v60 = vld [vmem:[#allocation2 + $0x30] sm:$0xf8]  ;;  %v4462_v61 = vld [vmem:[#allocation16_spill] sm:$0xff]  ;;  %2448 = vmatpush1.bf16.msra.mxu1 %v4457_v35 }
  0xd8   :  { %v640_v59 = vadd.f32 %v622_v49, %v558_v26  ;;  %2409 = vmatprep.subr.bf16.mxu0 %v3365_v63  ;;  %v4459_v49 = vld [vmem:[#allocation43_spill] sm:$0xff]  ;;  %v238_v26 = vld [vmem:[#allocation2 + $0x30] sm:$0xfc]  ;;  %v1148_v30 = vsel %vm443_vm4, %v1146_v54, %v4250_v56  ;;  %v4254_v17 = vrot.slane %v3505_v51, 5  ;;  %v179_v57 = vmul.f32 %v4462_v61, %v156_v34  ;;  %2433 = vmatprep.subr.bf16.mxu1 %v3365_v63 }
  0xd9   :  { %v1278_v14 = vmul.f32 %v4459_v49, %v1255_v2  ;;  %v3521_v12 = vmul.f32 %v4459_v49, %v3390_v44  ;;  %v3528_v11 = vsel %vm87_vm0, %v4460_v27, %v96_v32  ;;  %v1085_v2 = vadd.f32 %v1067_v5, %v1004_v3  ;;  %v4461_v54 = vld [vmem:[#allocation15_spill] sm:$0xff]  ;;  %v4464_v3 = vld [vmem:[#allocation18_spill] sm:$0xff]  ;;  %v930_v63 = vld [vmem:[#allocation2 + $0x30] sm:$0xfc] }
  0xda   :  { %795 = vmatprep.mubr.f32.mxu0 %v640_v59  ;;  %120 = vst [vmem:[#allocation2 + $0x40] sm:$0xff] %v3528_v11  ;;  %v148_v56 = vmul.f32 %v4461_v54, %v3507_v23  ;;  %v1229_v24 = vsel %vm87_vm0, %v1227_v0, %v4254_v17  ;;  %v3542_v32 = vmul.f32 %v4462_v61, %v3528_v11  ;;  %v208_v27 = vrot.slane %v179_v57, 1  ;;  %v484_v0 = vld [vmem:[#allocation2 + $0x30] sm:$0xe0] }
  0xdb   :  { %v1308_v59 = vrot.slane %v1278_v14, 6  ;;  %2411 = vmatpush1.bf16.msra.mxu0 %v3383_v52  ;;  %v4257_v37 = vrot.slane %v3521_v12, 6  ;;  %v261_v5 = vmul.f32 %v4464_v3, %v238_v26  ;;  %v402_v14 = vld [vmem:[#allocation2 + $0x30] sm:$0xf0]  ;;  %v1166_v34 = vadd.f32 %v1148_v30, %v1085_v2  ;;  %2449 = vmatpush1.bf16.msra.mxu1 %v3383_v52 }
  0xdc   :  { %4463 = vst [vmem:[#allocation24_spill] sm:$0xff] %v3542_v32  ;;  %v3548_v62 = vmul.f32 %v4464_v3, %v3528_v11  ;;  %v343_v22 = vmul.f32 %v4417_v31, %v320_v60  ;;  %v4259_v47 = vrot.slane %v3542_v32, 1  ;;  %v3557_v26 = vmul.f32 %v4417_v31, %v3528_v11  ;;  %v1092_v52 = vld [vmem:[#allocation2 + $0x30] sm:$0xf0] }
  0xdd   :  { %v1310_v17 = vsel %vm606_vm5, %v1308_v59, %v4257_v37  ;;  %v290_v20 = vrot.slane %v261_v5, 2  ;;  %v1247_v55 = vadd.f32 %v1229_v24, %v1166_v34  ;;  %v425_v2 = vmul.f32 %v4419_v29, %v402_v14  ;;  %v565_v24 = vld [vmem:[#allocation2 + $0x30] sm:$0xc0] }
  0xde   :  { %4465 = vst [vmem:[#allocation25_spill] sm:$0xff] %v3557_v26  ;;  %v4262_v57 = vrot.slane %v3548_v62, 2  ;;  %v372_v30 = vrot.slane %v343_v22, 3  ;;  %v210_v60 = vsel %vm197_vm1, %v208_v27, %v4259_v47  ;;  %v4261_v59 = vrot.slane %v3557_v26, 3 }
  0xdf   :  { %v3568_v5 = vmul.f32 %v4419_v29, %v3528_v11  ;;  %v507_v37 = vmul.f32 %v4420_v58, %v484_v0  ;;  %v1328_v22 = vadd.f32 %v1310_v17, %v1247_v55  ;;  %v230_v34 = vadd.f32 %v210_v60, %v148_v56  ;;  %v4467_v56 = vld [vmem:[#allocation23_spill] sm:$0xff] }
  0xe0   :  { %v292_v35 = vsel %vm279_vm2, %v290_v20, %v4262_v57  ;;  %v454_v14 = vrot.slane %v425_v2, 4  ;;  %v374_v27 = vsel %vm361_vm3, %v372_v30, %v4261_v59  ;;  %v3581_v0 = vmul.f32 %v4420_v58, %v3528_v11  ;;  %v4469_v2 = vld [vmem:[#allocation27_spill] sm:$0xff]  ;;  %v4470_v59 = vld [vmem:[#allocation29_spill] sm:$0xff] }
  0xe1   :  { %v4265_v47 = vrot.slane %v3568_v5, 4  ;;  %v535_v32 = vrot.slane %v507_v37, 5  ;;  %1485 = vmatprep.mubr.f32.mxu1 %v1328_v22  ;;  %v312_v17 = vadd.f32 %v292_v35, %v230_v34  ;;  %v588_v55 = vmul.f32 %v4467_v56, %v565_v24  ;;  %v1011_v34 = vld [vmem:[#allocation2 + $0x30] sm:$0xf8] }
  0xe2   :  { %4466 = vst [vmem:[#allocation26_spill] sm:$0xff] %v3581_v0  ;;  %v3586_v20 = vmul.f32 %v4467_v56, %v3528_v11  ;;  %v841_v60 = vmul.f32 %v4469_v2, %v3507_v23  ;;  %v4267_v37 = vrot.slane %v3581_v0, 5  ;;  %v872_v22 = vmul.f32 %v4470_v59, %v849_v41  ;;  %v487_v0 = vld [vmem:[#allocation2 + $0x58] sm:$0x1f] }
  0xe3   :  { %v456_v30 = vsel %vm443_vm4, %v454_v14, %v4265_v47  ;;  %v3598_v24 = vmul.f32 %v4470_v59, %v3528_v11  ;;  %v394_v35 = vadd.f32 %v374_v27, %v312_v17  ;;  %v617_v57 = vrot.slane %v588_v55, 6  ;;  %v1173_v55 = vld [vmem:[#allocation2 + $0x30] sm:$0xe0] }
  0xe4   :  { %4468 = vst [vmem:[#allocation28_spill] sm:$0xff] %v3586_v20  ;;  %v4271_v26 = vrot.slane %v3586_v20, 6  ;;  %v953_v23 = vmul.f32 %v4434_v8, %v930_v63  ;;  %v537_v14 = vsel %vm87_vm0, %v535_v32, %v4267_v37  ;;  %v900_v47 = vrot.slane %v872_v22, 1 }
  0xe5   :  { %4471 = vst [vmem:[#allocation31_spill] sm:$0xff] %v3598_v24  ;;  %v4270_v2 = vrot.slane %v3598_v24, 1  ;;  %v3608_v41 = vmul.f32 %v4434_v8, %v3528_v11  ;;  %v476_v59 = vadd.f32 %v456_v30, %v394_v35  ;;  %v1034_v63 = vmul.f32 %v4435_v19, %v1011_v34  ;;  %v2079_v24 = vld [vmem:[#allocation8 + $0x5c8] sm:$0xff] }
  0xe6   :  { %v619_v27 = vsel %vm606_vm5, %v617_v57, %v4271_v26  ;;  %v981_v17 = vrot.slane %v953_v23, 2  ;;  %v3620_v37 = vmul.f32 %v4435_v19, %v3528_v11  ;;  %v1115_v30 = vmul.f32 %v4436_v7, %v1092_v52  ;;  %v1254_v57 = vld [vmem:[#allocation2 + $0x30] sm:$0xc0]  ;;  %v2081_v19 = vld [vmem:[#allocation8 + $0x5d8] sm:$0xff] }
  0xe7   :  { %4472 = vst [vmem:[#allocation34_spill] sm:$0xff] %v3608_v41  ;;  %v902_v32 = vsel %vm197_vm1, %v900_v47, %v4270_v2  ;;  %v4274_v22 = vrot.slane %v3608_v41, 2  ;;  %v557_v35 = vadd.f32 %v537_v14, %v476_v59  ;;  %v1062_v20 = vrot.slane %v1034_v63, 3  ;;  %v2078_v63 = vld [vmem:[#allocation8 + $0x5c0] sm:$0xff] }
  0xe8   :  { %4473 = vst [vmem:[#allocation32_spill] sm:$0xff] %v3620_v37  ;;  %v922_v8 = vadd.f32 %v902_v32, %v841_v60  ;;  %v3625_v23 = vmul.f32 %v4436_v7, %v3528_v11  ;;  %v4279_v34 = vrot.slane %v3620_v37, 3  ;;  %v1143_v2 = vrot.slane %v1115_v30, 4  ;;  %v2080_v32 = vld [vmem:[#allocation8 + $0x5d0] sm:$0xff]  ;;  %v4474_v30 = vld [vmem:[#allocation42_spill] sm:$0xff] }
  0xe9   :  { %v983_v47 = vsel %vm279_vm2, %v981_v17, %v4274_v22  ;;  %v1196_v26 = vmul.f32 %v4437_v50, %v1173_v55  ;;  %v639_v52 = vadd.f32 %v619_v27, %v557_v35  ;;  %v3635_v14 = vmul.f32 %v4437_v50, %v3528_v11  ;;  %v241_v37 = vld [vmem:[#allocation2 + $0x58] sm:$0x3] }
  0xea   :  { %v1003_v59 = vadd.f32 %v983_v47, %v922_v8  ;;  %v1144_v60 = vrot.slane %v3625_v23, 4  ;;  %v1064_v17 = vsel %vm361_vm3, %v1062_v20, %v4279_v34  ;;  %v1277_v41 = vmul.f32 %v4474_v30, %v1254_v57  ;;  %v159_v8 = vld [vmem:[#allocation2 + $0x58] sm:$0x1] }
  0xeb   :  { %v1224_v22 = vrot.slane %v1196_v26, 5  ;;  %v3643_v55 = vmul.f32 %v4474_v30, %v3528_v11  ;;  %796 = vmatmul.mubr.f32.gmra.mrb[4].mxu0 %v639_v52  ;;  %v1225_v47 = vrot.slane %v3635_v14, 5  ;;  %v2412_v50 = vpack.c.bf16 %v2081_v19, %v2079_v24  ;;  %v323_v7 = vld [vmem:[#allocation2 + $0x58] sm:$0x7] }
  0xec   :  { %v1084_v27 = vadd.f32 %v1064_v17, %v1003_v59  ;;  %v1145_v35 = vsel %vm443_vm4, %v1143_v2, %v1144_v60  ;;  %v1305_v20 = vrot.slane %v1277_v41, 6  ;;  %v2414_v57 = vpack.c.bf16 %v2080_v32, %v2078_v63  ;;  %v405_v30 = vld [vmem:[#allocation2 + $0x58] sm:$0xf] }
  0xed   :  { %v1306_v26 = vrot.slane %v3643_v55, 6  ;;  %v151_v34 = vmul.f32 %v2814_v4, %v3390_v44  ;;  %v1226_v59 = vsel %vm87_vm0, %v1224_v22, %v1225_v47  ;;  %2413 = vmatprep.subr.bf16.mxu0 %v2412_v50  ;;  %2434 = vmatprep.subr.bf16.mxu1 %v2412_v50  ;;  %v184_v19 = vmul.f32 %v4385_v16, %v159_v8  ;;  %v568_v2 = vld [vmem:[#allocation2 + $0x58] sm:$0x3f] }
  0xee   :  { %v1165_v52 = vadd.f32 %v1145_v35, %v1084_v27  ;;  %2415 = vmatpush1.bf16.msra.mxu0 %v2414_v57  ;;  %2450 = vmatpush1.bf16.msra.mxu1 %v2414_v57  ;;  %v266_v4 = vmul.f32 %v4386_v6, %v241_v37  ;;  %v348_v41 = vmul.f32 %v2842_v25, %v323_v7  ;;  %v852_v35 = vld [vmem:[#allocation2 + $0x58] sm:$0x1]  ;;  %v4475_v6 = vrot.slane %v3403_v33, 1 }
  0xef   :  { %v1307_v24 = vsel %vm606_vm5, %v1305_v20, %v1306_v26  ;;  %v216_v32 = vrot.slane %v184_v19, 1  ;;  %v430_v17 = vmul.f32 %v2848_v53, %v405_v30  ;;  %v512_v22 = vmul.f32 %v2861_v48, %v487_v0  ;;  %v933_v20 = vld [vmem:[#allocation2 + $0x58] sm:$0x3] }
  0xf0   :  { %v1246_v63 = vadd.f32 %v1226_v59, %v1165_v52  ;;  %v298_v50 = vrot.slane %v266_v4, 2  ;;  %v380_v27 = vrot.slane %v348_v41, 3  ;;  %v593_v16 = vmul.f32 %v2882_v1, %v568_v2  ;;  %v1014_v52 = vld [vmem:[#allocation2 + $0x58] sm:$0x7] }
  0xf1   :  { %v844_v8 = vmul.f32 %v2896_v10, %v3390_v44  ;;  %v217_v25 = vsel %vm197_vm1, %v4475_v6, %v216_v32  ;;  %v462_v7 = vrot.slane %v430_v17, 4  ;;  %v543_v37 = vrot.slane %v512_v22, 5  ;;  %v1095_v53 = vld [vmem:[#allocation2 + $0x58] sm:$0xf] }
  0xf2   :  { %v1327_v57 = vadd.f32 %v1307_v24, %v1246_v63  ;;  %v233_v30 = vadd.f32 %v217_v25, %v151_v34  ;;  %v4476_v48 = vrot.slane %v3408_v42, 2  ;;  %v4477_v1 = vrot.slane %v3413_v21, 3  ;;  %v1176_v19 = vld [vmem:[#allocation2 + $0x58] sm:$0x1f] }
  0xf3   :  { %v625_v59 = vrot.slane %v593_v16, 6  ;;  %v1257_v2 = vld [vmem:[#allocation2 + $0x58] sm:$0x3f]  ;;  %v4478_v33 = vrot.slane %v3430_v46, 4  ;;  %v4479_v4 = vrot.slane %v3442_v43, 5  ;;  %v877_v42 = vmul.f32 %v2912_v40, %v852_v35 }
  0xf4   :  { %v299_v0 = vsel %vm279_vm2, %v4476_v48, %v298_v50  ;;  %v381_v10 = vsel %vm361_vm3, %v4477_v1, %v380_v27  ;;  %1486 = vmatmul.mubr.f32.gmra.mrb[4].mxu1 %v1327_v57  ;;  %v958_v41 = vmul.f32 %v2918_v9, %v933_v20  ;;  %v4480_v21 = vrot.slane %v3449_v18, 6  ;;  %v158_v35 = vld [vmem:[#allocation2 + $0x50] sm:$0x1]  ;;  %v4511_v14 = vld [vmem:[#allocation14_spill] sm:$0xff] }
  0xf5   :  { %v463_v24 = vsel %vm443_vm4, %v4478_v33, %v462_v7  ;;  %v544_v34 = vsel %vm87_vm0, %v4479_v4, %v543_v37  ;;  %v315_v63 = vadd.f32 %v299_v0, %v233_v30  ;;  %v1039_v17 = vmul.f32 %v4399_v39, %v1014_v52  ;;  %v240_v18 = vld [vmem:[#allocation2 + $0x50] sm:$0x3] }
  0xf6   :  { %v626_v32 = vsel %vm606_vm5, %v4480_v21, %v625_v59  ;;  %v1120_v22 = vmul.f32 %v4402_v38, %v1095_v53  ;;  %v908_v46 = vrot.slane %v877_v42, 1  ;;  %v989_v50 = vrot.slane %v958_v41, 2  ;;  %v322_v7 = vld [vmem:[#allocation2 + $0x50] sm:$0x7] }
  0xf7   :  { %v1201_v27 = vmul.f32 %v4456_v13, %v1176_v19  ;;  %v1282_v43 = vmul.f32 %v4459_v49, %v1257_v2  ;;  %v397_v16 = vadd.f32 %v381_v10, %v315_v63  ;;  %v1070_v57 = vrot.slane %v1039_v17, 3  ;;  %v404_v49 = vld [vmem:[#allocation2 + $0x50] sm:$0xf] }
  0xf8   :  { %v1151_v40 = vrot.slane %v1120_v22, 4  ;;  %v150_v9 = vmul.f32 %v4461_v54, %v3528_v11  ;;  %v4481_v20 = vrot.slane %v3463_v45, 1  ;;  %v4482_v38 = vrot.slane %v3471_v36, 2  ;;  %v486_v48 = vld [vmem:[#allocation2 + $0x50] sm:$0x1f] }
  0xf9   :  { %v1232_v25 = vrot.slane %v1201_v27, 5  ;;  %v1313_v13 = vrot.slane %v1282_v43, 6  ;;  %v479_v37 = vadd.f32 %v463_v24, %v397_v16  ;;  %v4483_v53 = vrot.slane %v3485_v28, 3  ;;  %v567_v0 = vld [vmem:[#allocation2 + $0x50] sm:$0x3f] }
  0xfa   :  { %v909_v39 = vsel %vm197_vm1, %v4481_v20, %v908_v46  ;;  %v990_v6 = vsel %vm279_vm2, %v4482_v38, %v989_v50  ;;  %v4484_v30 = vrot.slane %v3493_v15, 4  ;;  %v4485_v36 = vrot.slane %v3505_v51, 5  ;;  %v851_v17 = vld [vmem:[#allocation2 + $0x50] sm:$0x1]  ;;  %v4493_v20 = vld [vmem:[#allocation26_spill] sm:$0xff] }
  0xfb   :  { %v925_v52 = vadd.f32 %v909_v39, %v844_v8  ;;  %v1071_v54 = vsel %vm361_vm3, %v4483_v53, %v1070_v57  ;;  %v4486_v10 = vrot.slane %v3521_v12, 6  ;;  %v183_v8 = vmul.f32 %v4462_v61, %v158_v35  ;;  %v4487_v61 = vld [vmem:[#allocation24_spill] sm:$0xff]  ;;  %v932_v50 = vld [vmem:[#allocation2 + $0x50] sm:$0x3]  ;;  %v4499_v53 = vld [vmem:[#allocation30_spill] sm:$0xff] }
  0xfc   :  { %v1152_v45 = vsel %vm443_vm4, %v4484_v30, %v1151_v40  ;;  %v1233_v1 = vsel %vm87_vm0, %v4485_v36, %v1232_v25  ;;  %v265_v28 = vmul.f32 %v4464_v3, %v240_v18  ;;  %v560_v19 = vadd.f32 %v544_v34, %v479_v37  ;;  %v1013_v27 = vld [vmem:[#allocation2 + $0x50] sm:$0x7] }
  0xfd   :  { %v1314_v59 = vsel %vm606_vm5, %v4486_v10, %v1313_v13  ;;  %v1006_v2 = vadd.f32 %v990_v6, %v925_v52  ;;  %v347_v15 = vmul.f32 %v4417_v31, %v322_v7  ;;  %v429_v33 = vmul.f32 %v4419_v29, %v404_v49  ;;  %v1094_v35 = vld [vmem:[#allocation2 + $0x50] sm:$0xf]  ;;  %v4495_v6 = vld [vmem:[#allocation28_spill] sm:$0xff]  ;;  %v4502_v10 = vld [vmem:[#allocation39_spill] sm:$0xff] }
  0xfe   :  { %v214_v24 = vrot.slane %v183_v8, 1  ;;  %v296_v4 = vrot.slane %v265_v28, 2  ;;  %v511_v51 = vmul.f32 %v4420_v58, %v486_v48  ;;  %v592_v42 = vmul.f32 %v4467_v56, %v567_v0  ;;  %v1175_v18 = vld [vmem:[#allocation2 + $0x50] sm:$0x1f]  ;;  %v4501_v0 = vld [vmem:[#allocation35_spill] sm:$0xff]  ;;  %v4503_v28 = vld [vmem:[#allocation42_spill] sm:$0xff] }
  0xff   :  { %v642_v41 = vadd.f32 %v626_v32, %v560_v19  ;;  %v1087_v12 = vadd.f32 %v1071_v54, %v1006_v2  ;;  %v378_v63 = vrot.slane %v347_v15, 3  ;;  %v460_v21 = vrot.slane %v429_v33, 4  ;;  %v4490_v32 = vld [vmem:[#allocation25_spill] sm:$0xff]  ;;  %v2083_v2 = vld [vmem:[#allocation8 + $0x5e8] sm:$0xff] }
 0x100   :  { %v4488_v22 = vrot.slane %v4487_v61, 1  ;;  %v4489_v34 = vrot.slane %v3548_v62, 2  ;;  %v541_v29 = vrot.slane %v511_v51, 5  ;;  %v623_v46 = vrot.slane %v592_v42, 6  ;;  %v1256_v62 = vld [vmem:[#allocation2 + $0x50] sm:$0x3f] }
 0x101   :  { %801 = vmatprep.mubr.f32.mxu0 %v642_v41  ;;  %v1168_v58 = vadd.f32 %v1152_v45, %v1087_v12  ;;  %v4491_v43 = vrot.slane %v4490_v32, 3  ;;  %v4492_v57 = vrot.slane %v3568_v5, 4  ;;  %v4494_v39 = vrot.slane %v4493_v20, 5  ;;  %v4498_v49 = vld [vmem:[#allocation29_spill] sm:$0xff]  ;;  %v2085_v51 = vld [vmem:[#allocation8 + $0x5f8] sm:$0xff]  ;;  %v4504_v41 = vld [vmem:[#allocation31_spill] sm:$0xff] }
 0x102   :  { %v215_v3 = vsel %vm197_vm1, %v4488_v22, %v214_v24  ;;  %v297_v31 = vsel %vm279_vm2, %v4489_v34, %v296_v4  ;;  %v4496_v25 = vrot.slane %v4495_v6, 6  ;;  %v876_v37 = vmul.f32 %v4498_v49, %v851_v17  ;;  %v4500_v30 = vld [vmem:[#allocation33_spill] sm:$0xff]  ;;  %v1515_v22 = vld [vmem:[#allocation6 + $0x20] ss:$8 sm:$0x3]  ;;  %v3760_v20 = vld [vmem:[#allocation2 + $0x18] sm:$0xff] }
 0x103   :  { %v232_v56 = vadd.f32 %v215_v3, %v150_v9  ;;  %v379_v16 = vsel %vm361_vm3, %v4491_v43, %v378_v63  ;;  %v461_v40 = vsel %vm443_vm4, %v4492_v57, %v460_v21  ;;  %v542_v38 = vsel %vm87_vm0, %v4494_v39, %v541_v29  ;;  %v4497_v9 = vld [vmem:[#allocation27_spill] sm:$0xff]  ;;  %v2082_v42 = vld [vmem:[#allocation8 + $0x5e0] sm:$0xff] }
 0x104   :  { %v624_v13 = vsel %vm606_vm5, %v4496_v25, %v623_v46  ;;  %v843_v7 = vmul.f32 %v4497_v9, %v3528_v11  ;;  %v1249_v52 = vadd.f32 %v1233_v1, %v1168_v58  ;;  %v957_v54 = vmul.f32 %v4499_v53, %v932_v50  ;;  %v2084_v1 = vld [vmem:[#allocation8 + $0x5f0] sm:$0xff]  ;;  %v4508_v46 = vld [vmem:[#allocation32_spill] sm:$0xff]  ;;  %v4510_v39 = vld [vmem:[#allocation13_spill] sm:$0xff] }
 0x105   :  { %v314_v5 = vadd.f32 %v297_v31, %v232_v56  ;;  %v1038_v45 = vmul.f32 %v4500_v30, %v1013_v27  ;;  %v906_v48 = vrot.slane %v876_v37, 1  ;;  %v1119_v36 = vmul.f32 %v4501_v0, %v1094_v35  ;;  %v4506_v31 = vld [vmem:[#allocation34_spill] sm:$0xff]  ;;  %v1544_v58 = vld [vmem:[#allocation6 + $0x21] ss:$8 sm:$0x3] }
 0x106   :  { %v1200_v8 = vmul.f32 %v4502_v10, %v1175_v18  ;;  %v1281_v19 = vmul.f32 %v4503_v28, %v1256_v62  ;;  %v1330_v15 = vadd.f32 %v1314_v59, %v1249_v52  ;;  %v987_v24 = vrot.slane %v957_v54, 2  ;;  %v1625_v57 = vld [vmem:[#allocation6 + $0x22] ss:$8 sm:$0x3]  ;;  %v1698_v54 = vld [vmem:[#allocation2 + $0x8] sm:$0xf8] }
 0x107   :  { %v396_v33 = vadd.f32 %v379_v16, %v314_v5  ;;  %v1068_v4 = vrot.slane %v1038_v45, 3  ;;  %v4505_v12 = vrot.slane %v4504_v41, 1  ;;  %v1149_v21 = vrot.slane %v1119_v36, 4  ;;  %v1507_v62 = vld [vmem:[#allocation2 + $0x8] sm:$0xff] }
 0x108   :  { %v1230_v17 = vrot.slane %v1200_v8, 5  ;;  %v1311_v61 = vrot.slane %v1281_v19, 6  ;;  %1491 = vmatprep.mubr.f32.mxu1 %v1330_v15  ;;  %v4507_v29 = vrot.slane %v4506_v31, 2  ;;  %v4509_v50 = vrot.slane %v4508_v46, 3 }
 0x109   :  { %v907_v63 = vsel %vm197_vm1, %v4505_v12, %v906_v48  ;;  %v478_v3 = vadd.f32 %v461_v40, %v396_v33  ;;  %v1150_v56 = vsel %vm443_vm4, %v1144_v60, %v1149_v21  ;;  %v2416_v16 = vpack.c.bf16 %v2085_v51, %v2083_v2  ;;  %v1536_v60 = vld [vmem:[#allocation2 + $0x8] sm:$0xfe] }
 0x10a   :  { %v924_v34 = vadd.f32 %v907_v63, %v843_v7  ;;  %v988_v59 = vsel %vm279_vm2, %v4507_v29, %v987_v24  ;;  %v1069_v27 = vsel %vm361_vm3, %v4509_v50, %v1068_v4  ;;  %v1231_v32 = vsel %vm87_vm0, %v1225_v47, %v1230_v17  ;;  %v1787_v6 = vld [vmem:[#allocation6 + $0x24] ss:$8 sm:$0x3]  ;;  %v1868_v0 = vld [vmem:[#allocation6 + $0x25] ss:$8 sm:$0x3] }
 0x10b   :  { %v1312_v43 = vsel %vm606_vm5, %v1306_v26, %v1311_v61  ;;  %v559_v40 = vadd.f32 %v542_v38, %v478_v3  ;;  %v2418_v18 = vpack.c.bf16 %v2084_v1, %v2082_v42  ;;  %v3763_v23 = vrot.slane %v1515_v22, %v4510_v39  ;;  %2417 = vmatprep.subr.bf16.mxu0 %v2416_v16  ;;  %v1706_v38 = vld [vmem:[#allocation6 + $0x23] ss:$8 sm:$0x3]  ;;  %v1779_v33 = vld [vmem:[#allocation2 + $0x8] sm:$0xf0] }
 0x10c   :  { %v1005_v35 = vadd.f32 %v988_v59, %v924_v34  ;;  %2435 = vmatprep.subr.bf16.mxu1 %v2416_v16  ;;  %v3766_v47 = vrot.slane %v1515_v22, %v4511_v14  ;;  %v3769_v55 = vrot.slane %v1544_v58, %v4510_v39  ;;  %v3772_v26 = vrot.slane %v1544_v58, %v4511_v14  ;;  %v1617_v7 = vld [vmem:[#allocation2 + $0x8] sm:$0xfc]  ;;  %v1540_v58 = vld [vmem:[#allocation2 + $0x38] sm:$0xfe] }
 0x10d   :  { %v641_v25 = vadd.f32 %v624_v13, %v559_v40  ;;  %2419 = vmatpush1.bf16.msra.mxu0 %v2418_v18  ;;  %2451 = vmatpush1.bf16.msra.mxu1 %v2418_v18  ;;  %v3775_v49 = vrot.slane %v1625_v57, %v4510_v39  ;;  %v3784_v53 = vrot.slane %v1625_v57, %v4511_v14  ;;  %v1949_v41 = vld [vmem:[#allocation6 + $0x26] ss:$8 sm:$0x3]  ;;  %v4512_v18 = vld [vmem:[#allocation17_spill] sm:$0xff] }
 0x10e   :  { %v1086_v9 = vadd.f32 %v1069_v27, %v1005_v35  ;;  %v1528_v37 = vmul.f32 %v3766_v47, %v1507_v62  ;;  %v1557_v52 = vmul.f32 %v3772_v26, %v1536_v60  ;;  %v3781_v5 = vmul.f32 %v3772_v26, %v3760_v20  ;;  %v1860_v61 = vld [vmem:[#allocation2 + $0x8] sm:$0xe0]  ;;  %v1621_v60 = vld [vmem:[#allocation2 + $0x38] sm:$0xfc] }
 0x10f   :  { %802 = vmatmul.mubr.f32.gmra.mrb[6].mxu0 %v641_v25  ;;  %v3787_v30 = vrot.slane %v1706_v38, %v4510_v39  ;;  %v3790_v45 = vrot.slane %v1706_v38, %v4511_v14  ;;  %v3793_v48 = vrot.slane %v1787_v6, %v4510_v39  ;;  %v1638_v8 = vmul.f32 %v3784_v53, %v1617_v7  ;;  %v1941_v29 = vld [vmem:[#allocation2 + $0x8] sm:$0xc0]  ;;  %v1702_v7 = vld [vmem:[#allocation2 + $0x38] sm:$0xf8] }
 0x110   :  { %v1167_v13 = vadd.f32 %v1150_v56, %v1086_v9  ;;  %v1583_v36 = vrot.slane %v1557_v52, 1  ;;  %v4302_v10 = vrot.slane %v3781_v5, 1  ;;  %v3799_v28 = vmul.f32 %v3784_v53, %v3760_v20 }
 0x111   :  { %v1719_v2 = vmul.f32 %v3790_v45, %v1698_v54  ;;  %v3804_v15 = vmul.f32 %v3790_v45, %v3760_v20  ;;  %v3807_v24 = vrot.slane %v1787_v6, %v4511_v14  ;;  %v1664_v51 = vrot.slane %v1638_v8, 2 }
 0x112   :  { %v1248_v19 = vadd.f32 %v1231_v32, %v1167_v13  ;;  %v1585_v4 = vsel %vm197_vm1, %v1583_v36, %v4302_v10  ;;  %v4301_v42 = vrot.slane %v3799_v28, 2  ;;  %v3814_v1 = vrot.slane %v1868_v0, %v4510_v39 }
 0x113   :  { %v1609_v63 = vadd.f32 %v1585_v4, %v1528_v37  ;;  %v1745_v21 = vrot.slane %v1719_v2, 3  ;;  %v4300_v17 = vrot.slane %v3804_v15, 3  ;;  %v1800_v3 = vmul.f32 %v3807_v24, %v1779_v33 }
 0x114   :  { %v1329_v12 = vadd.f32 %v1312_v43, %v1248_v19  ;;  %v1666_v22 = vsel %vm279_vm2, %v1664_v51, %v4301_v42  ;;  %v3823_v34 = vmul.f32 %v3807_v24, %v3760_v20  ;;  %v3826_v31 = vrot.slane %v1868_v0, %v4511_v14  ;;  %v1783_v0 = vld [vmem:[#allocation2 + $0x38] sm:$0xf0] }
 0x115   :  { %v1690_v59 = vadd.f32 %v1666_v22, %v1609_v63  ;;  %v1747_v46 = vsel %vm361_vm3, %v1745_v21, %v4300_v17  ;;  %v3832_v50 = vrot.slane %v1949_v41, %v4510_v39  ;;  %v3835_v27 = vrot.slane %v1949_v41, %v4511_v14  ;;  %v1864_v22 = vld [vmem:[#allocation2 + $0x38] sm:$0xe0]  ;;  %v1623_v14 = vld [vmem:[#allocation2 + $0x58] sm:$0x3] }
 0x116   :  { %1492 = vmatmul.mubr.f32.gmra.mrb[6].mxu1 %v1329_v12  ;;  %v1826_v56 = vrot.slane %v1800_v3, 4  ;;  %v4296_v32 = vrot.slane %v3823_v34, 4  ;;  %v1881_v43 = vmul.f32 %v3826_v31, %v1860_v61  ;;  %v3841_v16 = vmul.f32 %v3826_v31, %v3760_v20  ;;  %v1945_v3 = vld [vmem:[#allocation2 + $0x38] sm:$0xc0] }
 0x117   :  { %v1771_v57 = vadd.f32 %v1747_v46, %v1690_v59  ;;  %v1962_v40 = vmul.f32 %v3835_v27, %v1941_v29  ;;  %v3846_v35 = vmul.f32 %v3835_v27, %v3760_v20  ;;  %v1532_v62 = vmul.f32 %v3766_v47, %v4512_v18 }
 0x118   :  { %v1828_v38 = vsel %vm443_vm4, %v1826_v56, %v4296_v32  ;;  %v1907_v6 = vrot.slane %v1881_v43, 5  ;;  %v4294_v25 = vrot.slane %v3841_v16, 5  ;;  %v1563_v9 = vmul.f32 %v3772_v26, %v1540_v58  ;;  %v1506_v56 = vld [vmem:[#allocation2] sm:$0xff] }
 0x119   :  { %v1852_v37 = vadd.f32 %v1828_v38, %v1771_v57  ;;  %v1988_v52 = vrot.slane %v1962_v40, 6  ;;  %v4293_v54 = vrot.slane %v3846_v35, 6  ;;  %v3858_v13 = vmul.f32 %v3772_v26, %v3390_v44 }
 0x11a   :  { %v1909_v36 = vsel %vm87_vm0, %v1907_v6, %v4294_v25  ;;  %v1593_v8 = vrot.slane %v1563_v9, 1  ;;  %v1644_v19 = vmul.f32 %v3784_v53, %v1621_v60  ;;  %v3866_v2 = vmul.f32 %v3784_v53, %v3390_v44 }
 0x11b   :  { %v1933_v33 = vadd.f32 %v1909_v36, %v1852_v37  ;;  %v1990_v4 = vsel %vm606_vm5, %v1988_v52, %v4293_v54  ;;  %v4292_v51 = vrot.slane %v3858_v13, 1  ;;  %v1725_v41 = vmul.f32 %v3790_v45, %v1702_v7  ;;  %v3897_v7 = vld [vmem:[#allocation2 + $0x10] sm:$0xff] }
 0x11c   :  { %v1674_v12 = vrot.slane %v1644_v19, 2  ;;  %v4290_v63 = vrot.slane %v3866_v2, 2  ;;  %v3876_v21 = vmul.f32 %v3790_v45, %v3390_v44  ;;  %v1806_v61 = vmul.f32 %v3807_v24, %v1783_v0  ;;  %v1697_v19 = vld [vmem:[#allocation2] sm:$0xf8] }
 0x11d   :  { %v2014_v29 = vadd.f32 %v1990_v4, %v1933_v33  ;;  %v1595_v59 = vsel %vm197_vm1, %v1593_v8, %v4292_v51  ;;  %v1755_v46 = vrot.slane %v1725_v41, 3  ;;  %v3884_v58 = vmul.f32 %v3807_v24, %v3390_v44  ;;  %v1616_v8 = vld [vmem:[#allocation2] sm:$0xfc]  ;;  %v1863_v51 = vld [vmem:[#allocation2 + $0x30] sm:$0xe0] }
 0x11e   :  { %v1613_v43 = vadd.f32 %v1595_v59, %v1532_v62  ;;  %v1676_v57 = vsel %vm279_vm2, %v1674_v12, %v4290_v63  ;;  %v4289_v40 = vrot.slane %v3876_v21, 3  ;;  %v1836_v18 = vrot.slane %v1806_v61, 4  ;;  %v1535_v62 = vld [vmem:[#allocation2] sm:$0xfe] }
 0x11f   :  { %2163 = vmatprep.mubr.f32.mxu0 %v2014_v29  ;;  %v4285_v60 = vrot.slane %v3884_v58, 4  ;;  %v1887_v38 = vmul.f32 %v3826_v31, %v1864_v22  ;;  %v3894_v6 = vmul.f32 %v3826_v31, %v3390_v44  ;;  %v1968_v9 = vmul.f32 %v3835_v27, %v1945_v3 }
 0x120   :  { %v1694_v37 = vadd.f32 %v1676_v57, %v1613_v43  ;;  %v1757_v52 = vsel %vm361_vm3, %v1755_v46, %v4289_v40  ;;  %v3904_v0 = vmul.f32 %v3835_v27, %v3390_v44  ;;  %v1527_v36 = vmul.f32 %v3763_v23, %v1506_v56  ;;  %v1778_v43 = vld [vmem:[#allocation2] sm:$0xf0] }
 0x121   :  { %v1838_v33 = vsel %vm443_vm4, %v1836_v18, %v4285_v60  ;;  %v1917_v4 = vrot.slane %v1887_v38, 5  ;;  %v4282_v41 = vrot.slane %v3894_v6, 5  ;;  %v1998_v12 = vrot.slane %v1968_v9, 6 }
 0x122   :  { %v1775_v61 = vadd.f32 %v1757_v52, %v1694_v37  ;;  %v4283_v22 = vrot.slane %v3904_v0, 6  ;;  %v1556_v3 = vmul.f32 %v3769_v55, %v1535_v62  ;;  %v3915_v44 = vmul.f32 %v3769_v55, %v3897_v7  ;;  %v1859_v62 = vld [vmem:[#allocation2] sm:$0xe0] }
 0x123   :  { %v1919_v29 = vsel %vm87_vm0, %v1917_v4, %v4282_v41  ;;  %v1637_v59 = vmul.f32 %v3775_v49, %v1616_v8  ;;  %v3923_v46 = vmul.f32 %v3775_v49, %v3897_v7  ;;  %v1718_v56 = vmul.f32 %v3787_v30, %v1697_v19 }
 0x124   :  { %v1856_v57 = vadd.f32 %v1838_v33, %v1775_v61  ;;  %v2000_v18 = vsel %vm606_vm5, %v1998_v12, %v4283_v22  ;;  %v1580_v38 = vrot.slane %v1556_v3, 1  ;;  %v4284_v9 = vrot.slane %v3915_v44, 1  ;;  %v1940_v61 = vld [vmem:[#allocation2] sm:$0xc0] }
 0x125   :  { %v1661_v37 = vrot.slane %v1637_v59, 2  ;;  %v4286_v52 = vrot.slane %v3923_v46, 2  ;;  %v3933_v8 = vmul.f32 %v3787_v30, %v3897_v7  ;;  %v1742_v4 = vrot.slane %v1718_v56, 3 }
 0x126   :  { %v1937_v41 = vadd.f32 %v1919_v29, %v1856_v57  ;;  %v1582_v19 = vsel %vm197_vm1, %v1580_v38, %v4284_v9  ;;  %v1799_v33 = vmul.f32 %v3793_v48, %v1778_v43  ;;  %v3941_v12 = vmul.f32 %v3793_v48, %v3897_v7  ;;  %v1539_v9 = vld [vmem:[#allocation2 + $0x30] sm:$0xfe] }
 0x127   :  { %v1608_v3 = vadd.f32 %v1582_v19, %v1527_v36  ;;  %v1663_v59 = vsel %vm279_vm2, %v1661_v37, %v4286_v52  ;;  %v4288_v22 = vrot.slane %v3933_v8, 3  ;;  %v1880_v29 = vmul.f32 %v3814_v1, %v1859_v62  ;;  %v1620_v52 = vld [vmem:[#allocation2 + $0x30] sm:$0xfc] }
 0x128   :  { %v2018_v56 = vadd.f32 %v2000_v18, %v1937_v41  ;;  %v1823_v57 = vrot.slane %v1799_v33, 4  ;;  %v4287_v38 = vrot.slane %v3941_v12, 4  ;;  %v3951_v43 = vmul.f32 %v3814_v1, %v3897_v7  ;;  %v4513_v33 = vld [vmem:[#allocation19_spill] sm:$0xff] }
 0x129   :  { %v1689_v60 = vadd.f32 %v1663_v59, %v1608_v3  ;;  %v1744_v36 = vsel %vm361_vm3, %v1742_v4, %v4288_v22  ;;  %v1904_v19 = vrot.slane %v1880_v29, 5  ;;  %v1961_v37 = vmul.f32 %v3832_v50, %v1940_v61  ;;  %v1701_v59 = vld [vmem:[#allocation2 + $0x30] sm:$0xf8] }
 0x12a   :  { %2175 = vmatprep.mubr.f32.mxu1 %v2018_v56  ;;  %v1825_v41 = vsel %vm443_vm4, %v1823_v57, %v4287_v38  ;;  %v4291_v18 = vrot.slane %v3951_v43, 5  ;;  %v3963_v62 = vmul.f32 %v3832_v50, %v3897_v7  ;;  %v1531_v3 = vmul.f32 %v3763_v23, %v4513_v33 }
 0x12b   :  { %v1770_v4 = vadd.f32 %v1744_v36, %v1689_v60  ;;  %v1985_v29 = vrot.slane %v1961_v37, 6  ;;  %v1562_v61 = vmul.f32 %v3769_v55, %v1539_v9  ;;  %v3970_v56 = vmul.f32 %v3769_v55, %v3528_v11  ;;  %v1782_v60 = vld [vmem:[#allocation2 + $0x30] sm:$0xf0] }
 0x12c   :  { %v1906_v57 = vsel %vm87_vm0, %v1904_v19, %v4291_v18  ;;  %v4295_v38 = vrot.slane %v3963_v62, 6  ;;  %v1643_v22 = vmul.f32 %v3775_v49, %v1620_v52  ;;  %v3979_v33 = vmul.f32 %v3775_v49, %v3528_v11 }
 0x12d   :  { %v1851_v36 = vadd.f32 %v1825_v41, %v1770_v4  ;;  %v1590_v37 = vrot.slane %v1562_v61, 1  ;;  %v4298_v9 = vrot.slane %v3970_v56, 1  ;;  %v1724_v40 = vmul.f32 %v3787_v30, %v1701_v59  ;;  %v1944_v61 = vld [vmem:[#allocation2 + $0x30] sm:$0xc0] }
 0x12e   :  { %v1987_v63 = vsel %vm606_vm5, %v1985_v29, %v4295_v38  ;;  %v1671_v19 = vrot.slane %v1643_v22, 2  ;;  %v4297_v18 = vrot.slane %v3979_v33, 2  ;;  %v3989_v52 = vmul.f32 %v3787_v30, %v3528_v11 }
 0x12f   :  { %v1932_v54 = vadd.f32 %v1906_v57, %v1851_v36  ;;  %v1592_v41 = vsel %vm197_vm1, %v1590_v37, %v4298_v9  ;;  %v1752_v4 = vrot.slane %v1724_v40, 3  ;;  %v1805_v59 = vmul.f32 %v3793_v48, %v1782_v60  ;;  %v1538_v60 = vld [vmem:[#allocation2 + $0x28] sm:$0x1] }
 0x130   :  { %v1612_v25 = vadd.f32 %v1592_v41, %v1531_v3  ;;  %v1673_v22 = vsel %vm279_vm2, %v1671_v19, %v4297_v18  ;;  %v4299_v29 = vrot.slane %v3989_v52, 3  ;;  %v4001_v38 = vmul.f32 %v3793_v48, %v3528_v11  ;;  %v1619_v18 = vld [vmem:[#allocation2 + $0x28] sm:$0x3] }
 0x131   :  { %v2013_v57 = vadd.f32 %v1987_v63, %v1932_v54  ;;  %v1833_v36 = vrot.slane %v1805_v59, 4  ;;  %v1886_v32 = vmul.f32 %v3814_v1, %v1863_v51  ;;  %v4006_v40 = vmul.f32 %v3814_v1, %v3528_v11  ;;  %v1700_v9 = vld [vmem:[#allocation2 + $0x28] sm:$0x7] }
 0x132   :  { %v1693_v3 = vadd.f32 %v1673_v22, %v1612_v25  ;;  %v1754_v37 = vsel %vm361_vm3, %v1752_v4, %v4299_v29  ;;  %v4303_v19 = vrot.slane %v4001_v38, 4  ;;  %v1967_v41 = vmul.f32 %v3832_v50, %v1944_v61  ;;  %v1781_v59 = vld [vmem:[#allocation2 + $0x28] sm:$0xf] }
 0x133   :  { %2164 = vmatmul.mubr.f32.vlgmr.msra.gmra.mrb[8].mxu0 %v2013_v57  ;;  %v1914_v54 = vrot.slane %v1886_v32, 5  ;;  %v4304_v51 = vrot.slane %v4006_v40, 5  ;;  %v4016_v63 = vmul.f32 %v3832_v50, %v3528_v11  ;;  %v1530_v25 = vmul.f32 %v3766_v47, %v3760_v20  ;;  %v1862_v22 = vld [vmem:[#allocation2 + $0x28] sm:$0x1f] }
 0x134   :  { %v1774_v4 = vadd.f32 %v1754_v37, %v1693_v3  ;;  %v1835_v61 = vsel %vm443_vm4, %v1833_v36, %v4303_v19  ;;  %v1995_v29 = vrot.slane %v1967_v41, 6  ;;  %v1561_v57 = vmul.f32 %v3772_v26, %v1538_v60  ;;  %v1943_v32 = vld [vmem:[#allocation2 + $0x28] sm:$0x3f] }
 0x135   :  { %4514 = vst [vmem:[#allocation36_spill] sm:$0xff] %v4016_v63  ;;  %v1916_v17 = vsel %vm87_vm0, %v1914_v54, %v4304_v51  ;;  %v4308_v11 = vrot.slane %v4016_v63, 6  ;;  %v1642_v42 = vmul.f32 %v3784_v53, %v1619_v18  ;;  %v1723_v20 = vmul.f32 %v3790_v45, %v1700_v9  ;;  %v1542_v51 = vld [vmem:[#allocation2 + $0x58] sm:$0x1] }
 0x136   :  { %v1855_v10 = vadd.f32 %v1835_v61, %v1774_v4  ;;  %v1588_v3 = vrot.slane %v1561_v57, 1  ;;  %v1804_v37 = vmul.f32 %v3807_v24, %v1781_v59  ;;  %v1885_v36 = vmul.f32 %v3826_v31, %v1862_v22  ;;  %v1704_v61 = vld [vmem:[#allocation2 + $0x58] sm:$0x7] }
 0x137   :  { %v1997_v60 = vsel %vm606_vm5, %v1995_v29, %v4308_v11  ;;  %v1669_v41 = vrot.slane %v1642_v42, 2  ;;  %v1750_v19 = vrot.slane %v1723_v20, 3  ;;  %v1966_v54 = vmul.f32 %v3835_v27, %v1943_v32  ;;  %v1785_v59 = vld [vmem:[#allocation2 + $0x58] sm:$0xf] }
 0x138   :  { %v1936_v39 = vadd.f32 %v1916_v17, %v1855_v10  ;;  %v4515_v18 = vrot.slane %v3781_v5, 1  ;;  %v1831_v4 = vrot.slane %v1804_v37, 4  ;;  %v4516_v22 = vrot.slane %v3799_v28, 2  ;;  %v1866_v42 = vld [vmem:[#allocation2 + $0x58] sm:$0x1f] }
 0x139   :  { %v1912_v29 = vrot.slane %v1885_v36, 5  ;;  %v1947_v20 = vld [vmem:[#allocation2 + $0x58] sm:$0x3f]  ;;  %v4517_v32 = vrot.slane %v3804_v15, 3  ;;  %v4518_v5 = vrot.slane %v3823_v34, 4  ;;  %v1567_v28 = vmul.f32 %v3772_v26, %v1542_v51 }
 0x13a   :  { %v1589_v9 = vsel %vm197_vm1, %v4515_v18, %v1588_v3  ;;  %v1670_v63 = vsel %vm279_vm2, %v4516_v22, %v1669_v41  ;;  %v2017_v11 = vadd.f32 %v1997_v60, %v1936_v39  ;;  %v1993_v3 = vrot.slane %v1966_v54, 6  ;;  %v2461_v18 = vld [vmem:[#allocation2 + $0x48] sm:$0xff]  ;;  %v1537_v60 = vld [vmem:[#allocation2 + $0x20] sm:$0x1] }
 0x13b   :  { %v1611_v57 = vadd.f32 %v1589_v9, %v1530_v25  ;;  %v1751_v10 = vsel %vm361_vm3, %v4517_v32, %v1750_v19  ;;  %v1832_v17 = vsel %vm443_vm4, %v4518_v5, %v1831_v4  ;;  %v1534_v25 = vmul.f32 %v2461_v18, %v3766_v47  ;;  %v1942_v32 = vld [vmem:[#allocation2 + $0x20] sm:$0x3f] }
 0x13c   :  { %v1648_v36 = vmul.f32 %v3784_v53, %v1623_v14  ;;  %2176 = vmatmul.mubr.f32.vlgmr.msra.gmra.mrb[8].mxu1 %v2017_v11  ;;  %v1729_v39 = vmul.f32 %v3790_v45, %v1704_v61  ;;  %v1810_v15 = vmul.f32 %v3807_v24, %v1785_v59  ;;  %v1891_v19 = vmul.f32 %v3826_v31, %v1866_v42  ;;  %v1618_v31 = vld [vmem:[#allocation2 + $0x20] sm:$0x3] }
 0x13d   :  { %v1692_v37 = vadd.f32 %v1670_v63, %v1611_v57  ;;  %v1972_v34 = vmul.f32 %v3835_v27, %v1947_v20  ;;  %v4519_v63 = vrot.slane %v3841_v16, 5  ;;  %v1598_v47 = vrot.slane %v1567_v28, 1  ;;  %v1780_v59 = vld [vmem:[#allocation2 + $0x20] sm:$0xf] }
 0x13e   :  { %v1679_v9 = vrot.slane %v1648_v36, 2  ;;  %v4520_v26 = vrot.slane %v3846_v35, 6  ;;  %v1760_v53 = vrot.slane %v1729_v39, 3  ;;  %v1841_v45 = vrot.slane %v1810_v15, 4  ;;  %v1699_v35 = vld [vmem:[#allocation2 + $0x20] sm:$0x7] }
 0x13f   :  { %v1773_v41 = vadd.f32 %v1751_v10, %v1692_v37  ;;  %v1913_v54 = vsel %vm87_vm0, %v4519_v63, %v1912_v29  ;;  %v1529_v24 = vmul.f32 %v3763_v23, %v3897_v7  ;;  %v4521_v27 = vrot.slane %v3858_v13, 1  ;;  %v1861_v57 = vld [vmem:[#allocation2 + $0x20] sm:$0x1f]  ;;  %v1622_v63 = vld [vmem:[#allocation2 + $0x50] sm:$0x3] }
 0x140   :  { %v1994_v14 = vsel %vm606_vm5, %v4520_v26, %v1993_v3  ;;  %v4522_v16 = vrot.slane %v3866_v2, 2  ;;  %v1560_v61 = vmul.f32 %v3769_v55, %v1537_v60  ;;  %v4523_v29 = vrot.slane %v3876_v21, 3 }
 0x141   :  { %v1854_v51 = vadd.f32 %v1832_v17, %v1773_v41  ;;  %v1599_v11 = vsel %vm197_vm1, %v4521_v27, %v1598_v47  ;;  %v1922_v42 = vrot.slane %v1891_v19, 5  ;;  %v2003_v20 = vrot.slane %v1972_v34, 6  ;;  %v1541_v41 = vld [vmem:[#allocation2 + $0x50] sm:$0x1] }
 0x142   :  { %v1680_v4 = vsel %vm279_vm2, %v4522_v16, %v1679_v9  ;;  %v1615_v22 = vadd.f32 %v1599_v11, %v1534_v25  ;;  %v1761_v7 = vsel %vm361_vm3, %v4523_v29, %v1760_v53  ;;  %v4524_v10 = vrot.slane %v3884_v58, 4  ;;  %v1865_v16 = vld [vmem:[#allocation2 + $0x50] sm:$0x1f] }
 0x143   :  { %v1935_v13 = vadd.f32 %v1913_v54, %v1854_v51  ;;  %v1586_v5 = vrot.slane %v1560_v61, 1  ;;  %v1641_v17 = vmul.f32 %v3775_v49, %v1618_v31  ;;  %v1722_v37 = vmul.f32 %v3787_v30, %v1699_v35  ;;  %v2462_v61 = vld [vmem:[#allocation2 + $0x40] sm:$0xff] }
 0x144   :  { %v1842_v2 = vsel %vm443_vm4, %v4524_v10, %v1841_v45  ;;  %v1696_v3 = vadd.f32 %v1680_v4, %v1615_v22  ;;  %v1803_v18 = vmul.f32 %v3793_v48, %v1780_v59  ;;  %v1884_v21 = vmul.f32 %v3814_v1, %v1861_v57  ;;  %v1703_v45 = vld [vmem:[#allocation2 + $0x50] sm:$0x7] }
 0x145   :  { %v2016_v25 = vadd.f32 %v1994_v14, %v1935_v13  ;;  %v4525_v28 = vrot.slane %v3915_v44, 1  ;;  %v1667_v39 = vrot.slane %v1641_v17, 2  ;;  %v1965_v58 = vmul.f32 %v3832_v50, %v1942_v32 }
 0x146   :  { %v1777_v15 = vadd.f32 %v1761_v7, %v1696_v3  ;;  %v1748_v34 = vrot.slane %v1722_v37, 3  ;;  %v1829_v60 = vrot.slane %v1803_v18, 4  ;;  %v4526_v54 = vrot.slane %v3894_v6, 5  ;;  %v1946_v7 = vld [vmem:[#allocation2 + $0x50] sm:$0x3f] }
 0x147   :  { %v1587_v36 = vsel %vm197_vm1, %v4525_v28, %v1586_v5  ;;  %2169 = vmatprep.mubr.f32.mxu0 %v2016_v25  ;;  %v4527_v9 = vrot.slane %v3904_v0, 6  ;;  %v4528_v26 = vrot.slane %v3923_v46, 2  ;;  %v1910_v53 = vrot.slane %v1884_v21, 5 }
 0x148   :  { %v1610_v19 = vadd.f32 %v1587_v36, %v1529_v24  ;;  %v1923_v47 = vsel %vm87_vm0, %v4526_v54, %v1922_v42  ;;  %v1784_v24 = vld [vmem:[#allocation2 + $0x50] sm:$0xf]  ;;  %v1858_v31 = vadd.f32 %v1842_v2, %v1777_v15  ;;  %v4529_v27 = vrot.slane %v3933_v8, 3 }
 0x149   :  { %v2004_v44 = vsel %vm606_vm5, %v4527_v9, %v2003_v20  ;;  %v1668_v14 = vsel %vm279_vm2, %v4528_v26, %v1667_v39  ;;  %v1991_v6 = vrot.slane %v1965_v58, 6  ;;  %v4530_v4 = vrot.slane %v3941_v12, 4 }
 0x14a   :  { %v1691_v51 = vadd.f32 %v1668_v14, %v1610_v19  ;;  %v1749_v11 = vsel %vm361_vm3, %v4529_v27, %v1748_v34  ;;  %v1533_v46 = vmul.f32 %v2462_v61, %v3763_v23  ;;  %v1566_v35 = vmul.f32 %v3769_v55, %v1541_v41  ;;  %v4538_v19 = vld [vmem:[#allocation36_spill] sm:$0xff] }
 0x14b   :  { %v1830_v0 = vsel %vm443_vm4, %v4530_v4, %v1829_v60  ;;  %v1647_v59 = vmul.f32 %v3775_v49, %v1622_v63  ;;  %v1939_v57 = vadd.f32 %v1923_v47, %v1858_v31  ;;  %v1728_v29 = vmul.f32 %v3787_v30, %v1703_v45  ;;  %v4540_v63 = vld [vmem:[#allocation13_spill] sm:$0xff]  ;;  %v4541_v47 = vld [vmem:[#allocation14_spill] sm:$0xff] }
 0x14c   :  { %v1772_v22 = vadd.f32 %v1749_v11, %v1691_v51  ;;  %v1809_v8 = vmul.f32 %v3793_v48, %v1784_v24  ;;  %v4531_v42 = vrot.slane %v3951_v43, 5  ;;  %v1596_v20 = vrot.slane %v1566_v35, 1 }
 0x14d   :  { %v1677_v32 = vrot.slane %v1647_v59, 2  ;;  %v1890_v13 = vmul.f32 %v3814_v1, %v1865_v16  ;;  %v2020_v23 = vadd.f32 %v2004_v44, %v1939_v57  ;;  %v4532_v55 = vrot.slane %v3963_v62, 6 }
 0x14e   :  { %v1911_v12 = vsel %vm87_vm0, %v4531_v42, %v1910_v53  ;;  %v1853_v10 = vadd.f32 %v1830_v0, %v1772_v22  ;;  %v1758_v2 = vrot.slane %v1728_v29, 3  ;;  %v4533_v30 = vrot.slane %v3970_v56, 1  ;;  %v2226_v53 = vld [vmem:[%s4160_s3 + $0x2] sm:$0x3] }
 0x14f   :  { %v1992_v49 = vsel %vm606_vm5, %v4532_v55, %v1991_v6  ;;  %v4534_v5 = vrot.slane %v3979_v33, 2  ;;  %v1839_v17 = vrot.slane %v1809_v8, 4  ;;  %v1971_v3 = vmul.f32 %v3832_v50, %v1946_v7  ;;  %2181 = vmatprep.mubr.f32.mxu1 %v2020_v23 }
 0x150   :  { %v1597_v48 = vsel %vm197_vm1, %v4533_v30, %v1596_v20  ;;  %v1934_v1 = vadd.f32 %v1911_v12, %v1853_v10  ;;  %v4535_v18 = vrot.slane %v3989_v52, 3  ;;  %v1920_v21 = vrot.slane %v1890_v13, 5 }
 0x151   :  { %v1678_v43 = vsel %vm279_vm2, %v4534_v5, %v1677_v32  ;;  %v1614_v37 = vadd.f32 %v1597_v48, %v1533_v46  ;;  %v4536_v56 = vrot.slane %v4001_v38, 4  ;;  %v2001_v33 = vrot.slane %v1971_v3, 6  ;;  %v707_v38 = vld [vmem:[%s4160_s3] sm:$0x3]  ;;  %v2227_v48 = vld [vmem:[%s4160_s3 + $0x4] sm:$0x3] }
 0x152   :  { %v1759_v62 = vsel %vm361_vm3, %v4535_v18, %v1758_v2  ;;  %v2015_v25 = vadd.f32 %v1992_v49, %v1934_v1  ;;  %v4537_v58 = vrot.slane %v4006_v40, 5  ;;  %v4539_v34 = vrot.slane %v4538_v19, 6  ;;  %s2563_s3 = smov [#allocation9]  }
 0x153   :  { %v1695_v28 = vadd.f32 %v1678_v43, %v1614_v37  ;;  %v1840_v36 = vsel %vm443_vm4, %v4536_v56, %v1839_v17  ;;  %v712_v54 = vrot.slane %v707_v38, %v4540_v63  ;;  %v716_v9 = vrot.slane %v707_v38, %v4541_v47  ;;  %s2201_s30 = sshll.u32 %s2563_s3, 4  ;;  %s2202_s30 = int_to_ptr.vmem [resolvable:$true] %s2201_s30 }
 0x154   :  { %2170 = vmatmul.mubr.f32.gmra.mrb[10].mxu0 %v2015_v25  ;;  %v1921_v50 = vsel %vm87_vm0, %v4537_v58, %v1920_v21  ;;  %v2002_v52 = vsel %vm606_vm5, %v4539_v34, %v2001_v33  ;;  %v1402_v45 = vrot.slane %v2226_v53, %v4540_v63  ;;  %v1406_v24 = vrot.slane %v2226_v53, %v4541_v47  ;;  %s2529_s5 = scalar_lea.vmem %s2202_s30, 3072  ;;  %p2534_p11 = scmp.lt.s32.totalorder %s2202_s30, %s2202_s30 }
 0x155   :  { %v1776_v39 = vadd.f32 %v1759_v62, %v1695_v28  ;;  %v2092_v5 = vrot.slane %v2227_v48, %v4540_v63  ;;  %v2096_v43 = vrot.slane %v2227_v48, %v4541_v47  ;;  %p2530_p10 = scmp.ne.s32.totalorder %s2202_s30, %s2529_s5  ;;  %p2535_p12 = scmp.lt.s32.totalorder %s2529_s5, %s2529_s5 }
 0x157   :  { %v1857_v15 = vadd.f32 %v1840_v36, %v1776_v39  ;;  %p2536_p13 = por %p2535_p12, %p2534_p11 }
 0x159   :  { %v1938_v60 = vadd.f32 %v1921_v50, %v1857_v15  ;;  %p2537_p0 = pnand %p2536_p13, %p2530_p10 }
 0x15b   :  { %v2019_v41 = vadd.f32 %v2002_v52, %v1938_v60 }
 0x15d   :  { %2182 = vmatmul.mubr.f32.gmra.mrb[10].mxu1 %v2019_v41 }
 0x16a   :  { %v785_v44 = vpop.f32.mrb[0].mxu0 }
 0x16b   :  { %v786_v40 = vadd.f32 %v785_v44, %v712_v54  ;;  %v787_v26 = vpop.f32.mrb[1].mxu0 }
 0x16c   :  { %v788_v14 = vadd.f32 %v787_v26, %v716_v9 }
 0x16d   :  { %808 = vst [vmem:[#allocation9] sm:$0xff] %v786_v40 }
 0x16e   :  { %809 = vst [vmem:[#allocation9 + $0x8] sm:$0xff] %v788_v14 }
 0x174   :  { %v1475_v31 = vpop.f32.mrb[0].mxu1 }
 0x175   :  { %v1476_v51 = vadd.f32 %v1475_v31, %v1402_v45  ;;  %v1477_v27 = vpop.f32.mrb[1].mxu1 }
 0x176   :  { %v1478_v11 = vadd.f32 %v1477_v27, %v1406_v24 }
 0x177   :  { %1498 = vst [vmem:[#allocation9 + $0x10] sm:$0xff] %v1476_v51 }
 0x178   :  { %1499 = vst [vmem:[#allocation9 + $0x18] sm:$0xff] %v1478_v11 }
 0x19c   :  { %v791_v6 = vpop.f32.mrb[2].mxu0 }
 0x19d   :  { %v792_v16 = vadd.f32 %v791_v6, %v712_v54  ;;  %v793_v4 = vpop.f32.mrb[3].mxu0 }
 0x19e   :  { %v794_v0 = vadd.f32 %v793_v4, %v716_v9 }
 0x19f   :  { %810 = vst [vmem:[#allocation9 + $0x30] sm:$0xff] %v792_v16 }
 0x1a0   :  { %811 = vst [vmem:[#allocation9 + $0x38] sm:$0xff] %v794_v0 }
 0x1a3   :  { %v1481_v61 = vpop.f32.mrb[2].mxu1 }
 0x1a4   :  { %v1482_v46 = vadd.f32 %v1481_v61, %v1402_v45  ;;  %v1483_v35 = vpop.f32.mrb[3].mxu1 }
 0x1a5   :  { %v1484_v59 = vadd.f32 %v1483_v35, %v1406_v24 }
 0x1a6   :  { %1500 = vst [vmem:[#allocation9 + $0x40] sm:$0xff] %v1482_v46 }
 0x1a7   :  { %1501 = vst [vmem:[#allocation9 + $0x48] sm:$0xff] %v1484_v59 }
 0x1be   :  { %v797_v57 = vpop.f32.mrb[4].mxu0 }
 0x1bf   :  { %v798_v22 = vadd.f32 %v797_v57, %v712_v54  ;;  %v799_v29 = vpop.f32.mrb[5].mxu0 }
 0x1c0   :  { %v800_v8 = vadd.f32 %v799_v29, %v716_v9 }
 0x1c1   :  { %812 = vst [vmem:[#allocation9 + $0x60] sm:$0xff] %v798_v22 }
 0x1c2   :  { %813 = vst [vmem:[#allocation9 + $0x68] sm:$0xff] %v800_v8 }
 0x1c7   :  { %v1487_v7 = vpop.f32.mrb[4].mxu1 }
 0x1c8   :  { %v1488_v42 = vadd.f32 %v1487_v7, %v1402_v45  ;;  %v1489_v12 = vpop.f32.mrb[5].mxu1 }
 0x1c9   :  { %v1490_v20 = vadd.f32 %v1489_v12, %v1406_v24 }
 0x1ca   :  { %1502 = vst [vmem:[#allocation9 + $0x70] sm:$0xff] %v1488_v42 }
 0x1cb   :  { %1503 = vst [vmem:[#allocation9 + $0x78] sm:$0xff] %v1490_v20 }
 0x1e2   :  { %v803_v32 = vpop.f32.mrb[6].mxu0 }
 0x1e3   :  { %v804_v13 = vadd.f32 %v803_v32, %v712_v54  ;;  %v805_v23 = vpop.f32.mrb[7].mxu0 }
 0x1e4   :  { %v806_v10 = vadd.f32 %v805_v23, %v716_v9 }
 0x1e5   :  { %814 = vst [vmem:[#allocation9 + $0x90] sm:$0xff] %v804_v13 }
 0x1e6   :  { %815 = vst [vmem:[#allocation9 + $0x98] sm:$0xff] %v806_v10 }
 0x1e9   :  { %v1493_v55 = vpop.f32.mrb[6].mxu1 }
 0x1ea   :  { %v1494_v49 = vadd.f32 %v1493_v55, %v1402_v45  ;;  %v1495_v2 = vpop.f32.mrb[7].mxu1 }
 0x1eb   :  { %v1496_v30 = vadd.f32 %v1495_v2, %v1406_v24 }
 0x1ec   :  { %1504 = vst [vmem:[#allocation9 + $0xa0] sm:$0xff] %v1494_v49 }
 0x1ed   :  { %1505 = vst [vmem:[#allocation9 + $0xa8] sm:$0xff] %v1496_v30 }
 0x206   :  { %v2165_v17 = vpop.f32.mrb[8].mxu0 }
 0x207   :  { %v2166_v3 = vadd.f32 %v2165_v17, %v2092_v5  ;;  %v2167_v1 = vpop.f32.mrb[9].mxu0 }
 0x208   :  { %v2168_v37 = vadd.f32 %v2167_v1, %v2096_v43 }
 0x209   :  { %2188 = vst [vmem:[#allocation9 + $0x20] sm:$0xff] %v2166_v3 }
 0x20a   :  { %2189 = vst [vmem:[#allocation9 + $0x28] sm:$0xff] %v2168_v37 }
 0x20f   :  { %v2177_v18 = vpop.f32.mrb[8].mxu1 }
 0x210   :  { %v2178_v62 = vadd.f32 %v2177_v18, %v2092_v5  ;;  %v2179_v21 = vpop.f32.mrb[9].mxu1 }
 0x211   :  { %v2180_v25 = vadd.f32 %v2179_v21, %v2096_v43 }
 0x212   :  { %2192 = vst [vmem:[#allocation9 + $0x80] sm:$0xff] %v2178_v62 }
 0x213   :  { %2193 = vst [vmem:[#allocation9 + $0x88] sm:$0xff] %v2180_v25 }
 0x227   :  { %v2171_v28 = vpop.f32.mrb[10].mxu0 }
 0x228   :  { %v2172_v56 = vadd.f32 %v2171_v28, %v2092_v5  ;;  %v2173_v36 = vpop.f32.mrb[11].mxu0 }
 0x229   :  { %v2174_v33 = vadd.f32 %v2173_v36, %v2096_v43 }
 0x22a   :  { %2190 = vst [vmem:[#allocation9 + $0x50] sm:$0xff] %v2172_v56 }
 0x22b   :  { %2191 = vst [vmem:[#allocation9 + $0x58] sm:$0xff] %v2174_v33 }
 0x230   :  { %v2183_v39 = vpop.f32.mrb[10].mxu1 }
 0x231   :  { %v2184_v58 = vadd.f32 %v2183_v39, %v2092_v5  ;;  %v2185_v50 = vpop.f32.mrb[11].mxu1 }
 0x232   :  { %v2186_v15 = vadd.f32 %v2185_v50, %v2096_v43 }
 0x233   :  { %2194 = vst [vmem:[#allocation9 + $0xb0] sm:$0xff] %v2184_v58 }
 0x234   :  { %2195 = vst [vmem:[#allocation9 + $0xb8] sm:$0xff] %v2186_v15 }
 0x235   :  { %2540 = shalt.err (!%p2537_p0)
}
 0x236   :  { %s2541_s8 = scalar_lea.hbm %s4161_s4, 3072 }
 0x237   :  { %p2542_p1 = scmp.ne.s32.totalorder %s4161_s4, %s2541_s8  ;;  %p2545_p2 = scmp.lt.u32.totalorder %s2541_s8, %s4161_s4 }
 0x239   :  { %p2547_p3 = pnand %p2545_p2, %p2542_p1 }
 0x23b   :  { %2550 = shalt.err (!%p2547_p3)
}
 0x23c   :  { %s2564_s1 = smov 768   ;;  %s2565_s13 = smov 48  }
 0x23d   :  { %2207 = dma.vmem_to_hbm [thread:$0]  %s2202_s30, 3072, %s4161_s4, [#allocation5], %s2564_s1, %s2564_s1, %s2565_s13  }
 0x23e   :  { %2555 = dma.done.wait [#allocation5], 3072  }
 0x23f   :  { %2556 = vsyncadd [#allocation5], 4294964224 }
 0x240   :  { %2211 = vsyncpa [#allocation4], 1 }
 0x241   :  { %2212 = vsyncpa [#allocation7], 1 }
 0x242   :  { %2213 = vsyncpa [#allocation5], 1 }

</bundles_post_ra>
